<compile_context>
chip_gen: v6e
topology: v6e:2x2x1
jax: 0.10.0
libtpu: 0.0.40
codegen_flags: <defaults>
</compile_context>

<pallas_src>
import functools

import jax
import jax.numpy as jnp
from jax.experimental import pallas as pl
from jax.experimental.pallas import tpu as pltpu


# ----------------------------------------------------------------------------
# Kernel A: fused multi-tap conv (MXU matmuls) + BatchNorm statistics
# ----------------------------------------------------------------------------

def _conv_taps_kernel(x_ref, w_ref, m_ref, y_ref, s_ref, *, offsets, out_m):
    # x_ref : (Cin,  IN_M)   bf16  padded & flattened input image (pixels on lanes)
    # w_ref : (T, Cout, Cin) bf16  per-tap weight matrices
    # m_ref : (1, OUT_M)     f32   validity mask for the BN statistics
    # y_ref : (Cout, OUT_M)  f32   conv output (pre-BN), lane-dense store
    # s_ref : (Cout, 2)      f32   per-image [sum, sum of squares]
    cout = y_ref.shape[0]
    acc = jnp.zeros((cout, out_m), jnp.float32)
    for t, off in enumerate(offsets):                 # static unroll over taps
        xs = x_ref[:, off:off + out_m]                # (Cin, OUT_M) static slice
        acc = acc + jnp.dot(w_ref[t], xs, preferred_element_type=jnp.float32)
    y_ref[...] = acc
    am = acc * m_ref[...]                             # drop padded-grid garbage
    s1 = jnp.sum(am, axis=1, keepdims=True)           # (Cout, 1)
    s2 = jnp.sum(am * acc, axis=1, keepdims=True)     # (Cout, 1)
    s_ref[...] = jnp.concatenate([s1, s2], axis=1)


def conv_taps_stats(x, w_taps, mask, offsets):
    """x: (N, Cin, IN_M) bf16, w_taps: (T, Cout, Cin) bf16, mask: (1, OUT_M) f32.

    Returns y: (N, Cout, OUT_M) f32 and stats: (N, Cout, 2) f32.
    """
    n, cin, in_m = x.shape
    t, cout, _ = w_taps.shape
    out_m = mask.shape[1]
    kern = functools.partial(_conv_taps_kernel, offsets=tuple(offsets), out_m=out_m)
    return pl.pallas_call(
        kern,
        out_shape=(jax.ShapeDtypeStruct((n, cout, out_m), jnp.float32),
                   jax.ShapeDtypeStruct((n, cout, 2), jnp.float32)),
        grid_spec=pltpu.PrefetchScalarGridSpec(
            num_scalar_prefetch=0, grid=(n,),
            in_specs=[pl.BlockSpec((None, cin, in_m), lambda i: (i, 0, 0)),
                      pl.BlockSpec((t, cout, cin), lambda i: (0, 0, 0)),
                      pl.BlockSpec((1, out_m), lambda i: (0, 0))],
            out_specs=[pl.BlockSpec((None, cout, out_m), lambda i: (i, 0, 0)),
                       pl.BlockSpec((None, cout, 2), lambda i: (i, 0, 0))]),
        compiler_params=pltpu.CompilerParams(
            dimension_semantics=("parallel",)),
    )(x, w_taps, mask)


# ----------------------------------------------------------------------------
# Kernel B: folded-BatchNorm affine + ReLU (lane-dense), outputs bf16
# ----------------------------------------------------------------------------

def _affine_relu_kernel(x_ref, s_ref, t_ref, o_ref):
    y = jnp.maximum(x_ref[...] * s_ref[...] + t_ref[...], 0.0)
    o_ref[...] = y.astype(o_ref.dtype)


def affine_relu(y, scale, shift):
    """y: (N, C, M) f32; scale/shift: (C, 1) f32.  Returns bf16 (N, C, M)."""
    n, c, m = y.shape
    return pl.pallas_call(
        _affine_relu_kernel,
        out_shape=jax.ShapeDtypeStruct((n, c, m), jnp.bfloat16),
        grid_spec=pltpu.PrefetchScalarGridSpec(
            num_scalar_prefetch=0, grid=(n,),
            in_specs=[pl.BlockSpec((None, c, m), lambda i: (i, 0, 0)),
                      pl.BlockSpec((c, 1), lambda i: (0, 0)),
                      pl.BlockSpec((c, 1), lambda i: (0, 0))],
            out_specs=pl.BlockSpec((None, c, m), lambda i: (i, 0, 0))),
        compiler_params=pltpu.CompilerParams(
            dimension_semantics=("parallel",)),
    )(y, scale, shift)


# ----------------------------------------------------------------------------
# Kernel C: per-channel bias + sigmoid (lane-dense), EUP reciprocal
# ----------------------------------------------------------------------------

def _bias_sigmoid_kernel(x_ref, b_ref, o_ref):
    v = x_ref[...] + b_ref[...]
    o_ref[...] = pl.reciprocal(1.0 + jnp.exp(-v), approx=True)


def bias_sigmoid(x2d, bias_col, tn=2048):
    r, m = x2d.shape
    tn = tn if (m % tn == 0) else m                    # keep lane tile a divisor
    return pl.pallas_call(
        _bias_sigmoid_kernel,
        out_shape=jax.ShapeDtypeStruct((r, m), jnp.float32),
        grid_spec=pltpu.PrefetchScalarGridSpec(
            num_scalar_prefetch=0, grid=(m // tn,),
            in_specs=[pl.BlockSpec((r, tn), lambda i: (0, i)),
                      pl.BlockSpec((r, 1), lambda i: (0, 0))],
            out_specs=pl.BlockSpec((r, tn), lambda i: (0, i))),
        compiler_params=pltpu.CompilerParams(
            dimension_semantics=("parallel",)),
    )(x2d, bias_col)


# ----------------------------------------------------------------------------
# Glue: BN folding from kernel stats, align_corners bilinear as interp matrices
# ----------------------------------------------------------------------------

def bn_scale_shift(stats, gamma, beta, count, groups=1, eps=1e-5):
    """stats: (N, groups*C, 2) -> per-channel affine (scale, shift), (C*groups, 1)."""
    s = stats.sum(axis=0)                              # (groups*C, 2)
    s = s.reshape(groups, -1, 2).sum(axis=0)           # (C, 2)
    mean = s[:, 0] / count
    var = jnp.maximum(s[:, 1] / count - mean * mean, 0.0)   # biased variance
    scale = gamma * jax.lax.rsqrt(var + eps)
    shift = beta - mean * scale
    if groups > 1:
        scale = jnp.tile(scale, groups)
        shift = jnp.tile(shift, groups)
    return scale.reshape(-1, 1), shift.reshape(-1, 1)


def _interp_matrix(out_size, in_size):
    # align_corners=True 1-D bilinear interpolation matrix (out_size, in_size)
    if out_size == 1:
        src = jnp.zeros((1,), jnp.float32)
    else:
        src = jnp.arange(out_size, dtype=jnp.float32) * ((in_size - 1) / (out_size - 1))
    i0 = jnp.clip(jnp.floor(src).astype(jnp.int32), 0, in_size - 1)
    i1 = jnp.minimum(i0 + 1, in_size - 1)
    w = src - i0.astype(jnp.float32)
    cols = jnp.arange(in_size)[None, :]
    a = (cols == i0[:, None]).astype(jnp.float32) * (1.0 - w)[:, None]
    return a + (cols == i1[:, None]).astype(jnp.float32) * w[:, None]


def bilinear_resize_nchw(x, out_h, out_w):
    # TODO(synk): separable align_corners resize is done as small XLA einsums
    # (MXU matmuls), not a dedicated Pallas kernel.
    ah = _interp_matrix(out_h, x.shape[2])
    aw = _interp_matrix(out_w, x.shape[3])
    return jnp.einsum('yh,nchw,xw->ncyx', ah, x.astype(jnp.float32), aw)


# ----------------------------------------------------------------------------
# Decoder forward
# ----------------------------------------------------------------------------

def decoder_forward(params, x_nchw, llf_nchw):
    f32, bf16 = jnp.float32, jnp.bfloat16
    n_classes = params["w4"].shape[0]

    N, Cin, _, _ = x_nchw.shape
    _, _, Hl, Wl = llf_nchw.shape
    Cout = params["w1"].shape[0]
    Ccat = Cin + Cout

    # ---- conv1 (1x1; bias dropped — cancelled by BN) + BN1 + ReLU -----------
    llf = llf_nchw.reshape(N, Cin, Hl * Wl).astype(bf16)
    w1 = params["w1"].reshape(Cout, Cin)[None].astype(bf16)          # (1, Cout, Cin)
    ones1 = jnp.ones((1, Hl * Wl), f32)
    y1, st1 = conv_taps_stats(llf, w1, ones1, offsets=(0,))
    sc1, sh1 = bn_scale_shift(st1, params["g1"], params["be1"], count=N * Hl * Wl)
    llf_feat = affine_relu(y1, sc1, sh1)                             # (N, Cout, Hl*Wl) bf16

    # ---- bilinear upsample of x (align_corners) + channel concat ------------
    x_up = bilinear_resize_nchw(x_nchw, Hl, Wl)                      # (N, Cin, Hl, Wl) f32
    cat = jnp.concatenate(
        [x_up.astype(bf16), llf_feat.reshape(N, Cout, Hl, Wl)], axis=1)   # (N, Ccat, Hl, Wl)

    # ---- upconv2: ConvTranspose2d(Ccat->Cin, 3, stride=2, pad=1, out_pad=1)
    #      decomposed into 4 parity sub-convolutions (pixel shuffle).
    Hp, Wp = Hl + 1, Wl + 1
    catp = jnp.pad(cat, ((0, 0), (0, 0), (0, 1), (0, 1))).reshape(N, Ccat, Hp * Wp)
    max_off = Wp + 1
    catp = jnp.pad(catp, ((0, 0), (0, 0), (0, max_off)))             # tap overflow zeros
    w2 = params["w2"].astype(f32)                                    # (Ccat, Cin, 3, 3)
    z = jnp.zeros((Cin, Ccat), f32)
    wt = lambda my, mx: w2[:, :, my, mx].T                           # (Cin, Ccat)
    # output-channel groups are [ee, eo, oe, oo] (even/odd row x even/odd col)
    w2_taps = jnp.stack([
        jnp.concatenate([wt(1, 1), wt(1, 2), wt(2, 1), wt(2, 2)], axis=0),  # in[a,   b  ]
        jnp.concatenate([z,        wt(1, 0), z,        wt(2, 0)], axis=0),  # in[a,   b+1]
        jnp.concatenate([z,        z,        wt(0, 1), wt(0, 2)], axis=0),  # in[a+1, b  ]
        jnp.concatenate([z,        z,        z,        wt(0, 0)], axis=0),  # in[a+1, b+1]
    ]).astype(bf16)                                                  # (4, 4*Cin, Ccat)
    mask2 = ((jnp.arange(Hp) < Hl)[:, None] &
             (jnp.arange(Wp) < Wl)[None, :]).reshape(1, -1).astype(f32)
    y2, st2 = conv_taps_stats(catp, w2_taps, mask2, offsets=(0, 1, Wp, Wp + 1))
    sc2, sh2 = bn_scale_shift(st2, params["g2"], params["be2"],
                              count=N * 4 * Hl * Wl, groups=4)
    y2a = affine_relu(y2, sc2, sh2)                                  # (N, 4*Cin, Hp*Wp) bf16
    # pixel-shuffle interleave + drop the padded-grid garbage columns
    y2a = y2a.reshape(N, 2, 2, Cin, Hp, Wp)[:, :, :, :, :Hl, :Wl]    # (n, gy, gx, c, a, b)
    h = y2a.transpose(0, 3, 4, 1, 5, 2).reshape(N, Cin, 2 * Hl, 2 * Wl)

    Ho, Wo = 2 * Hl, 2 * Wl

    # ---- conv3 (1x1; bias dropped) + BN3 + ReLU ------------------------------
    w3 = params["w3"].reshape(Cin, Cin)[None].astype(bf16)
    ones3 = jnp.ones((1, Ho * Wo), f32)
    y3, st3 = conv_taps_stats(h.reshape(N, Cin, Ho * Wo), w3, ones3, offsets=(0,))
    sc3, sh3 = bn_scale_shift(st3, params["g3"], params["be3"], count=N * Ho * Wo)
    h3 = affine_relu(y3, sc3, sh3).reshape(N, Cin, Ho, Wo)           # bf16

    # ---- conv4 (3x3, padding=1): 9-tap in-kernel accumulation; bias folded
    #      into the final sigmoid stage (bilinear resize preserves it exactly).
    Hp4, Wp4 = Ho + 2, Wo + 2
    hpad = jnp.pad(h3, ((0, 0), (0, 0), (1, 1), (1, 1))).reshape(N, Cin, Hp4 * Wp4)
    max_off4 = 2 * Wp4 + 2
    hpad = jnp.pad(hpad, ((0, 0), (0, 0), (0, max_off4)))
    w4_taps = jnp.stack([params["w4"][:, :, di, dj]
                         for di in range(3) for dj in range(3)]).astype(bf16)
    offs4 = tuple(di * Wp4 + dj for di in range(3) for dj in range(3))
    mask4 = ((jnp.arange(Hp4) < Ho)[:, None] &
             (jnp.arange(Wp4) < Wo)[None, :]).reshape(1, -1).astype(f32)
    y4, _ = conv_taps_stats(hpad, w4_taps, mask4, offsets=offs4)
    y4 = y4.reshape(N, n_classes, Hp4, Wp4)[:, :, :Ho, :Wo]          # valid region

    # ---- final x2 bilinear (align_corners) + per-class bias + sigmoid --------
    tgt = 2 * Wo                                     # F.interpolate(x, x.shape[-1]*2)
    y_up = bilinear_resize_nchw(y4, tgt, tgt)        # (N, n_classes, tgt, tgt) f32
    bias_rows = jnp.tile(params["b4"], (N,)).reshape(N * n_classes, 1)
    out = bias_sigmoid(y_up.reshape(N * n_classes, tgt * tgt), bias_rows)
    return out.reshape(N, n_classes, tgt, tgt)       # already NCHW


# ----------------------------------------------------------------------------
# Deterministic parameter init (PyTorch layouts)
# ----------------------------------------------------------------------------

def init_params(key, in_channels, out_channels, n_classes):
    ks = jax.random.split(key, 14)
    ccat = in_channels + out_channels
    nrm = lambda k, s: 0.1 * jax.random.normal(k, s, jnp.float32)
    p = {}
    # b1/b2/b3 are generated for layout fidelity but intentionally unused:
    # a per-channel bias preceding BatchNorm is cancelled exactly by the mean.
    p["w1"], p["b1"] = nrm(ks[0], (out_channels, in_channels, 1, 1)), nrm(ks[1], (out_channels,))
    p["g1"], p["be1"] = 1.0 + nrm(ks[2], (out_channels,)), nrm(ks[3], (out_channels,))
    p["w2"], p["b2"] = nrm(ks[4], (ccat, in_channels, 3, 3)), nrm(ks[5], (in_channels,))
    p["g2"], p["be2"] = 1.0 + nrm(ks[6], (in_channels,)), nrm(ks[7], (in_channels,))
    p["w3"], p["b3"] = nrm(ks[8], (in_channels, in_channels, 1, 1)), nrm(ks[9], (in_channels,))
    p["g3"], p["be3"] = 1.0 + nrm(ks[10], (in_channels,)), nrm(ks[11], (in_channels,))
    p["w4"], p["b4"] = nrm(ks[12], (n_classes, in_channels, 3, 3)), nrm(ks[13], (n_classes,))
    return p


if __name__ == "__main__":
    in_channels, out_channels, n_classes = 8, 8, 4
    key = jax.random.PRNGKey(0)
    kx, kl, kp = jax.random.split(key, 3)

    # x: deep features (smaller spatial), low_level_features: 2x larger spatial
    x = jax.random.normal(kx, (2, in_channels, 8, 8), jnp.float32)
    llf = jax.random.normal(kl, (2, in_channels, 16, 16), jnp.float32)
    params = init_params(kp, in_channels, out_channels, n_classes)

    fwd = jax.jit(functools.partial(decoder_forward, params))
    out = fwd(x, llf)
    jax.block_until_ready(out)
    assert out.shape == (2, n_classes, 64, 64), out.shape
    assert bool(jnp.all(jnp.isfinite(out)))
    assert bool(jnp.all((out >= 0.0) & (out <= 1.0)))
    print("KERNEL_OK")
</pallas_src>

<mosaic_0001>
module attributes {stable_mosaic.version = 11 : i64} {
  func.func @_conv_taps_kernel(%arg0: i32, %arg1: memref<1x8x256xbf16, #tpu.memory_space<vmem>>, %arg2: memref<1x8x8xbf16, #tpu.memory_space<vmem>>, %arg3: memref<1x256xf32, #tpu.memory_space<vmem>>, %arg4: memref<1x8x256xf32, #tpu.memory_space<vmem>>, %arg5: memref<1x8x2xf32, #tpu.memory_space<vmem>>) attributes {dimension_semantics = [#tpu.dimension_semantics<parallel>], iteration_bounds = array<i64: 2>, scalar_prefetch = 0 : i64, scratch_operands = 0 : i64, tpu.core_type = #tpu.core_type<tc>, window_params = [{transform_indices = @transform_0, window_bounds = array<i64: 1, 8, 256>}, {pipeline_mode = #tpu.pipeline_mode<synchronous>, transform_indices = @transform_1, window_bounds = array<i64: 1, 8, 8>}, {pipeline_mode = #tpu.pipeline_mode<synchronous>, transform_indices = @transform_2, window_bounds = array<i64: 1, 256>}, {transform_indices = @transform_3, window_bounds = array<i64: 1, 8, 256>}, {transform_indices = @transform_4, window_bounds = array<i64: 1, 8, 2>}]} {
    %cst = arith.constant 0.000000e+00 : f32
    %0 = vector.broadcast %cst : f32 to vector<8x256xf32>
    %c0 = arith.constant 0 : index
    %c0_0 = arith.constant 0 : index
    %c0_1 = arith.constant 0 : index
    %1 = vector.load %arg1[%c0, %c0_0, %c0_1] : memref<1x8x256xbf16, #tpu.memory_space<vmem>>, vector<1x8x256xbf16>
    %2 = vector.shape_cast %1 : vector<1x8x256xbf16> to vector<8x256xbf16>
    %c0_2 = arith.constant 0 : index
    %c0_3 = arith.constant 0 : index
    %c0_4 = arith.constant 0 : index
    %3 = vector.load %arg2[%c0_2, %c0_3, %c0_4] : memref<1x8x8xbf16, #tpu.memory_space<vmem>>, vector<1x8x8xbf16>
    %4 = vector.shape_cast %3 : vector<1x8x8xbf16> to vector<8x8xbf16>
    %cst_5 = arith.constant dense<0.000000e+00> : vector<8x256xf32>
    %5 = tpu.matmul %4, %2, %cst_5 {dimension_numbers = #tpu.dot_dimension_numbers<[1], [0], [0], [1], [0, 0, 1, 1], [], []>} : vector<8x8xbf16>, vector<8x256xbf16>, vector<8x256xf32> -> vector<8x256xf32>
    %6 = arith.addf %0, %5 : vector<8x256xf32>
    %c0_6 = arith.constant 0 : index
    %c0_7 = arith.constant 0 : index
    %c0_8 = arith.constant 0 : index
    %7 = vector.load %arg4[%c0_6, %c0_7, %c0_8] : memref<1x8x256xf32, #tpu.memory_space<vmem>>, vector<1x8x256xf32>
    %8 = vector.shape_cast %7 : vector<1x8x256xf32> to vector<8x256xf32>
    %9 = vector.shape_cast %6 : vector<8x256xf32> to vector<1x8x256xf32>
    tpu.vector_store %arg4[%c0_6, %c0_7, %c0_8], %9 {strides = array<i32>} : memref<1x8x256xf32, #tpu.memory_space<vmem>>, vector<1x8x256xf32>,
    %c0_9 = arith.constant 0 : index
    %c0_10 = arith.constant 0 : index
    %10 = vector.load %arg3[%c0_9, %c0_10] : memref<1x256xf32, #tpu.memory_space<vmem>>, vector<1x256xf32>
    %11 = vector.broadcast %10 : vector<1x256xf32> to vector<8x256xf32>
    %12 = arith.mulf %6, %11 : vector<8x256xf32>
    %cst_11 = arith.constant dense<0.000000e+00> : vector<8xf32>
    %13 = vector.multi_reduction <add>, %12, %cst_11 [1] : vector<8x256xf32> to vector<8xf32>
    %14 = vector.shape_cast %13 : vector<8xf32> to vector<8x1xf32>
    %15 = arith.mulf %12, %6 : vector<8x256xf32>
    %cst_12 = arith.constant dense<0.000000e+00> : vector<8xf32>
    %16 = vector.multi_reduction <add>, %15, %cst_12 [1] : vector<8x256xf32> to vector<8xf32>
    %17 = vector.shape_cast %16 : vector<8xf32> to vector<8x1xf32>
    %18 = tpu.concatenate %14, %17 in 1 : vector<8x1xf32>, vector<8x1xf32> -> vector<8x2xf32>
    %c0_13 = arith.constant 0 : index
    %c0_14 = arith.constant 0 : index
    %c0_15 = arith.constant 0 : index
    %19 = vector.load %arg5[%c0_13, %c0_14, %c0_15] : memref<1x8x2xf32, #tpu.memory_space<vmem>>, vector<1x8x2xf32>
    %20 = vector.shape_cast %19 : vector<1x8x2xf32> to vector<8x2xf32>
    %21 = vector.shape_cast %18 : vector<8x2xf32> to vector<1x8x2xf32>
    tpu.vector_store %arg5[%c0_13, %c0_14, %c0_15], %21 {strides = array<i32>} : memref<1x8x2xf32, #tpu.memory_space<vmem>>, vector<1x8x2xf32>,
    return
  }
  func.func @transform_0(%arg0: i32) -> (i32, i32, i32) {
    %c0_i32 = arith.constant 0 : i32
    %c0_i32_0 = arith.constant 0 : i32
    %c0_i32_1 = arith.constant 0 : i32
    return %arg0, %c0_i32, %c0_i32_0 : i32, i32, i32
  }
  func.func @transform_1(%arg0: i32) -> (i32, i32, i32) {
    %c0_i32 = arith.constant 0 : i32
    %c0_i32_0 = arith.constant 0 : i32
    %c0_i32_1 = arith.constant 0 : i32
    %c0_i32_2 = arith.constant 0 : i32
    return %c0_i32, %c0_i32_0, %c0_i32_1 : i32, i32, i32
  }
  func.func @transform_2(%arg0: i32) -> (i32, i32) {
    %c0_i32 = arith.constant 0 : i32
    %c0_i32_0 = arith.constant 0 : i32
    %c0_i32_1 = arith.constant 0 : i32
    return %c0_i32, %c0_i32_0 : i32, i32
  }
  func.func @transform_3(%arg0: i32) -> (i32, i32, i32) {
    %c0_i32 = arith.constant 0 : i32
    %c0_i32_0 = arith.constant 0 : i32
    %c0_i32_1 = arith.constant 0 : i32
    return %arg0, %c0_i32, %c0_i32_0 : i32, i32, i32
  }
  func.func @transform_4(%arg0: i32) -> (i32, i32, i32) {
    %c0_i32 = arith.constant 0 : i32
    %c0_i32_0 = arith.constant 0 : i32
    %c0_i32_1 = arith.constant 0 : i32
    return %arg0, %c0_i32, %c0_i32_0 : i32, i32, i32
  }
}

module attributes {stable_mosaic.version = 11 : i64} {
  func.func @_affine_relu_kernel(%arg0: i32, %arg1: memref<1x8x256xf32, #tpu.memory_space<vmem>>, %arg2: memref<8x1xf32, #tpu.memory_space<vmem>>, %arg3: memref<8x1xf32, #tpu.memory_space<vmem>>, %arg4: memref<1x8x256xbf16, #tpu.memory_space<vmem>>) attributes {dimension_semantics = [#tpu.dimension_semantics<parallel>], iteration_bounds = array<i64: 2>, scalar_prefetch = 0 : i64, scratch_operands = 0 : i64, tpu.core_type = #tpu.core_type<tc>, window_params = [{transform_indices = @transform_0, window_bounds = array<i64: 1, 8, 256>}, {pipeline_mode = #tpu.pipeline_mode<synchronous>, transform_indices = @transform_1, window_bounds = array<i64: 8, 1>}, {pipeline_mode = #tpu.pipeline_mode<synchronous>, transform_indices = @transform_2, window_bounds = array<i64: 8, 1>}, {transform_indices = @transform_3, window_bounds = array<i64: 1, 8, 256>}]} {
    %c0 = arith.constant 0 : index
    %c0_0 = arith.constant 0 : index
    %c0_1 = arith.constant 0 : index
    %0 = vector.load %arg1[%c0, %c0_0, %c0_1] : memref<1x8x256xf32, #tpu.memory_space<vmem>>, vector<1x8x256xf32>
    %1 = vector.shape_cast %0 : vector<1x8x256xf32> to vector<8x256xf32>
    %c0_2 = arith.constant 0 : index
    %c0_3 = arith.constant 0 : index
    %2 = vector.load %arg2[%c0_2, %c0_3] : memref<8x1xf32, #tpu.memory_space<vmem>>, vector<8x1xf32>
    %3 = vector.broadcast %2 : vector<8x1xf32> to vector<8x256xf32>
    %4 = arith.mulf %1, %3 : vector<8x256xf32>
    %c0_4 = arith.constant 0 : index
    %c0_5 = arith.constant 0 : index
    %5 = vector.load %arg3[%c0_4, %c0_5] : memref<8x1xf32, #tpu.memory_space<vmem>>, vector<8x1xf32>
    %6 = vector.broadcast %5 : vector<8x1xf32> to vector<8x256xf32>
    %7 = arith.addf %4, %6 : vector<8x256xf32>
    %cst = arith.constant 0.000000e+00 : f32
    %8 = vector.broadcast %cst : f32 to vector<8x256xf32>
    %9 = arith.maximumf %7, %8 : vector<8x256xf32>
    %10 = arith.truncf %9 : vector<8x256xf32> to vector<8x256xbf16>
    %c0_6 = arith.constant 0 : index
    %c0_7 = arith.constant 0 : index
    %c0_8 = arith.constant 0 : index
    %11 = vector.load %arg4[%c0_6, %c0_7, %c0_8] : memref<1x8x256xbf16, #tpu.memory_space<vmem>>, vector<1x8x256xbf16>
    %12 = vector.shape_cast %11 : vector<1x8x256xbf16> to vector<8x256xbf16>
    %13 = vector.shape_cast %10 : vector<8x256xbf16> to vector<1x8x256xbf16>
    tpu.vector_store %arg4[%c0_6, %c0_7, %c0_8], %13 {strides = array<i32>} : memref<1x8x256xbf16, #tpu.memory_space<vmem>>, vector<1x8x256xbf16>,
    return
  }
  func.func @transform_0(%arg0: i32) -> (i32, i32, i32) {
    %c0_i32 = arith.constant 0 : i32
    %c0_i32_0 = arith.constant 0 : i32
    %c0_i32_1 = arith.constant 0 : i32
    return %arg0, %c0_i32, %c0_i32_0 : i32, i32, i32
  }
  func.func @transform_1(%arg0: i32) -> (i32, i32) {
    %c0_i32 = arith.constant 0 : i32
    %c0_i32_0 = arith.constant 0 : i32
    %c0_i32_1 = arith.constant 0 : i32
    return %c0_i32, %c0_i32_0 : i32, i32
  }
  func.func @transform_2(%arg0: i32) -> (i32, i32) {
    %c0_i32 = arith.constant 0 : i32
    %c0_i32_0 = arith.constant 0 : i32
    %c0_i32_1 = arith.constant 0 : i32
    return %c0_i32, %c0_i32_0 : i32, i32
  }
  func.func @transform_3(%arg0: i32) -> (i32, i32, i32) {
    %c0_i32 = arith.constant 0 : i32
    %c0_i32_0 = arith.constant 0 : i32
    %c0_i32_1 = arith.constant 0 : i32
    return %arg0, %c0_i32, %c0_i32_0 : i32, i32, i32
  }
}

module attributes {stable_mosaic.version = 11 : i64} {
  func.func @_conv_taps_kernel(%arg0: i32, %arg1: memref<1x16x307xbf16, #tpu.memory_space<vmem>>, %arg2: memref<4x32x16xbf16, #tpu.memory_space<vmem>>, %arg3: memref<1x289xf32, #tpu.memory_space<vmem>>, %arg4: memref<1x32x289xf32, #tpu.memory_space<vmem>>, %arg5: memref<1x32x2xf32, #tpu.memory_space<vmem>>) attributes {dimension_semantics = [#tpu.dimension_semantics<parallel>], iteration_bounds = array<i64: 2>, scalar_prefetch = 0 : i64, scratch_operands = 0 : i64, tpu.core_type = #tpu.core_type<tc>, window_params = [{transform_indices = @transform_0, window_bounds = array<i64: 1, 16, 307>}, {pipeline_mode = #tpu.pipeline_mode<synchronous>, transform_indices = @transform_1, window_bounds = array<i64: 4, 32, 16>}, {pipeline_mode = #tpu.pipeline_mode<synchronous>, transform_indices = @transform_2, window_bounds = array<i64: 1, 289>}, {transform_indices = @transform_3, window_bounds = array<i64: 1, 32, 289>}, {transform_indices = @transform_4, window_bounds = array<i64: 1, 32, 2>}]} {
    %cst = arith.constant 0.000000e+00 : f32
    %0 = vector.broadcast %cst : f32 to vector<32x289xf32>
    %c0 = arith.constant 0 : index
    %c0_0 = arith.constant 0 : index
    %c0_1 = arith.constant 0 : index
    %1 = vector.load %arg1[%c0, %c0_0, %c0_1] : memref<1x16x307xbf16, #tpu.memory_space<vmem>>, vector<1x16x289xbf16>
    %2 = vector.shape_cast %1 : vector<1x16x289xbf16> to vector<16x289xbf16>
    %c0_2 = arith.constant 0 : index
    %c0_3 = arith.constant 0 : index
    %c0_4 = arith.constant 0 : index
    %3 = vector.load %arg2[%c0_2, %c0_3, %c0_4] : memref<4x32x16xbf16, #tpu.memory_space<vmem>>, vector<1x32x16xbf16>
    %4 = vector.shape_cast %3 : vector<1x32x16xbf16> to vector<32x16xbf16>
    %cst_5 = arith.constant dense<0.000000e+00> : vector<32x289xf32>
    %5 = tpu.matmul %4, %2, %cst_5 {dimension_numbers = #tpu.dot_dimension_numbers<[1], [0], [0], [1], [0, 0, 1, 1], [], []>} : vector<32x16xbf16>, vector<16x289xbf16>, vector<32x289xf32> -> vector<32x289xf32>
    %6 = arith.addf %0, %5 : vector<32x289xf32>
    %c0_6 = arith.constant 0 : index
    %c0_7 = arith.constant 0 : index
    %c1 = arith.constant 1 : index
    %7 = vector.load %arg1[%c0_6, %c0_7, %c1] : memref<1x16x307xbf16, #tpu.memory_space<vmem>>, vector<1x16x289xbf16>
    %8 = vector.shape_cast %7 : vector<1x16x289xbf16> to vector<16x289xbf16>
    %c1_8 = arith.constant 1 : index
    %c0_9 = arith.constant 0 : index
    %c0_10 = arith.constant 0 : index
    %9 = vector.load %arg2[%c1_8, %c0_9, %c0_10] : memref<4x32x16xbf16, #tpu.memory_space<vmem>>, vector<1x32x16xbf16>
    %10 = vector.shape_cast %9 : vector<1x32x16xbf16> to vector<32x16xbf16>
    %cst_11 = arith.constant dense<0.000000e+00> : vector<32x289xf32>
    %11 = tpu.matmul %10, %8, %cst_11 {dimension_numbers = #tpu.dot_dimension_numbers<[1], [0], [0], [1], [0, 0, 1, 1], [], []>} : vector<32x16xbf16>, vector<16x289xbf16>, vector<32x289xf32> -> vector<32x289xf32>
    %12 = arith.addf %6, %11 : vector<32x289xf32>
    %c0_12 = arith.constant 0 : index
    %c0_13 = arith.constant 0 : index
    %c17 = arith.constant 17 : index
    %13 = vector.load %arg1[%c0_12, %c0_13, %c17] : memref<1x16x307xbf16, #tpu.memory_space<vmem>>, vector<1x16x289xbf16>
    %14 = vector.shape_cast %13 : vector<1x16x289xbf16> to vector<16x289xbf16>
    %c2 = arith.constant 2 : index
    %c0_14 = arith.constant 0 : index
    %c0_15 = arith.constant 0 : index
    %15 = vector.load %arg2[%c2, %c0_14, %c0_15] : memref<4x32x16xbf16, #tpu.memory_space<vmem>>, vector<1x32x16xbf16>
    %16 = vector.shape_cast %15 : vector<1x32x16xbf16> to vector<32x16xbf16>
    %cst_16 = arith.constant dense<0.000000e+00> : vector<32x289xf32>
    %17 = tpu.matmul %16, %14, %cst_16 {dimension_numbers = #tpu.dot_dimension_numbers<[1], [0], [0], [1], [0, 0, 1, 1], [], []>} : vector<32x16xbf16>, vector<16x289xbf16>, vector<32x289xf32> -> vector<32x289xf32>
    %18 = arith.addf %12, %17 : vector<32x289xf32>
    %c0_17 = arith.constant 0 : index
    %c0_18 = arith.constant 0 : index
    %c18 = arith.constant 18 : index
    %19 = vector.load %arg1[%c0_17, %c0_18, %c18] : memref<1x16x307xbf16, #tpu.memory_space<vmem>>, vector<1x16x289xbf16>
    %20 = vector.shape_cast %19 : vector<1x16x289xbf16> to vector<16x289xbf16>
    %c3 = arith.constant 3 : index
    %c0_19 = arith.constant 0 : index
    %c0_20 = arith.constant 0 : index
    %21 = vector.load %arg2[%c3, %c0_19, %c0_20] : memref<4x32x16xbf16, #tpu.memory_space<vmem>>, vector<1x32x16xbf16>
    %22 = vector.shape_cast %21 : vector<1x32x16xbf16> to vector<32x16xbf16>
    %cst_21 = arith.constant dense<0.000000e+00> : vector<32x289xf32>
    %23 = tpu.matmul %22, %20, %cst_21 {dimension_numbers = #tpu.dot_dimension_numbers<[1], [0], [0], [1], [0, 0, 1, 1], [], []>} : vector<32x16xbf16>, vector<16x289xbf16>, vector<32x289xf32> -> vector<32x289xf32>
    %24 = arith.addf %18, %23 : vector<32x289xf32>
    %c0_22 = arith.constant 0 : index
    %c0_23 = arith.constant 0 : index
    %c0_24 = arith.constant 0 : index
    %25 = vector.load %arg4[%c0_22, %c0_23, %c0_24] : memref<1x32x289xf32, #tpu.memory_space<vmem>>, vector<1x32x289xf32>
    %26 = vector.shape_cast %25 : vector<1x32x289xf32> to vector<32x289xf32>
    %27 = vector.shape_cast %24 : vector<32x289xf32> to vector<1x32x289xf32>
    tpu.vector_store %arg4[%c0_22, %c0_23, %c0_24], %27 {strides = array<i32>} : memref<1x32x289xf32, #tpu.memory_space<vmem>>, vector<1x32x289xf32>,
    %c0_25 = arith.constant 0 : index
    %c0_26 = arith.constant 0 : index
    %28 = vector.load %arg3[%c0_25, %c0_26] : memref<1x289xf32, #tpu.memory_space<vmem>>, vector<1x289xf32>
    %29 = vector.broadcast %28 : vector<1x289xf32> to vector<32x289xf32>
    %30 = arith.mulf %24, %29 : vector<32x289xf32>
    %cst_27 = arith.constant dense<0.000000e+00> : vector<32xf32>
    %31 = vector.multi_reduction <add>, %30, %cst_27 [1] : vector<32x289xf32> to vector<32xf32>
    %32 = vector.shape_cast %31 : vector<32xf32> to vector<32x1xf32>
    %33 = arith.mulf %30, %24 : vector<32x289xf32>
    %cst_28 = arith.constant dense<0.000000e+00> : vector<32xf32>
    %34 = vector.multi_reduction <add>, %33, %cst_28 [1] : vector<32x289xf32> to vector<32xf32>
    %35 = vector.shape_cast %34 : vector<32xf32> to vector<32x1xf32>
    %36 = tpu.concatenate %32, %35 in 1 : vector<32x1xf32>, vector<32x1xf32> -> vector<32x2xf32>
    %c0_29 = arith.constant 0 : index
    %c0_30 = arith.constant 0 : index
    %c0_31 = arith.constant 0 : index
    %37 = vector.load %arg5[%c0_29, %c0_30, %c0_31] : memref<1x32x2xf32, #tpu.memory_space<vmem>>, vector<1x32x2xf32>
    %38 = vector.shape_cast %37 : vector<1x32x2xf32> to vector<32x2xf32>
    %39 = vector.shape_cast %36 : vector<32x2xf32> to vector<1x32x2xf32>
    tpu.vector_store %arg5[%c0_29, %c0_30, %c0_31], %39 {strides = array<i32>} : memref<1x32x2xf32, #tpu.memory_space<vmem>>, vector<1x32x2xf32>,
    return
  }
  func.func @transform_0(%arg0: i32) -> (i32, i32, i32) {
    %c0_i32 = arith.constant 0 : i32
    %c0_i32_0 = arith.constant 0 : i32
    %c0_i32_1 = arith.constant 0 : i32
    return %arg0, %c0_i32, %c0_i32_0 : i32, i32, i32
  }
  func.func @transform_1(%arg0: i32) -> (i32, i32, i32) {
    %c0_i32 = arith.constant 0 : i32
    %c0_i32_0 = arith.constant 0 : i32
    %c0_i32_1 = arith.constant 0 : i32
    %c0_i32_2 = arith.constant 0 : i32
    return %c0_i32, %c0_i32_0, %c0_i32_1 : i32, i32, i32
  }
  func.func @transform_2(%arg0: i32) -> (i32, i32) {
    %c0_i32 = arith.constant 0 : i32
    %c0_i32_0 = arith.constant 0 : i32
    %c0_i32_1 = arith.constant 0 : i32
    return %c0_i32, %c0_i32_0 : i32, i32
  }
  func.func @transform_3(%arg0: i32) -> (i32, i32, i32) {
    %c0_i32 = arith.constant 0 : i32
    %c0_i32_0 = arith.constant 0 : i32
    %c0_i32_1 = arith.constant 0 : i32
    return %arg0, %c0_i32, %c0_i32_0 : i32, i32, i32
  }
  func.func @transform_4(%arg0: i32) -> (i32, i32, i32) {
    %c0_i32 = arith.constant 0 : i32
    %c0_i32_0 = arith.constant 0 : i32
    %c0_i32_1 = arith.constant 0 : i32
    return %arg0, %c0_i32, %c0_i32_0 : i32, i32, i32
  }
}

module attributes {stable_mosaic.version = 11 : i64} {
  func.func @_affine_relu_kernel(%arg0: i32, %arg1: memref<1x32x289xf32, #tpu.memory_space<vmem>>, %arg2: memref<32x1xf32, #tpu.memory_space<vmem>>, %arg3: memref<32x1xf32, #tpu.memory_space<vmem>>, %arg4: memref<1x32x289xbf16, #tpu.memory_space<vmem>>) attributes {dimension_semantics = [#tpu.dimension_semantics<parallel>], iteration_bounds = array<i64: 2>, scalar_prefetch = 0 : i64, scratch_operands = 0 : i64, tpu.core_type = #tpu.core_type<tc>, window_params = [{transform_indices = @transform_0, window_bounds = array<i64: 1, 32, 289>}, {pipeline_mode = #tpu.pipeline_mode<synchronous>, transform_indices = @transform_1, window_bounds = array<i64: 32, 1>}, {pipeline_mode = #tpu.pipeline_mode<synchronous>, transform_indices = @transform_2, window_bounds = array<i64: 32, 1>}, {transform_indices = @transform_3, window_bounds = array<i64: 1, 32, 289>}]} {
    %c0 = arith.constant 0 : index
    %c0_0 = arith.constant 0 : index
    %c0_1 = arith.constant 0 : index
    %0 = vector.load %arg1[%c0, %c0_0, %c0_1] : memref<1x32x289xf32, #tpu.memory_space<vmem>>, vector<1x32x289xf32>
    %1 = vector.shape_cast %0 : vector<1x32x289xf32> to vector<32x289xf32>
    %c0_2 = arith.constant 0 : index
    %c0_3 = arith.constant 0 : index
    %2 = vector.load %arg2[%c0_2, %c0_3] : memref<32x1xf32, #tpu.memory_space<vmem>>, vector<32x1xf32>
    %3 = vector.broadcast %2 : vector<32x1xf32> to vector<32x289xf32>
    %4 = arith.mulf %1, %3 : vector<32x289xf32>
    %c0_4 = arith.constant 0 : index
    %c0_5 = arith.constant 0 : index
    %5 = vector.load %arg3[%c0_4, %c0_5] : memref<32x1xf32, #tpu.memory_space<vmem>>, vector<32x1xf32>
    %6 = vector.broadcast %5 : vector<32x1xf32> to vector<32x289xf32>
    %7 = arith.addf %4, %6 : vector<32x289xf32>
    %cst = arith.constant 0.000000e+00 : f32
    %8 = vector.broadcast %cst : f32 to vector<32x289xf32>
    %9 = arith.maximumf %7, %8 : vector<32x289xf32>
    %10 = arith.truncf %9 : vector<32x289xf32> to vector<32x289xbf16>
    %c0_6 = arith.constant 0 : index
    %c0_7 = arith.constant 0 : index
    %c0_8 = arith.constant 0 : index
    %11 = vector.load %arg4[%c0_6, %c0_7, %c0_8] : memref<1x32x289xbf16, #tpu.memory_space<vmem>>, vector<1x32x289xbf16>
    %12 = vector.shape_cast %11 : vector<1x32x289xbf16> to vector<32x289xbf16>
    %13 = vector.shape_cast %10 : vector<32x289xbf16> to vector<1x32x289xbf16>
    tpu.vector_store %arg4[%c0_6, %c0_7, %c0_8], %13 {strides = array<i32>} : memref<1x32x289xbf16, #tpu.memory_space<vmem>>, vector<1x32x289xbf16>,
    return
  }
  func.func @transform_0(%arg0: i32) -> (i32, i32, i32) {
    %c0_i32 = arith.constant 0 : i32
    %c0_i32_0 = arith.constant 0 : i32
    %c0_i32_1 = arith.constant 0 : i32
    return %arg0, %c0_i32, %c0_i32_0 : i32, i32, i32
  }
  func.func @transform_1(%arg0: i32) -> (i32, i32) {
    %c0_i32 = arith.constant 0 : i32
    %c0_i32_0 = arith.constant 0 : i32
    %c0_i32_1 = arith.constant 0 : i32
    return %c0_i32, %c0_i32_0 : i32, i32
  }
  func.func @transform_2(%arg0: i32) -> (i32, i32) {
    %c0_i32 = arith.constant 0 : i32
    %c0_i32_0 = arith.constant 0 : i32
    %c0_i32_1 = arith.constant 0 : i32
    return %c0_i32, %c0_i32_0 : i32, i32
  }
  func.func @transform_3(%arg0: i32) -> (i32, i32, i32) {
    %c0_i32 = arith.constant 0 : i32
    %c0_i32_0 = arith.constant 0 : i32
    %c0_i32_1 = arith.constant 0 : i32
    return %arg0, %c0_i32, %c0_i32_0 : i32, i32, i32
  }
}

module attributes {stable_mosaic.version = 11 : i64} {
  func.func @_conv_taps_kernel(%arg0: i32, %arg1: memref<1x8x1024xbf16, #tpu.memory_space<vmem>>, %arg2: memref<1x8x8xbf16, #tpu.memory_space<vmem>>, %arg3: memref<1x1024xf32, #tpu.memory_space<vmem>>, %arg4: memref<1x8x1024xf32, #tpu.memory_space<vmem>>, %arg5: memref<1x8x2xf32, #tpu.memory_space<vmem>>) attributes {dimension_semantics = [#tpu.dimension_semantics<parallel>], iteration_bounds = array<i64: 2>, scalar_prefetch = 0 : i64, scratch_operands = 0 : i64, tpu.core_type = #tpu.core_type<tc>, window_params = [{transform_indices = @transform_0, window_bounds = array<i64: 1, 8, 1024>}, {pipeline_mode = #tpu.pipeline_mode<synchronous>, transform_indices = @transform_1, window_bounds = array<i64: 1, 8, 8>}, {pipeline_mode = #tpu.pipeline_mode<synchronous>, transform_indices = @transform_2, window_bounds = array<i64: 1, 1024>}, {transform_indices = @transform_3, window_bounds = array<i64: 1, 8, 1024>}, {transform_indices = @transform_4, window_bounds = array<i64: 1, 8, 2>}]} {
    %cst = arith.constant 0.000000e+00 : f32
    %0 = vector.broadcast %cst : f32 to vector<8x1024xf32>
    %c0 = arith.constant 0 : index
    %c0_0 = arith.constant 0 : index
    %c0_1 = arith.constant 0 : index
    %1 = vector.load %arg1[%c0, %c0_0, %c0_1] : memref<1x8x1024xbf16, #tpu.memory_space<vmem>>, vector<1x8x1024xbf16>
    %2 = vector.shape_cast %1 : vector<1x8x1024xbf16> to vector<8x1024xbf16>
    %c0_2 = arith.constant 0 : index
    %c0_3 = arith.constant 0 : index
    %c0_4 = arith.constant 0 : index
    %3 = vector.load %arg2[%c0_2, %c0_3, %c0_4] : memref<1x8x8xbf16, #tpu.memory_space<vmem>>, vector<1x8x8xbf16>
    %4 = vector.shape_cast %3 : vector<1x8x8xbf16> to vector<8x8xbf16>
    %cst_5 = arith.constant dense<0.000000e+00> : vector<8x1024xf32>
    %5 = tpu.matmul %4, %2, %cst_5 {dimension_numbers = #tpu.dot_dimension_numbers<[1], [0], [0], [1], [0, 0, 1, 1], [], []>} : vector<8x8xbf16>, vector<8x1024xbf16>, vector<8x1024xf32> -> vector<8x1024xf32>
    %6 = arith.addf %0, %5 : vector<8x1024xf32>
    %c0_6 = arith.constant 0 : index
    %c0_7 = arith.constant 0 : index
    %c0_8 = arith.constant 0 : index
    %7 = vector.load %arg4[%c0_6, %c0_7, %c0_8] : memref<1x8x1024xf32, #tpu.memory_space<vmem>>, vector<1x8x1024xf32>
    %8 = vector.shape_cast %7 : vector<1x8x1024xf32> to vector<8x1024xf32>
    %9 = vector.shape_cast %6 : vector<8x1024xf32> to vector<1x8x1024xf32>
    tpu.vector_store %arg4[%c0_6, %c0_7, %c0_8], %9 {strides = array<i32>} : memref<1x8x1024xf32, #tpu.memory_space<vmem>>, vector<1x8x1024xf32>,
    %c0_9 = arith.constant 0 : index
    %c0_10 = arith.constant 0 : index
    %10 = vector.load %arg3[%c0_9, %c0_10] : memref<1x1024xf32, #tpu.memory_space<vmem>>, vector<1x1024xf32>
    %11 = vector.broadcast %10 : vector<1x1024xf32> to vector<8x1024xf32>
    %12 = arith.mulf %6, %11 : vector<8x1024xf32>
    %cst_11 = arith.constant dense<0.000000e+00> : vector<8xf32>
    %13 = vector.multi_reduction <add>, %12, %cst_11 [1] : vector<8x1024xf32> to vector<8xf32>
    %14 = vector.shape_cast %13 : vector<8xf32> to vector<8x1xf32>
    %15 = arith.mulf %12, %6 : vector<8x1024xf32>
    %cst_12 = arith.constant dense<0.000000e+00> : vector<8xf32>
    %16 = vector.multi_reduction <add>, %15, %cst_12 [1] : vector<8x1024xf32> to vector<8xf32>
    %17 = vector.shape_cast %16 : vector<8xf32> to vector<8x1xf32>
    %18 = tpu.concatenate %14, %17 in 1 : vector<8x1xf32>, vector<8x1xf32> -> vector<8x2xf32>
    %c0_13 = arith.constant 0 : index
    %c0_14 = arith.constant 0 : index
    %c0_15 = arith.constant 0 : index
    %19 = vector.load %arg5[%c0_13, %c0_14, %c0_15] : memref<1x8x2xf32, #tpu.memory_space<vmem>>, vector<1x8x2xf32>
    %20 = vector.shape_cast %19 : vector<1x8x2xf32> to vector<8x2xf32>
    %21 = vector.shape_cast %18 : vector<8x2xf32> to vector<1x8x2xf32>
    tpu.vector_store %arg5[%c0_13, %c0_14, %c0_15], %21 {strides = array<i32>} : memref<1x8x2xf32, #tpu.memory_space<vmem>>, vector<1x8x2xf32>,
    return
  }
  func.func @transform_0(%arg0: i32) -> (i32, i32, i32) {
    %c0_i32 = arith.constant 0 : i32
    %c0_i32_0 = arith.constant 0 : i32
    %c0_i32_1 = arith.constant 0 : i32
    return %arg0, %c0_i32, %c0_i32_0 : i32, i32, i32
  }
  func.func @transform_1(%arg0: i32) -> (i32, i32, i32) {
    %c0_i32 = arith.constant 0 : i32
    %c0_i32_0 = arith.constant 0 : i32
    %c0_i32_1 = arith.constant 0 : i32
    %c0_i32_2 = arith.constant 0 : i32
    return %c0_i32, %c0_i32_0, %c0_i32_1 : i32, i32, i32
  }
  func.func @transform_2(%arg0: i32) -> (i32, i32) {
    %c0_i32 = arith.constant 0 : i32
    %c0_i32_0 = arith.constant 0 : i32
    %c0_i32_1 = arith.constant 0 : i32
    return %c0_i32, %c0_i32_0 : i32, i32
  }
  func.func @transform_3(%arg0: i32) -> (i32, i32, i32) {
    %c0_i32 = arith.constant 0 : i32
    %c0_i32_0 = arith.constant 0 : i32
    %c0_i32_1 = arith.constant 0 : i32
    return %arg0, %c0_i32, %c0_i32_0 : i32, i32, i32
  }
  func.func @transform_4(%arg0: i32) -> (i32, i32, i32) {
    %c0_i32 = arith.constant 0 : i32
    %c0_i32_0 = arith.constant 0 : i32
    %c0_i32_1 = arith.constant 0 : i32
    return %arg0, %c0_i32, %c0_i32_0 : i32, i32, i32
  }
}

module attributes {stable_mosaic.version = 11 : i64} {
  func.func @_affine_relu_kernel(%arg0: i32, %arg1: memref<1x8x1024xf32, #tpu.memory_space<vmem>>, %arg2: memref<8x1xf32, #tpu.memory_space<vmem>>, %arg3: memref<8x1xf32, #tpu.memory_space<vmem>>, %arg4: memref<1x8x1024xbf16, #tpu.memory_space<vmem>>) attributes {dimension_semantics = [#tpu.dimension_semantics<parallel>], iteration_bounds = array<i64: 2>, scalar_prefetch = 0 : i64, scratch_operands = 0 : i64, tpu.core_type = #tpu.core_type<tc>, window_params = [{transform_indices = @transform_0, window_bounds = array<i64: 1, 8, 1024>}, {pipeline_mode = #tpu.pipeline_mode<synchronous>, transform_indices = @transform_1, window_bounds = array<i64: 8, 1>}, {pipeline_mode = #tpu.pipeline_mode<synchronous>, transform_indices = @transform_2, window_bounds = array<i64: 8, 1>}, {transform_indices = @transform_3, window_bounds = array<i64: 1, 8, 1024>}]} {
    %c0 = arith.constant 0 : index
    %c0_0 = arith.constant 0 : index
    %c0_1 = arith.constant 0 : index
    %0 = vector.load %arg1[%c0, %c0_0, %c0_1] : memref<1x8x1024xf32, #tpu.memory_space<vmem>>, vector<1x8x1024xf32>
    %1 = vector.shape_cast %0 : vector<1x8x1024xf32> to vector<8x1024xf32>
    %c0_2 = arith.constant 0 : index
    %c0_3 = arith.constant 0 : index
    %2 = vector.load %arg2[%c0_2, %c0_3] : memref<8x1xf32, #tpu.memory_space<vmem>>, vector<8x1xf32>
    %3 = vector.broadcast %2 : vector<8x1xf32> to vector<8x1024xf32>
    %4 = arith.mulf %1, %3 : vector<8x1024xf32>
    %c0_4 = arith.constant 0 : index
    %c0_5 = arith.constant 0 : index
    %5 = vector.load %arg3[%c0_4, %c0_5] : memref<8x1xf32, #tpu.memory_space<vmem>>, vector<8x1xf32>
    %6 = vector.broadcast %5 : vector<8x1xf32> to vector<8x1024xf32>
    %7 = arith.addf %4, %6 : vector<8x1024xf32>
    %cst = arith.constant 0.000000e+00 : f32
    %8 = vector.broadcast %cst : f32 to vector<8x1024xf32>
    %9 = arith.maximumf %7, %8 : vector<8x1024xf32>
    %10 = arith.truncf %9 : vector<8x1024xf32> to vector<8x1024xbf16>
    %c0_6 = arith.constant 0 : index
    %c0_7 = arith.constant 0 : index
    %c0_8 = arith.constant 0 : index
    %11 = vector.load %arg4[%c0_6, %c0_7, %c0_8] : memref<1x8x1024xbf16, #tpu.memory_space<vmem>>, vector<1x8x1024xbf16>
    %12 = vector.shape_cast %11 : vector<1x8x1024xbf16> to vector<8x1024xbf16>
    %13 = vector.shape_cast %10 : vector<8x1024xbf16> to vector<1x8x1024xbf16>
    tpu.vector_store %arg4[%c0_6, %c0_7, %c0_8], %13 {strides = array<i32>} : memref<1x8x1024xbf16, #tpu.memory_space<vmem>>, vector<1x8x1024xbf16>,
    return
  }
  func.func @transform_0(%arg0: i32) -> (i32, i32, i32) {
    %c0_i32 = arith.constant 0 : i32
    %c0_i32_0 = arith.constant 0 : i32
    %c0_i32_1 = arith.constant 0 : i32
    return %arg0, %c0_i32, %c0_i32_0 : i32, i32, i32
  }
  func.func @transform_1(%arg0: i32) -> (i32, i32) {
    %c0_i32 = arith.constant 0 : i32
    %c0_i32_0 = arith.constant 0 : i32
    %c0_i32_1 = arith.constant 0 : i32
    return %c0_i32, %c0_i32_0 : i32, i32
  }
  func.func @transform_2(%arg0: i32) -> (i32, i32) {
    %c0_i32 = arith.constant 0 : i32
    %c0_i32_0 = arith.constant 0 : i32
    %c0_i32_1 = arith.constant 0 : i32
    return %c0_i32, %c0_i32_0 : i32, i32
  }
  func.func @transform_3(%arg0: i32) -> (i32, i32, i32) {
    %c0_i32 = arith.constant 0 : i32
    %c0_i32_0 = arith.constant 0 : i32
    %c0_i32_1 = arith.constant 0 : i32
    return %arg0, %c0_i32, %c0_i32_0 : i32, i32, i32
  }
}

module attributes {stable_mosaic.version = 11 : i64} {
  func.func @_conv_taps_kernel(%arg0: i32, %arg1: memref<1x8x1226xbf16, #tpu.memory_space<vmem>>, %arg2: memref<9x4x8xbf16, #tpu.memory_space<vmem>>, %arg3: memref<1x1156xf32, #tpu.memory_space<vmem>>, %arg4: memref<1x4x1156xf32, #tpu.memory_space<vmem>>, %arg5: memref<1x4x2xf32, #tpu.memory_space<vmem>>) attributes {dimension_semantics = [#tpu.dimension_semantics<parallel>], iteration_bounds = array<i64: 2>, scalar_prefetch = 0 : i64, scratch_operands = 0 : i64, tpu.core_type = #tpu.core_type<tc>, window_params = [{transform_indices = @transform_0, window_bounds = array<i64: 1, 8, 1226>}, {pipeline_mode = #tpu.pipeline_mode<synchronous>, transform_indices = @transform_1, window_bounds = array<i64: 9, 4, 8>}, {pipeline_mode = #tpu.pipeline_mode<synchronous>, transform_indices = @transform_2, window_bounds = array<i64: 1, 1156>}, {transform_indices = @transform_3, window_bounds = array<i64: 1, 4, 1156>}, {transform_indices = @transform_4, window_bounds = array<i64: 1, 4, 2>}]} {
    %cst = arith.constant 0.000000e+00 : f32
    %0 = vector.broadcast %cst : f32 to vector<4x1156xf32>
    %c0 = arith.constant 0 : index
    %c0_0 = arith.constant 0 : index
    %c0_1 = arith.constant 0 : index
    %1 = vector.load %arg1[%c0, %c0_0, %c0_1] : memref<1x8x1226xbf16, #tpu.memory_space<vmem>>, vector<1x8x1156xbf16>
    %2 = vector.shape_cast %1 : vector<1x8x1156xbf16> to vector<8x1156xbf16>
    %c0_2 = arith.constant 0 : index
    %c0_3 = arith.constant 0 : index
    %c0_4 = arith.constant 0 : index
    %3 = vector.load %arg2[%c0_2, %c0_3, %c0_4] : memref<9x4x8xbf16, #tpu.memory_space<vmem>>, vector<1x4x8xbf16>
    %4 = vector.shape_cast %3 : vector<1x4x8xbf16> to vector<4x8xbf16>
    %cst_5 = arith.constant dense<0.000000e+00> : vector<4x1156xf32>
    %5 = tpu.matmul %4, %2, %cst_5 {dimension_numbers = #tpu.dot_dimension_numbers<[1], [0], [0], [1], [0, 0, 1, 1], [], []>} : vector<4x8xbf16>, vector<8x1156xbf16>, vector<4x1156xf32> -> vector<4x1156xf32>
    %6 = arith.addf %0, %5 : vector<4x1156xf32>
    %c0_6 = arith.constant 0 : index
    %c0_7 = arith.constant 0 : index
    %c1 = arith.constant 1 : index
    %7 = vector.load %arg1[%c0_6, %c0_7, %c1] : memref<1x8x1226xbf16, #tpu.memory_space<vmem>>, vector<1x8x1156xbf16>
    %8 = vector.shape_cast %7 : vector<1x8x1156xbf16> to vector<8x1156xbf16>
    %c1_8 = arith.constant 1 : index
    %c0_9 = arith.constant 0 : index
    %c0_10 = arith.constant 0 : index
    %9 = vector.load %arg2[%c1_8, %c0_9, %c0_10] : memref<9x4x8xbf16, #tpu.memory_space<vmem>>, vector<1x4x8xbf16>
    %10 = vector.shape_cast %9 : vector<1x4x8xbf16> to vector<4x8xbf16>
    %cst_11 = arith.constant dense<0.000000e+00> : vector<4x1156xf32>
    %11 = tpu.matmul %10, %8, %cst_11 {dimension_numbers = #tpu.dot_dimension_numbers<[1], [0], [0], [1], [0, 0, 1, 1], [], []>} : vector<4x8xbf16>, vector<8x1156xbf16>, vector<4x1156xf32> -> vector<4x1156xf32>
    %12 = arith.addf %6, %11 : vector<4x1156xf32>
    %c0_12 = arith.constant 0 : index
    %c0_13 = arith.constant 0 : index
    %c2 = arith.constant 2 : index
    %13 = vector.load %arg1[%c0_12, %c0_13, %c2] : memref<1x8x1226xbf16, #tpu.memory_space<vmem>>, vector<1x8x1156xbf16>
    %14 = vector.shape_cast %13 : vector<1x8x1156xbf16> to vector<8x1156xbf16>
    %c2_14 = arith.constant 2 : index
    %c0_15 = arith.constant 0 : index
    %c0_16 = arith.constant 0 : index
    %15 = vector.load %arg2[%c2_14, %c0_15, %c0_16] : memref<9x4x8xbf16, #tpu.memory_space<vmem>>, vector<1x4x8xbf16>
    %16 = vector.shape_cast %15 : vector<1x4x8xbf16> to vector<4x8xbf16>
    %cst_17 = arith.constant dense<0.000000e+00> : vector<4x1156xf32>
    %17 = tpu.matmul %16, %14, %cst_17 {dimension_numbers = #tpu.dot_dimension_numbers<[1], [0], [0], [1], [0, 0, 1, 1], [], []>} : vector<4x8xbf16>, vector<8x1156xbf16>, vector<4x1156xf32> -> vector<4x1156xf32>
    %18 = arith.addf %12, %17 : vector<4x1156xf32>
    %c0_18 = arith.constant 0 : index
    %c0_19 = arith.constant 0 : index
    %c34 = arith.constant 34 : index
    %19 = vector.load %arg1[%c0_18, %c0_19, %c34] : memref<1x8x1226xbf16, #tpu.memory_space<vmem>>, vector<1x8x1156xbf16>
    %20 = vector.shape_cast %19 : vector<1x8x1156xbf16> to vector<8x1156xbf16>
    %c3 = arith.constant 3 : index
    %c0_20 = arith.constant 0 : index
    %c0_21 = arith.constant 0 : index
    %21 = vector.load %arg2[%c3, %c0_20, %c0_21] : memref<9x4x8xbf16, #tpu.memory_space<vmem>>, vector<1x4x8xbf16>
    %22 = vector.shape_cast %21 : vector<1x4x8xbf16> to vector<4x8xbf16>
    %cst_22 = arith.constant dense<0.000000e+00> : vector<4x1156xf32>
    %23 = tpu.matmul %22, %20, %cst_22 {dimension_numbers = #tpu.dot_dimension_numbers<[1], [0], [0], [1], [0, 0, 1, 1], [], []>} : vector<4x8xbf16>, vector<8x1156xbf16>, vector<4x1156xf32> -> vector<4x1156xf32>
    %24 = arith.addf %18, %23 : vector<4x1156xf32>
    %c0_23 = arith.constant 0 : index
    %c0_24 = arith.constant 0 : index
    %c35 = arith.constant 35 : index
    %25 = vector.load %arg1[%c0_23, %c0_24, %c35] : memref<1x8x1226xbf16, #tpu.memory_space<vmem>>, vector<1x8x1156xbf16>
    %26 = vector.shape_cast %25 : vector<1x8x1156xbf16> to vector<8x1156xbf16>
    %c4 = arith.constant 4 : index
    %c0_25 = arith.constant 0 : index
    %c0_26 = arith.constant 0 : index
    %27 = vector.load %arg2[%c4, %c0_25, %c0_26] : memref<9x4x8xbf16, #tpu.memory_space<vmem>>, vector<1x4x8xbf16>
    %28 = vector.shape_cast %27 : vector<1x4x8xbf16> to vector<4x8xbf16>
    %cst_27 = arith.constant dense<0.000000e+00> : vector<4x1156xf32>
    %29 = tpu.matmul %28, %26, %cst_27 {dimension_numbers = #tpu.dot_dimension_numbers<[1], [0], [0], [1], [0, 0, 1, 1], [], []>} : vector<4x8xbf16>, vector<8x1156xbf16>, vector<4x1156xf32> -> vector<4x1156xf32>
    %30 = arith.addf %24, %29 : vector<4x1156xf32>
    %c0_28 = arith.constant 0 : index
    %c0_29 = arith.constant 0 : index
    %c36 = arith.constant 36 : index
    %31 = vector.load %arg1[%c0_28, %c0_29, %c36] : memref<1x8x1226xbf16, #tpu.memory_space<vmem>>, vector<1x8x1156xbf16>
    %32 = vector.shape_cast %31 : vector<1x8x1156xbf16> to vector<8x1156xbf16>
    %c5 = arith.constant 5 : index
    %c0_30 = arith.constant 0 : index
    %c0_31 = arith.constant 0 : index
    %33 = vector.load %arg2[%c5, %c0_30, %c0_31] : memref<9x4x8xbf16, #tpu.memory_space<vmem>>, vector<1x4x8xbf16>
    %34 = vector.shape_cast %33 : vector<1x4x8xbf16> to vector<4x8xbf16>
    %cst_32 = arith.constant dense<0.000000e+00> : vector<4x1156xf32>
    %35 = tpu.matmul %34, %32, %cst_32 {dimension_numbers = #tpu.dot_dimension_numbers<[1], [0], [0], [1], [0, 0, 1, 1], [], []>} : vector<4x8xbf16>, vector<8x1156xbf16>, vector<4x1156xf32> -> vector<4x1156xf32>
    %36 = arith.addf %30, %35 : vector<4x1156xf32>
    %c0_33 = arith.constant 0 : index
    %c0_34 = arith.constant 0 : index
    %c68 = arith.constant 68 : index
    %37 = vector.load %arg1[%c0_33, %c0_34, %c68] : memref<1x8x1226xbf16, #tpu.memory_space<vmem>>, vector<1x8x1156xbf16>
    %38 = vector.shape_cast %37 : vector<1x8x1156xbf16> to vector<8x1156xbf16>
    %c6 = arith.constant 6 : index
    %c0_35 = arith.constant 0 : index
    %c0_36 = arith.constant 0 : index
    %39 = vector.load %arg2[%c6, %c0_35, %c0_36] : memref<9x4x8xbf16, #tpu.memory_space<vmem>>, vector<1x4x8xbf16>
    %40 = vector.shape_cast %39 : vector<1x4x8xbf16> to vector<4x8xbf16>
    %cst_37 = arith.constant dense<0.000000e+00> : vector<4x1156xf32>
    %41 = tpu.matmul %40, %38, %cst_37 {dimension_numbers = #tpu.dot_dimension_numbers<[1], [0], [0], [1], [0, 0, 1, 1], [], []>} : vector<4x8xbf16>, vector<8x1156xbf16>, vector<4x1156xf32> -> vector<4x1156xf32>
    %42 = arith.addf %36, %41 : vector<4x1156xf32>
    %c0_38 = arith.constant 0 : index
    %c0_39 = arith.constant 0 : index
    %c69 = arith.constant 69 : index
    %43 = vector.load %arg1[%c0_38, %c0_39, %c69] : memref<1x8x1226xbf16, #tpu.memory_space<vmem>>, vector<1x8x1156xbf16>
    %44 = vector.shape_cast %43 : vector<1x8x1156xbf16> to vector<8x1156xbf16>
    %c7 = arith.constant 7 : index
    %c0_40 = arith.constant 0 : index
    %c0_41 = arith.constant 0 : index
    %45 = vector.load %arg2[%c7, %c0_40, %c0_41] : memref<9x4x8xbf16, #tpu.memory_space<vmem>>, vector<1x4x8xbf16>
    %46 = vector.shape_cast %45 : vector<1x4x8xbf16> to vector<4x8xbf16>
    %cst_42 = arith.constant dense<0.000000e+00> : vector<4x1156xf32>
    %47 = tpu.matmul %46, %44, %cst_42 {dimension_numbers = #tpu.dot_dimension_numbers<[1], [0], [0], [1], [0, 0, 1, 1], [], []>} : vector<4x8xbf16>, vector<8x1156xbf16>, vector<4x1156xf32> -> vector<4x1156xf32>
    %48 = arith.addf %42, %47 : vector<4x1156xf32>
    %c0_43 = arith.constant 0 : index
    %c0_44 = arith.constant 0 : index
    %c70 = arith.constant 70 : index
    %49 = vector.load %arg1[%c0_43, %c0_44, %c70] : memref<1x8x1226xbf16, #tpu.memory_space<vmem>>, vector<1x8x1156xbf16>
    %50 = vector.shape_cast %49 : vector<1x8x1156xbf16> to vector<8x1156xbf16>
    %c8 = arith.constant 8 : index
    %c0_45 = arith.constant 0 : index
    %c0_46 = arith.constant 0 : index
    %51 = vector.load %arg2[%c8, %c0_45, %c0_46] : memref<9x4x8xbf16, #tpu.memory_space<vmem>>, vector<1x4x8xbf16>
    %52 = vector.shape_cast %51 : vector<1x4x8xbf16> to vector<4x8xbf16>
    %cst_47 = arith.constant dense<0.000000e+00> : vector<4x1156xf32>
    %53 = tpu.matmul %52, %50, %cst_47 {dimension_numbers = #tpu.dot_dimension_numbers<[1], [0], [0], [1], [0, 0, 1, 1], [], []>} : vector<4x8xbf16>, vector<8x1156xbf16>, vector<4x1156xf32> -> vector<4x1156xf32>
    %54 = arith.addf %48, %53 : vector<4x1156xf32>
    %c0_48 = arith.constant 0 : index
    %c0_49 = arith.constant 0 : index
    %c0_50 = arith.constant 0 : index
    %55 = vector.load %arg4[%c0_48, %c0_49, %c0_50] : memref<1x4x1156xf32, #tpu.memory_space<vmem>>, vector<1x4x1156xf32>
    %56 = vector.shape_cast %55 : vector<1x4x1156xf32> to vector<4x1156xf32>
    %57 = vector.shape_cast %54 : vector<4x1156xf32> to vector<1x4x1156xf32>
    tpu.vector_store %arg4[%c0_48, %c0_49, %c0_50], %57 {strides = array<i32>} : memref<1x4x1156xf32, #tpu.memory_space<vmem>>, vector<1x4x1156xf32>,
    %c0_51 = arith.constant 0 : index
    %c0_52 = arith.constant 0 : index
    %58 = vector.load %arg3[%c0_51, %c0_52] : memref<1x1156xf32, #tpu.memory_space<vmem>>, vector<1x1156xf32>
    %59 = vector.broadcast %58 : vector<1x1156xf32> to vector<4x1156xf32>
    %60 = arith.mulf %54, %59 : vector<4x1156xf32>
    %cst_53 = arith.constant dense<0.000000e+00> : vector<4xf32>
    %61 = vector.multi_reduction <add>, %60, %cst_53 [1] : vector<4x1156xf32> to vector<4xf32>
    %62 = vector.shape_cast %61 : vector<4xf32> to vector<4x1xf32>
    %63 = arith.mulf %60, %54 : vector<4x1156xf32>
    %cst_54 = arith.constant dense<0.000000e+00> : vector<4xf32>
    %64 = vector.multi_reduction <add>, %63, %cst_54 [1] : vector<4x1156xf32> to vector<4xf32>
    %65 = vector.shape_cast %64 : vector<4xf32> to vector<4x1xf32>
    %66 = tpu.concatenate %62, %65 in 1 : vector<4x1xf32>, vector<4x1xf32> -> vector<4x2xf32>
    %c0_55 = arith.constant 0 : index
    %c0_56 = arith.constant 0 : index
    %c0_57 = arith.constant 0 : index
    %67 = vector.load %arg5[%c0_55, %c0_56, %c0_57] : memref<1x4x2xf32, #tpu.memory_space<vmem>>, vector<1x4x2xf32>
    %68 = vector.shape_cast %67 : vector<1x4x2xf32> to vector<4x2xf32>
    %69 = vector.shape_cast %66 : vector<4x2xf32> to vector<1x4x2xf32>
    tpu.vector_store %arg5[%c0_55, %c0_56, %c0_57], %69 {strides = array<i32>} : memref<1x4x2xf32, #tpu.memory_space<vmem>>, vector<1x4x2xf32>,
    return
  }
  func.func @transform_0(%arg0: i32) -> (i32, i32, i32) {
    %c0_i32 = arith.constant 0 : i32
    %c0_i32_0 = arith.constant 0 : i32
    %c0_i32_1 = arith.constant 0 : i32
    return %arg0, %c0_i32, %c0_i32_0 : i32, i32, i32
  }
  func.func @transform_1(%arg0: i32) -> (i32, i32, i32) {
    %c0_i32 = arith.constant 0 : i32
    %c0_i32_0 = arith.constant 0 : i32
    %c0_i32_1 = arith.constant 0 : i32
    %c0_i32_2 = arith.constant 0 : i32
    return %c0_i32, %c0_i32_0, %c0_i32_1 : i32, i32, i32
  }
  func.func @transform_2(%arg0: i32) -> (i32, i32) {
    %c0_i32 = arith.constant 0 : i32
    %c0_i32_0 = arith.constant 0 : i32
    %c0_i32_1 = arith.constant 0 : i32
    return %c0_i32, %c0_i32_0 : i32, i32
  }
  func.func @transform_3(%arg0: i32) -> (i32, i32, i32) {
    %c0_i32 = arith.constant 0 : i32
    %c0_i32_0 = arith.constant 0 : i32
    %c0_i32_1 = arith.constant 0 : i32
    return %arg0, %c0_i32, %c0_i32_0 : i32, i32, i32
  }
  func.func @transform_4(%arg0: i32) -> (i32, i32, i32) {
    %c0_i32 = arith.constant 0 : i32
    %c0_i32_0 = arith.constant 0 : i32
    %c0_i32_1 = arith.constant 0 : i32
    return %arg0, %c0_i32, %c0_i32_0 : i32, i32, i32
  }
}

module attributes {stable_mosaic.version = 11 : i64} {
  func.func @_bias_sigmoid_kernel(%arg0: i32, %arg1: memref<8x2048xf32, #tpu.memory_space<vmem>>, %arg2: memref<8x1xf32, #tpu.memory_space<vmem>>, %arg3: memref<8x2048xf32, #tpu.memory_space<vmem>>) attributes {dimension_semantics = [#tpu.dimension_semantics<parallel>], iteration_bounds = array<i64: 2>, scalar_prefetch = 0 : i64, scratch_operands = 0 : i64, tpu.core_type = #tpu.core_type<tc>, window_params = [{transform_indices = @transform_0, window_bounds = array<i64: 8, 2048>}, {pipeline_mode = #tpu.pipeline_mode<synchronous>, transform_indices = @transform_1, window_bounds = array<i64: 8, 1>}, {transform_indices = @transform_2, window_bounds = array<i64: 8, 2048>}]} {
    %c0 = arith.constant 0 : index
    %c0_0 = arith.constant 0 : index
    %0 = vector.load %arg1[%c0, %c0_0] : memref<8x2048xf32, #tpu.memory_space<vmem>>, vector<8x2048xf32>
    %c0_1 = arith.constant 0 : index
    %c0_2 = arith.constant 0 : index
    %1 = vector.load %arg2[%c0_1, %c0_2] : memref<8x1xf32, #tpu.memory_space<vmem>>, vector<8x1xf32>
    %2 = vector.broadcast %1 : vector<8x1xf32> to vector<8x2048xf32>
    %3 = arith.addf %0, %2 : vector<8x2048xf32>
    %cst = arith.constant 0.000000e+00 : f32
    %4 = vector.broadcast %cst : f32 to vector<8x2048xf32>
    %5 = arith.subf %4, %3 : vector<8x2048xf32>
    %6 = math.exp %5 : vector<8x2048xf32>
    %cst_3 = arith.constant 1.000000e+00 : f32
    %7 = vector.broadcast %cst_3 : f32 to vector<8x2048xf32>
    %8 = arith.addf %7, %6 : vector<8x2048xf32>
    %9 = tpu.reciprocal %8 {approx = true} : vector<8x2048xf32> -> vector<8x2048xf32>
    %c0_4 = arith.constant 0 : index
    %c0_5 = arith.constant 0 : index
    %10 = vector.load %arg3[%c0_4, %c0_5] : memref<8x2048xf32, #tpu.memory_space<vmem>>, vector<8x2048xf32>
    tpu.vector_store %arg3[%c0_4, %c0_5], %9 {strides = array<i32>} : memref<8x2048xf32, #tpu.memory_space<vmem>>, vector<8x2048xf32>,
    return
  }
  func.func @transform_0(%arg0: i32) -> (i32, i32) {
    %c0_i32 = arith.constant 0 : i32
    %c0_i32_0 = arith.constant 0 : i32
    return %c0_i32, %arg0 : i32, i32
  }
  func.func @transform_1(%arg0: i32) -> (i32, i32) {
    %c0_i32 = arith.constant 0 : i32
    %c0_i32_0 = arith.constant 0 : i32
    %c0_i32_1 = arith.constant 0 : i32
    return %c0_i32, %c0_i32_0 : i32, i32
  }
  func.func @transform_2(%arg0: i32) -> (i32, i32) {
    %c0_i32 = arith.constant 0 : i32
    %c0_i32_0 = arith.constant 0 : i32
    return %c0_i32, %arg0 : i32, i32
  }
}

</mosaic_0001>

<bundles_post_ra>
// kernel: decoder_forward.8
= control target key start
LH: loop header
LB: loop body
LE: loop exit
PB: predicated region body
PF: predicated region fallthrough
CT: control target
= control target key end

     0   :  { %s446_s15 = smov 0   ;;  %s480_s0 = inlined_call_operand.vmem [shape: bf16[2,8,256], index: 0, kind: input, shape index: {}]   ;;  %s481_s1 = inlined_call_operand.vmem [shape: bf16[1,8,8], index: 1, kind: input, shape index: {}]   ;;  %s482_s2 = inlined_call_operand.vmem [shape: f32[1,256], index: 2, kind: input, shape index: {}]   ;;  %s483_s3 = inlined_call_operand.vmem [shape: f32[2,8,256], index: 3, kind: output, shape index: {0}]   ;;  %s484_s4 = inlined_call_operand.vmem [shape: f32[2,8,2], index: 4, kind: output, shape index: {1}]  }
   0x1 LB: > { %s383_s16 = sadd.s32 4294967295, %s418_s15   ;;  %p387_p0 = scmp.ge.s32.totalorder %s418_s15, 1  ;;  %s418_s15 = sphi %s446_s15, %s15_s15  }
   0x2   : > { %p165_p1 = scmp.lt.s32.totalorder %s418_s15, 3 }
   0x4   : > { %p166_p2 = pnand %p387_p0, %p165_p1 }
   0x5   : > { %p195_p3 = scmp.lt.s32.totalorder (!%p166_p2), %s383_s16, 1 }
   0x6   : > { %169 = sbr.rel (%p166_p2) target bundleno = 364 (0x16c), region = 32 }
   0xb   : > { %v420_v0 = vmov 0   ;;  %s486_s16 = smov (!%p195_p3, %s383_s16), 1  ;;  %vm221_vm0 = vcmask 1043456   ;;  %v211_v5 = vld [vmem:[%s481_s1] sm:$0xf]  ;;  %vm217_vm1 = vcmask 64512   ;;  %v273_v6 = vlaneseq }
   0xc   : > { %260 = vmatprep.mubr.bf16.mxu0 %v420_v0  ;;  %s399_s17 = sshll.u32 %s486_s16, 3  ;;  %s400_s23 = sshll.u32 %s486_s16, 4  ;;  %v271_v10 = vld [vmem:[%s482_s2] sm:$0x3]  ;;  %vm293_vm2 = vcmask 7168   ;;  %vm295_vm3 = vcmask 15360  }
   0xd   : > { %s199_s20 = scalar_lea.vmem %s480_s0, %s399_s17  ;;  %v274_v7 = vshrl.u32 %v273_v6, 7  ;;  %s204_s28 = scalar_lea.vmem %s483_s3, %s400_s23 }
   0xe   : > { %v210_v1 = vld [vmem:[%s199_s20] sm:$0xff]  ;;  %s208_s5 = scalar_lea.vmem %s484_s4, %s399_s17 }
   0xf   : > { %v394_v2 = vcombine.high %v210_v1, %v210_v1  ;;  %v393_v3 = vcombine.low %v210_v1, %v210_v1  ;;  %v275_v8 = vsub.s32 0, %v274_v7  ;;  %v279_v9 = vsub.s32 1, %v274_v7 }
  0x11   : > { %395 = vmatprep.subr.msk.bf16.mxu0 %vm221_vm0, %v394_v2  ;;  %v223_v4 = vsel %vm221_vm0, %v393_v3, 0  ;;  %v276_v11 = vrot.slane %v271_v10, %v275_v8  ;;  %v280_v12 = vrot.slane %v271_v10, %v279_v9 }
  0x12   : > { %243 = vmatpush1.bf16.msra.mxu0 %v223_v4 }
  0x15   : > { %396 = vmatmul.mubr.msk.bf16.vlgmr.msra.gmra.mxu0 %vm217_vm1, %v211_v5 }
  0xd5   : > { %v262_v13 = vpop.f32.mrf.mxu0 }
  0xd6   : > { %269 = vst [vmem:[%s204_s28] sm:$0xff] %v262_v13  ;;  %v283_v15 = vmul.f32 %v276_v11, %v262_v13 }
  0xd7   : > { %v264_v14 = vpop.f32.mrf.mxu0 }
  0xd8   : > { %270 = vst [vmem:[%s204_s28 + $0x8] sm:$0xff] %v264_v14  ;;  %v284_v16 = vmul.f32 %v280_v12, %v264_v14  ;;  %v288_v21 = vmul.f32 %v283_v15, %v262_v13 }
  0xd9   : > { %v266_v17 = vpop.f32.mrf.mxu0 }
  0xda   : > { %v285_v18 = vadd.f32 %v284_v16, %v283_v15  ;;  %v289_v19 = vmul.f32 %v284_v16, %v264_v14 }
  0xdb   : > { %v267_v20 = vpop.f32.mrf.mxu0 }
  0xdc   : > { %286 = vadd.xlane.f32.xlu0 %v285_v18  ;;  %v290_v22 = vadd.f32 %v289_v19, %v288_v21 }
  0xe0   : > { %291 = vadd.xlane.f32.xlu0 %v290_v22 }
 0x165   : > { %v287_v23 = vpop.xlane.xlu0 %286 }
 0x169   : > { %v292_v24 = vpop.xlane.xlu0 %291 }
 0x16a   : > { %v294_v25 = vsel %vm293_vm2, %v287_v23, %v292_v24 }
 0x16b   : > { %296 = vst.msk [vmem:[%s208_s5] sm:$0xff] %vm295_vm3, %v294_v25 }
 0x16c PF: > { %s15_s15 = sadd.s32 1, %s418_s15  }
 0x16d   : > { %p12_p4 = scmp.ge.s32.totalorder %s15_s15, 4  }
 0x16f   :  { %14 = sbr.rel (!%p12_p4) target bundleno = 1 (0x1), region = 74 }

// kernel: decoder_forward.9
= control target key start
LH: loop header
LB: loop body
LE: loop exit
PB: predicated region body
PF: predicated region fallthrough
CT: control target
= control target key end

     0   :  { %s309_s12 = smov 0   ;;  %s332_s0 = inlined_call_operand.vmem [shape: f32[2,8,256], index: 0, kind: input, shape index: {}]   ;;  %s333_s1 = inlined_call_operand.vmem [shape: f32[8,1], index: 1, kind: input, shape index: {}]   ;;  %s334_s2 = inlined_call_operand.vmem [shape: f32[8,1], index: 2, kind: input, shape index: {}]   ;;  %s335_s3 = inlined_call_operand.vmem [shape: bf16[2,8,256], index: 3, kind: output, shape index: {}]  }
   0x1 LB: > { %s255_s13 = sadd.s32 4294967295, %s286_s12   ;;  %p259_p0 = scmp.ge.s32.totalorder %s286_s12, 1  ;;  %s286_s12 = sphi %s309_s12, %s13_s12  }
   0x2   : > { %p137_p1 = scmp.lt.s32.totalorder %s286_s12, 3 }
   0x4   : > { %p138_p2 = pnand %p259_p0, %p137_p1 }
   0x5   : > { %p161_p3 = scmp.lt.s32.totalorder (!%p138_p2), %s255_s13, 1 }
   0x6   : > { %141 = sbr.rel (%p138_p2) target bundleno = 148 (0x94), region = 32 }
   0xb   : > { %v173_v0 = vld [vmem:[%s333_s1] sm:$0xff]  ;;  %v288_v1 = vmov 0   ;;  %s337_s13 = smov (!%p161_p3, %s255_s13), 1 }
   0xc   : > { %279 = vset.pattern.permute.xlu0 %v288_v1  ;;  %v181_v2 = vld [vmem:[%s334_s2] sm:$0xff]  ;;  %s267_s18 = sshll.u32 %s337_s13, 4  ;;  %s268_s22 = sshll.u32 %s337_s13, 3 }
   0xd   : > { %176 = vperm.xlu0 %279, %v173_v0   ;;  %s165_s21 = scalar_lea.vmem %s332_s0, %s267_s18  ;;  %s170_s25 = scalar_lea.vmem %s335_s3, %s268_s22 }
   0xe   : > { %v171_v4 = vld [vmem:[%s165_s21] sm:$0xff]  ;;  %v172_v5 = vld [vmem:[%s165_s21 + $0x8] sm:$0xff] }
  0x11   : > { %184 = vperm.xlu0 %279, %v181_v2  }
  0x88   : > { %v177_v3 = vpop.permute.xlu0 %176 }
  0x89   : > { %v179_v6 = vmul.f32 %v177_v3, %v171_v4  ;;  %v180_v7 = vmul.f32 %v177_v3, %v172_v5 }
  0x8c   : > { %v185_v8 = vpop.permute.xlu0 %184 }
  0x8d   : > { %v187_v9 = vadd.f32 %v185_v8, %v179_v6  ;;  %v188_v10 = vadd.f32 %v185_v8, %v180_v7 }
  0x8f   : > { %v189_v11 = vmax.f32 %v187_v9, 0.0  ;;  %v190_v12 = vmax.f32 %v188_v10, 0.0 }
  0x91   : > { %v269_v13 = vpack.c.bf16 %v190_v12, %v189_v11 }
  0x93   : > { %199 = vst [vmem:[%s170_s25] sm:$0xff] %v269_v13 }
  0x94 PF: > { %s13_s12 = sadd.s32 1, %s286_s12  }
  0x95   : > { %p10_p4 = scmp.ge.s32.totalorder %s13_s12, 4  }
  0x97   :  { %12 = sbr.rel (!%p10_p4) target bundleno = 1 (0x1), region = 62 }

// kernel: tile.17
= control target key start
LH: loop header
LB: loop body
LE: loop exit
PB: predicated region body
PF: predicated region fallthrough
CT: control target
= control target key end

     0   :  { %s22_s0 = inlined_call_operand.vmem [shape: f32[8], index: 0, kind: input, shape index: {}]   ;;  %s23_s1 = inlined_call_operand.vmem [shape: f32[4,8], index: 1, kind: output, shape index: {}]  }
   0x1   :  { %v4_v0 = vld [vmem:[%s22_s0] ss:$0 sm:$0xff] }
   0x2   :  { %5 = vst [vmem:[%s23_s1] sm:$0xf] %v4_v0 }

// kernel: tile.0
= control target key start
LH: loop header
LB: loop body
LE: loop exit
PB: predicated region body
PF: predicated region fallthrough
CT: control target
= control target key end

     0   :  { %s67_s8 = smov 125   ;;  %vm8_vm0 = vcmask 7168   ;;  %s68_s11 = smov 126   ;;  %s118_s0 = inlined_call_operand.vmem [shape: f32[4,8], index: 0, kind: input, shape index: {}]   ;;  %s119_s1 = inlined_call_operand.vmem [shape: f32[32,1], index: 1, kind: output, shape index: {}]  }
   0x1   :  { %v5_v0 = vld [vmem:[%s118_s0] sm:$0xf]  ;;  %s66_s0 = smov 127   ;;  %s69_s12 = smov 124  }
   0x2   :  { %6 = vst [vmem:[#allocation0] sm:$0xf] %v5_v0  ;;  %s70_s13 = smov 123   ;;  %s71_s14 = smov 122  }
   0x3   :  { %s72_s15 = smov 121  }
   0x9   :  { %v10_v1 = vld [vmem:[#allocation0] sm:$0xf]  }
   0xa   :  { %v22_v2 = vld [vmem:[#allocation0] sm:$0xf]   ;;  %11 = vrot.lane.b32.xlu0 %v10_v1, %s66_s0 }
   0xb   :  { %23 = vrot.lane.b32.xlu1 %v22_v2, %s67_s8  ;;  %v16_v3 = vld [vmem:[#allocation0] sm:$0xf]  }
   0xc   :  { %v28_v4 = vld [vmem:[#allocation0] sm:$0xf]  }
   0xd   :  { %v7_v5 = vld [vmem:[#allocation0] sm:$0xf]  }
   0xe   :  { %9 = vst.msk [vmem:[%s119_s1] ss:$8 sm:$0xf] %vm8_vm0, %v7_v5   ;;  %17 = vrot.lane.b32.xlu0 %v16_v3, %s68_s11  ;;  %v34_v6 = vld [vmem:[#allocation0] sm:$0xf]  }
   0xf   :  { %29 = vrot.lane.b32.xlu1 %v28_v4, %s69_s12  ;;  %v40_v7 = vld [vmem:[#allocation0] sm:$0xf]  }
  0x10   :  { %v46_v8 = vld [vmem:[#allocation0] sm:$0xf]  }
  0x12   :  { %35 = vrot.lane.b32.xlu0 %v34_v6, %s70_s13 }
  0x13   :  { %41 = vrot.lane.b32.xlu1 %v40_v7, %s71_s14 }
  0x16   :  { %47 = vrot.lane.b32.xlu0 %v46_v8, %s72_s15 }
  0x7c   :  { %v12_v9 = vpop.permute.xlu0 %11  }
  0x7d   :  { %v24_v10 = vpop.permute.xlu1 %23   ;;  %52 = vst.msk [vmem:[%s119_s1 + $0x1] ss:$8 sm:$0xf] %vm8_vm0, %v12_v9  }
  0x7e   :  { %54 = vst.msk [vmem:[%s119_s1 + $0x3] ss:$8 sm:$0xf] %vm8_vm0, %v24_v10  }
  0x80   :  { %v18_v11 = vpop.permute.xlu0 %17  }
  0x81   :  { %v30_v12 = vpop.permute.xlu1 %29   ;;  %53 = vst.msk [vmem:[%s119_s1 + $0x2] ss:$8 sm:$0xf] %vm8_vm0, %v18_v11  }
  0x82   :  { %55 = vst.msk [vmem:[%s119_s1 + $0x4] ss:$8 sm:$0xf] %vm8_vm0, %v30_v12  }
  0x84   :  { %v36_v13 = vpop.permute.xlu0 %35  }
  0x85   :  { %v42_v14 = vpop.permute.xlu1 %41   ;;  %56 = vst.msk [vmem:[%s119_s1 + $0x5] ss:$8 sm:$0xf] %vm8_vm0, %v36_v13  }
  0x86   :  { %57 = vst.msk [vmem:[%s119_s1 + $0x6] ss:$8 sm:$0xf] %vm8_vm0, %v42_v14  }
  0x88   :  { %v48_v15 = vpop.permute.xlu0 %47  }
  0x89   :  { %58 = vst.msk [vmem:[%s119_s1 + $0x7] ss:$8 sm:$0xf] %vm8_vm0, %v48_v15  }

// kernel: decoder_forward.10
= control target key start
LH: loop header
LB: loop body
LE: loop exit
PB: predicated region body
PF: predicated region fallthrough
CT: control target
= control target key end

     0   :  { %s1126_s15 = smov 0   ;;  %s1277_s0 = inlined_call_operand.vmem [shape: bf16[2,16,307], index: 0, kind: input, shape index: {}]   ;;  %s1278_s1 = inlined_call_operand.vmem [shape: bf16[4,32,16], index: 1, kind: input, shape index: {}]   ;;  %s1279_s2 = inlined_call_operand.vmem [shape: f32[1,289], index: 2, kind: input, shape index: {}]   ;;  %s1280_s3 = inlined_call_operand.vmem [shape: f32[2,32,289], index: 3, kind: output, shape index: {0}]   ;;  %s1281_s4 = inlined_call_operand.vmem [shape: f32[2,32,2], index: 4, kind: output, shape index: {1}]  }
   0x1 LB: > { %s976_s16 = sadd.s32 4294967295, %s1095_s15   ;;  %p980_p0 = scmp.ge.s32.totalorder %s1095_s15, 1  ;;  %s1095_s15 = sphi %s1126_s15, %s15_s15  }
   0x2   : > { %p165_p1 = scmp.lt.s32.totalorder %s1095_s15, 3 }
   0x4   : > { %p166_p2 = pnand %p980_p0, %p165_p1 }
   0x5   : > { %p196_p3 = scmp.lt.s32.totalorder (!%p166_p2), %s976_s16, 1  ;;  %s1098_s23 = smov (!%p166_p2), 127  }
   0x6   : > { %169 = sbr.rel (%p166_p2) target bundleno = 534 (0x216), region = 32  ;;  %s1099_s24 = smov (!%p166_p2), 111  }
   0x7   : > { %s1100_s25 = smov (!%p166_p2), 110  }
   0xb   : > { %s1283_s16 = smov (!%p196_p3, %s976_s16), 1  ;;  %v1081_v0 = vld [vmem:[%s1278_s1 + $0x10] sm:$0xff]   ;;  %vm260_vm0 = vcmask 130048   ;;  %v1097_v1 = vmov 0   ;;  %vm254_vm1 = vcmask 1039360   ;;  %v1082_v9 = vld [vmem:[%s1278_s1 + $0x18] sm:$0xff]   ;;  %v799_v52 = vlaneseq }
   0xc   : > { %299 = vmatprep.mubr.bf16.mxu0 %v1097_v1  ;;  %s1063_s19 = smul.u32 24, %s1283_s16  ;;  %1041 = vmatprep.mubr.msk.bf16.mxu1 %vm260_vm0, %v1081_v0  ;;  %vm511_vm2 = vcmask 908288   ;;  %v1083_v15 = vld [vmem:[%s1278_s1] sm:$0xff]   ;;  %vm658_vm3 = vcmask 900096   ;;  %v1084_v19 = vld [vmem:[%s1278_s1 + $0x8] sm:$0xff]   ;;  %v1087_v25 = vld [vmem:[%s1278_s1 + $0x30] sm:$0xff]  }
   0xd   : > { %v1085_v20 = vld [vmem:[%s1278_s1 + $0x20] sm:$0xff]   ;;  %v1086_v23 = vld [vmem:[%s1278_s1 + $0x28] sm:$0xff]   ;;  %v1088_v26 = vld [vmem:[%s1278_s1 + $0x38] sm:$0xff]   ;;  %s1064_s14 = smul.u32 96, %s1283_s16  ;;  %v800_v57 = vshrl.u32 %v799_v52, 7  ;;  %vm786_vm4 = vcmask 269312  }
   0xe   : > { %s200_s22 = scalar_lea.vmem %s1277_s0, %s1063_s19  ;;  %vm878_vm5 = vcmask 7168   ;;  %vm883_vm6 = vcmask 15360  }
   0xf   : > { %v1077_v2 = vld [vmem:[%s200_s22 + $0x4] ss:$12 sps:$4 sm:$0xff]   ;;  %v1079_v3 = vld [vmem:[%s200_s22] ss:$12 sps:$4 sm:$0xff]   ;;  %v1080_v4 = vld [vmem:[%s200_s22 + $0x8] ss:$12 sps:$4 sm:$0xff]   ;;  %s1204_s19 = scalar_lea.vmem %s1280_s3, %s1064_s14 }
  0x10   : > { %250 = vrot.lane.b32.xlu0 %v1077_v2, %s1098_s23  ;;  %248 = vrot.lane.b32.xlu1 %v1079_v3, %s1098_s23  ;;  %s1026_s22 = sshll.u32 %s1283_s16, 5 }
  0x14   : > { %252 = vrot.lane.b32.xlu0 %v1080_v4, %s1098_s23  ;;  %507 = vrot.lane.b32.xlu1 %v1077_v2, %s1099_s24 }
  0x18   : > { %509 = vrot.lane.b32.xlu0 %v1080_v4, %s1099_s24  ;;  %505 = vrot.lane.b32.xlu1 %v1079_v3, %s1099_s24 }
  0x1c   : > { %654 = vrot.lane.b32.xlu0 %v1077_v2, %s1100_s25  ;;  %656 = vrot.lane.b32.xlu1 %v1080_v4, %s1100_s25 }
  0x20   : > { %652 = vrot.lane.b32.xlu0 %v1079_v3, %s1100_s25  ;;  %s210_s25 = scalar_lea.vmem %s1281_s4, %s1026_s22 }
  0x82   : > { %v251_v5 = vpop.permute.xlu0 %250  ;;  %v249_v6 = vpop.permute.xlu1 %248 }
  0x83   : > { %v255_v11 = vsel %vm254_vm1, %v249_v6, %v251_v5  ;;  %v797_v6 = vld [vmem:[%s1279_s2] sm:$0x7] }
  0x86   : > { %v253_v7 = vpop.permute.xlu0 %252  ;;  %v508_v10 = vpop.permute.xlu1 %507 }
  0x87   : > { %1039 = vmatprep.subr.bf16.mxu1 %v253_v7  ;;  %v256_v8 = vsel %vm254_vm1, %v251_v5, %v253_v7 }
  0x88   : > { %281 = vmatprep.subr.bf16.mxu0 %v256_v8  ;;  %1040 = vmatpush3.bf16.msra.mxu1 %v253_v7 }
  0x89   : > { %282 = vmatpush1.bf16.msra.mxu0 %v255_v11  ;;  %402 = vmatprep.subr.bf16.mxu1 %v1077_v2  ;;  %v805_v2 = vsub.s32 1, %v800_v57 }
  0x8a   : > { %1045 = vmatprep.subr.bf16.mxu0 %v1080_v4  ;;  %v510_v12 = vpop.permute.xlu0 %509  ;;  %v506_v14 = vpop.permute.xlu1 %505 }
  0x8b   : > { %1042 = vmatmul.mubr.msk.bf16.vlgmr.msra.gmra.mxu1 %vm260_vm0, %v1082_v9  ;;  %v513_v13 = vsel %vm511_vm2, %v508_v10, %v510_v12  ;;  %v512_v21 = vsel %vm511_vm2, %v506_v14, %v508_v10 }
  0x8c   : > { %994 = vmatmul.mubr.msk.bf16.vlgmr.msra.gmra.mxu0 %vm260_vm0, %v1081_v0  ;;  %403 = vmatpush1.bf16.msra.mxu1 %v1079_v3 }
  0x8d   : > { %1046 = vmatpush3.bf16.msra.mxu0 %v1080_v4  ;;  %420 = vmatprep.mubr.bf16.mxu1 %v1097_v1 }
  0x8e   : > { %1051 = vmatprep.subr.bf16.mxu1 %v510_v12  ;;  %309 = vmatprep.mubr.bf16.mxu0 %v1097_v1  ;;  %v657_v16 = vpop.permute.xlu1 %656  ;;  %v655_v17 = vpop.permute.xlu0 %654 }
  0x8f   : > { %537 = vmatprep.subr.bf16.mxu0 %v513_v13  ;;  %v660_v18 = vsel %vm658_vm3, %v655_v17, %v657_v16 }
  0x92   : > { %v653_v22 = vpop.permute.xlu0 %652 }
  0x93   : > { %1000 = vmatmul.mubr.msk.bf16.vlgmr.msra.gmra.mxu1 %vm260_vm0, %v1083_v15  ;;  %v659_v24 = vsel %vm658_vm3, %v653_v22, %v655_v17 }
  0x94   : > { %1052 = vmatpush3.bf16.msra.mxu1 %v510_v12  ;;  %995 = vmatmul.mubr.msk.bf16.gmra.mxu0 %vm260_vm0, %v1082_v9  ;;  %v809_v9 = vsub.s32 2, %v800_v57 }
  0x95   : > { %430 = vmatprep.mubr.bf16.mxu1 %v1097_v1  ;;  %1047 = vmatprep.mubr.msk.bf16.mxu0 %vm260_vm0, %v1083_v15  ;;  %v1212_v15 = vrot.slane %v797_v6, %v805_v2 }
  0x96   : > { %684 = vmatprep.subr.bf16.mxu1 %v660_v18 }
  0x9b   : > { %1001 = vmatmul.mubr.msk.bf16.gmra.mxu1 %vm260_vm0, %v1084_v19 }
  0x9c   : > { %1048 = vmatmul.mubr.msk.bf16.vlgmr.msra.gmra.mxu0 %vm260_vm0, %v1084_v19  ;;  %1053 = vmatprep.mubr.msk.bf16.mxu1 %vm260_vm0, %v1085_v20 }
  0x9d   : > { %538 = vmatpush1.bf16.msra.mxu0 %v512_v21  ;;  %555 = vmatprep.mubr.bf16.mxu0 %v1097_v1 }
  0x9e   : > { %1057 = vmatprep.subr.bf16.mxu0 %v657_v16 }
  0xa3   : > { %1054 = vmatmul.mubr.msk.bf16.vlgmr.msra.gmra.mxu1 %vm260_vm0, %v1086_v23 }
  0xa4   : > { %685 = vmatpush1.bf16.msra.mxu1 %v659_v24  ;;  %1010 = vmatmul.mubr.msk.bf16.vlgmr.msra.gmra.mxu0 %vm260_vm0, %v1085_v20 }
  0xa5   : > { %1058 = vmatpush3.bf16.msra.mxu0 %v657_v16  ;;  %702 = vmatprep.mubr.bf16.mxu1 %v1097_v1 }
  0xa6   : > { %565 = vmatprep.mubr.bf16.mxu0 %v1097_v1 }
  0xab   : > { %1020 = vmatmul.mubr.msk.bf16.vlgmr.msra.gmra.mxu1 %vm260_vm0, %v1087_v25 }
  0xac   : > { %1011 = vmatmul.mubr.msk.bf16.gmra.mxu0 %vm260_vm0, %v1086_v23  ;;  %712 = vmatprep.mubr.bf16.mxu1 %v1097_v1  ;;  %v801_v1 = vsub.s32 0, %v800_v57  ;;  %v1217_v23 = vrot.slane %v797_v6, %v809_v9 }
  0xad   : > { %1059 = vmatprep.mubr.msk.bf16.mxu0 %vm260_vm0, %v1087_v25 }
  0xae   : > { %v1210_v14 = vrot.slane %v797_v6, %v801_v1 }
  0xb3   : > { %1021 = vmatmul.mubr.msk.bf16.gmra.mxu1 %vm260_vm0, %v1088_v26 }
  0xb4   : > { %1060 = vmatmul.mubr.msk.bf16.vlgmr.msra.gmra.mxu0 %vm260_vm0, %v1088_v26 }
 0x14b   : > { %v1043_v27 = vpop.f32.mrf.mxu1 }
 0x14c   : > { %v301_v28 = vpop.f32.mrf.mxu0 }
 0x14d   : > { %v1192_v29 = vpop.f32.mrf.mxu1 }
 0x14e   : > { %v303_v30 = vpop.f32.mrf.mxu0 }
 0x14f   : > { %v1194_v31 = vpop.f32.mrf.mxu1 }
 0x150   : > { %v305_v32 = vpop.f32.mrf.mxu0 }
 0x151   : > { %v1196_v33 = vpop.f32.mrf.mxu1 }
 0x152   : > { %v307_v34 = vpop.f32.mrf.mxu0 }
 0x153   : > { %v422_v35 = vpop.f32.mrf.mxu1 }
 0x154   : > { %v311_v36 = vpop.f32.mrf.mxu0  ;;  %v423_v58 = vadd.f32 %v422_v35, %v301_v28 }
 0x155   : > { %v424_v37 = vpop.f32.mrf.mxu1 }
 0x156   : > { %v313_v38 = vpop.f32.mrf.mxu0  ;;  %v425_v61 = vadd.f32 %v424_v37, %v303_v30 }
 0x157   : > { %v426_v39 = vpop.f32.mrf.mxu1 }
 0x158   : > { %v315_v40 = vpop.f32.mrf.mxu0  ;;  %v427_v3 = vadd.f32 %v426_v39, %v305_v32 }
 0x159   : > { %v428_v41 = vpop.f32.mrf.mxu1 }
 0x15a   : > { %v1198_v42 = vpop.f32.mrf.mxu0  ;;  %v429_v10 = vadd.f32 %v428_v41, %v307_v34 }
 0x15b   : > { %v432_v43 = vpop.f32.mrf.mxu1 }
 0x15c   : > { %v1049_v44 = vpop.f32.mrf.mxu0  ;;  %v433_v17 = vadd.f32 %v432_v43, %v311_v36 }
 0x15d   : > { %v434_v45 = vpop.f32.mrf.mxu1  ;;  %v484_v21 = vadd.f32 %v1049_v44, %v1043_v27 }
 0x15e   : > { %v475_v46 = vpop.f32.mrf.mxu0  ;;  %v435_v24 = vadd.f32 %v434_v45, %v313_v38 }
 0x15f   : > { %v436_v47 = vpop.f32.mrf.mxu1  ;;  %v476_v25 = vadd.f32 %v475_v46, %v1192_v29 }
 0x160   : > { %v1050_v48 = vpop.f32.mrf.mxu0  ;;  %v437_v32 = vadd.f32 %v436_v47, %v315_v40 }
 0x161   : > { %v438_v49 = vpop.f32.mrf.mxu1  ;;  %v487_v37 = vadd.f32 %v1050_v48, %v1194_v31 }
 0x162   : > { %v478_v50 = vpop.f32.mrf.mxu0  ;;  %v439_v43 = vadd.f32 %v438_v49, %v1198_v42 }
 0x163   : > { %v1055_v51 = vpop.f32.mrf.mxu1  ;;  %v479_v39 = vadd.f32 %v478_v50, %v1196_v33 }
 0x164   : > { %v557_v53 = vpop.f32.mrf.mxu0  ;;  %v633_v34 = vadd.f32 %v1055_v51, %v484_v21 }
 0x165   : > { %v610_v54 = vpop.f32.mrf.mxu1  ;;  %v625_v62 = vadd.f32 %v557_v53, %v423_v58 }
 0x166   : > { %v559_v55 = vpop.f32.mrf.mxu0  ;;  %v627_v40 = vadd.f32 %v610_v54, %v476_v25 }
 0x167   : > { %v1056_v56 = vpop.f32.mrf.mxu1  ;;  %v626_v4 = vadd.f32 %v559_v55, %v425_v61 }
 0x168   : > { %v561_v59 = vpop.f32.mrf.mxu0  ;;  %v636_v46 = vadd.f32 %v1056_v56, %v487_v37 }
 0x169   : > { %v613_v60 = vpop.f32.mrf.mxu1  ;;  %v628_v11 = vadd.f32 %v561_v59, %v427_v3 }
 0x16a   : > { %v563_v63 = vpop.f32.mrf.mxu0  ;;  %v630_v47 = vadd.f32 %v613_v60, %v479_v39 }
 0x16b   : > { %v704_v0 = vpop.f32.mrf.mxu1  ;;  %v629_v18 = vadd.f32 %v563_v63, %v429_v10 }
 0x16c   : > { %v772_v5 = vadd.f32 %v704_v0, %v625_v62  ;;  %v567_v7 = vpop.f32.mrf.mxu0 }
 0x16d   : > { %v706_v8 = vpop.f32.mrf.mxu1  ;;  %v631_v26 = vadd.f32 %v567_v7, %v433_v17 }
 0x16e   : > { %784 = vst [vmem:[%s1204_s19] sm:$0xff] %v772_v5  ;;  %v773_v12 = vadd.f32 %v706_v8, %v626_v4  ;;  %v569_v13 = vpop.f32.mrf.mxu0  ;;  %v814_v35 = vmul.f32 %v1210_v14, %v772_v5 }
 0x16f   : > { %v708_v16 = vpop.f32.mrf.mxu1  ;;  %v632_v38 = vadd.f32 %v569_v13, %v435_v24 }
 0x170   : > { %785 = vst [vmem:[%s1204_s19 + $0x8] sm:$0xff] %v773_v12  ;;  %v1215_v19 = vadd.f32 %v708_v16, %v628_v11  ;;  %v571_v20 = vpop.f32.mrf.mxu0  ;;  %v815_v27 = vmul.f32 %v1212_v15, %v773_v12  ;;  %v846_v48 = vmul.f32 %v814_v35, %v772_v5 }
 0x171   : > { %v710_v22 = vpop.f32.mrf.mxu1  ;;  %v634_v51 = vadd.f32 %v571_v20, %v437_v32 }
 0x172   : > { %788 = vst [vmem:[%s1204_s19 + $0x18] sm:$0xff] %v1215_v19  ;;  %v776_v28 = vadd.f32 %v710_v22, %v629_v18  ;;  %v573_v30 = vpop.f32.mrf.mxu0  ;;  %v847_v50 = vmul.f32 %v815_v27, %v773_v12  ;;  %v817_v58 = vmul.f32 %v1210_v14, %v1215_v19  ;;  %v826_v62 = vadd.f32 %v815_v27, %v814_v35 }
 0x173   : > { %v714_v36 = vpop.f32.mrf.mxu1  ;;  %v635_v53 = vadd.f32 %v573_v30, %v439_v43 }
 0x174   : > { %789 = vst [vmem:[%s1204_s19 + $0x20] sm:$0xff] %v776_v28  ;;  %v1227_v29 = vadd.f32 %v714_v36, %v631_v26  ;;  %v1061_v41 = vpop.f32.mrf.mxu0  ;;  %v818_v63 = vmul.f32 %v1212_v15, %v776_v28  ;;  %v858_v17 = vadd.f32 %v847_v50, %v846_v48  ;;  %v849_v20 = vmul.f32 %v817_v58, %v1215_v19 }
 0x175   : > { %v1230_v44 = vadd.f32 %v1061_v41, %v633_v34  ;;  %v716_v45 = vpop.f32.mrf.mxu1 }
 0x176   : > { %791 = vst [vmem:[%s1204_s19 + $0x30] sm:$0xff] %v1227_v29  ;;  %v779_v31 = vadd.f32 %v716_v45, %v632_v38  ;;  %v757_v33 = vpop.f32.mrf.mxu0  ;;  %v820_v54 = vmul.f32 %v1210_v14, %v1227_v29  ;;  %v850_v16 = vmul.f32 %v818_v63, %v776_v28  ;;  %v831_v26 = vadd.f32 %v818_v63, %v817_v58 }
 0x177   : > { %793 = vst.msk [vmem:[%s1204_s19 + $0x40] sm:$0xff] %vm786_vm4, %v1230_v44  ;;  %v774_v52 = vadd.f32 %v757_v33, %v627_v40  ;;  %v718_v42 = vpop.f32.mrf.mxu1  ;;  %v822_v49 = vmul.f32 %v1217_v23, %v1230_v44 }
 0x178   : > { %792 = vst [vmem:[%s1204_s19 + $0x38] sm:$0xff] %v779_v31  ;;  %v821_v55 = vmul.f32 %v1212_v15, %v779_v31  ;;  %v781_v56 = vadd.f32 %v718_v42, %v634_v51  ;;  %v1062_v57 = vpop.f32.mrf.mxu0  ;;  %v863_v34 = vadd.f32 %v850_v16, %v849_v20 }
 0x179   : > { %787 = vst.msk [vmem:[%s1204_s19 + $0x10] sm:$0xff] %vm786_vm4, %v774_v52  ;;  %v783_v59 = vadd.f32 %v1062_v57, %v636_v46  ;;  %v720_v60 = vpop.f32.mrf.mxu1  ;;  %v816_v61 = vmul.f32 %v1217_v23, %v774_v52  ;;  %v837_v3 = vsel %vm786_vm4, %v822_v49, 0.0  ;;  %v854_v19 = vmul.f32 %v822_v49, %v1230_v44 }
 0x17a   : > { %794 = vst [vmem:[%s1204_s19 + $0x48] sm:$0xff] %v781_v56  ;;  %v782_v0 = vadd.f32 %v720_v60, %v635_v53  ;;  %v760_v1 = vpop.f32.mrf.mxu0  ;;  %v836_v2 = vadd.f32 %v821_v55, %v820_v54  ;;  %v823_v8 = vmul.f32 %v1210_v14, %v781_v56  ;;  %v853_v22 = vmul.f32 %v821_v55, %v779_v31 }
 0x17b   : > { %796 = vst.msk [vmem:[%s1204_s19 + $0x58] sm:$0xff] %vm786_vm4, %v783_v59  ;;  %v777_v4 = vadd.f32 %v760_v1, %v630_v47  ;;  %v827_v5 = vsel %vm786_vm4, %v816_v61, 0.0  ;;  %v848_v6 = vmul.f32 %v816_v61, %v774_v52  ;;  %v825_v7 = vmul.f32 %v1217_v23, %v783_v59 }
 0x17c   : > { %795 = vst [vmem:[%s1204_s19 + $0x50] sm:$0xff] %v782_v0  ;;  %v824_v9 = vmul.f32 %v1212_v15, %v782_v0  ;;  %v838_v10 = vadd.f32 %v837_v3, %v836_v2  ;;  %v828_v11 = vadd.f32 %v827_v5, %v826_v62  ;;  %v855_v28 = vmul.f32 %v823_v8, %v781_v56 }
 0x17d   : > { %790 = vst.msk [vmem:[%s1204_s19 + $0x28] sm:$0xff] %vm786_vm4, %v777_v4  ;;  %v859_v12 = vsel %vm786_vm4, %v848_v6, 0.0  ;;  %v819_v13 = vmul.f32 %v1217_v23, %v777_v4  ;;  %v842_v14 = vsel %vm786_vm4, %v825_v7, 0.0  ;;  %v852_v23 = vmul.f32 %v820_v54, %v1227_v29 }
 0x17e   : > { %839 = vadd.xlane.f32.xlu0 %v838_v10  ;;  %829 = vadd.xlane.f32.xlu1 %v828_v11  ;;  %v841_v18 = vadd.f32 %v824_v9, %v823_v8  ;;  %v856_v15 = vmul.f32 %v824_v9, %v782_v0  ;;  %v860_v24 = vadd.f32 %v859_v12, %v858_v17  ;;  %v869_v38 = vsel %vm786_vm4, %v854_v19, 0.0 }
 0x17f   : > { %v851_v21 = vmul.f32 %v819_v13, %v777_v4  ;;  %v832_v30 = vsel %vm786_vm4, %v819_v13, 0.0  ;;  %v857_v35 = vmul.f32 %v825_v7, %v783_v59  ;;  %v868_v37 = vadd.f32 %v853_v22, %v852_v23 }
 0x180   : > { %v843_v25 = vadd.f32 %v842_v14, %v841_v18  ;;  %v833_v27 = vadd.f32 %v832_v30, %v831_v26  ;;  %v873_v39 = vadd.f32 %v856_v15, %v855_v28 }
 0x181   : > { %v864_v32 = vsel %vm786_vm4, %v851_v21, 0.0  ;;  %v874_v41 = vsel %vm786_vm4, %v857_v35, 0.0  ;;  %v870_v43 = vadd.f32 %v869_v38, %v868_v37 }
 0x182   : > { %861 = vadd.xlane.f32.xlu0 %v860_v24  ;;  %844 = vadd.xlane.f32.xlu1 %v843_v25  ;;  %v865_v36 = vadd.f32 %v864_v32, %v863_v34  ;;  %v875_v29 = vadd.f32 %v874_v41, %v873_v39 }
 0x186   : > { %834 = vadd.xlane.f32.xlu0 %v833_v27  ;;  %866 = vadd.xlane.f32.xlu1 %v865_v36 }
 0x18a   : > { %871 = vadd.xlane.f32.xlu0 %v870_v43  ;;  %876 = vadd.xlane.f32.xlu1 %v875_v29 }
 0x207   : > { %v840_v40 = vpop.xlane.xlu0 %839  ;;  %v830_v45 = vpop.xlane.xlu1 %829 }
 0x20b   : > { %v862_v44 = vpop.xlane.xlu0 %861  ;;  %v845_v46 = vpop.xlane.xlu1 %844 }
 0x20c   : > { %v879_v47 = vsel %vm878_vm5, %v830_v45, %v862_v44 }
 0x20d   : > { %884 = vst.msk [vmem:[%s210_s25] sm:$0xff] %vm883_vm6, %v879_v47 }
 0x20f   : > { %v835_v51 = vpop.xlane.xlu0 %834  ;;  %v867_v31 = vpop.xlane.xlu1 %866 }
 0x210   : > { %v880_v33 = vsel %vm878_vm5, %v835_v51, %v867_v31 }
 0x211   : > { %885 = vst.msk [vmem:[%s210_s25 + $0x8] sm:$0xff] %vm883_vm6, %v880_v33 }
 0x213   : > { %v872_v48 = vpop.xlane.xlu0 %871  ;;  %v877_v50 = vpop.xlane.xlu1 %876 }
 0x214   : > { %v881_v52 = vsel %vm878_vm5, %v840_v40, %v872_v48  ;;  %v882_v42 = vsel %vm878_vm5, %v845_v46, %v877_v50 }
 0x215   : > { %886 = vst.msk [vmem:[%s210_s25 + $0x10] sm:$0xff] %vm883_vm6, %v881_v52  ;;  %887 = vst.msk [vmem:[%s210_s25 + $0x18] sm:$0xff] %vm883_vm6, %v882_v42 }
 0x216 PF: > { %s15_s15 = sadd.s32 1, %s1095_s15  }
 0x217   : > { %p12_p4 = scmp.ge.s32.totalorder %s15_s15, 4  }
 0x219   :  { %14 = sbr.rel (!%p12_p4) target bundleno = 1 (0x1), region = 77 }

// kernel: decoder_forward.11
= control target key start
LH: loop header
LB: loop body
LE: loop exit
PB: predicated region body
PF: predicated region fallthrough
CT: control target
= control target key end

     0   :  { %s438_s12 = smov 0   ;;  %s497_s0 = inlined_call_operand.vmem [shape: f32[2,32,289], index: 0, kind: input, shape index: {}]   ;;  %s498_s1 = inlined_call_operand.vmem [shape: f32[32,1], index: 1, kind: input, shape index: {}]   ;;  %s499_s2 = inlined_call_operand.vmem [shape: f32[32,1], index: 2, kind: input, shape index: {}]   ;;  %s500_s3 = inlined_call_operand.vmem [shape: bf16[2,32,289], index: 3, kind: output, shape index: {}]  }
   0x1 LB: > { %s371_s13 = sadd.s32 4294967295, %s415_s12   ;;  %p375_p0 = scmp.ge.s32.totalorder %s415_s12, 1  ;;  %s415_s12 = sphi %s438_s12, %s13_s12  }
   0x2   : > { %p137_p1 = scmp.lt.s32.totalorder %s415_s12, 3 }
   0x4   : > { %p138_p2 = pnand %p375_p0, %p137_p1 }
   0x5   : > { %p161_p3 = scmp.lt.s32.totalorder (!%p138_p2), %s371_s13, 1 }
   0x6   : > { %141 = sbr.rel (%p138_p2) target bundleno = 158 (0x9e), region = 32 }
   0xb   : > { %v185_v0 = vld [vmem:[%s498_s1 + $0x10] sm:$0xff]  ;;  %v183_v1 = vld [vmem:[%s498_s1] sm:$0xff]  ;;  %v417_v2 = vmov 0   ;;  %v186_v3 = vld [vmem:[%s498_s1 + $0x18] sm:$0xff]  ;;  %s502_s13 = smov (!%p161_p3, %s371_s13), 1  ;;  %vm308_vm0 = vcmask 265216  }
   0xc   : > { %408 = vset.pattern.permute.xlu1 %v417_v2  ;;  %407 = vset.pattern.permute.xlu0 %v417_v2  ;;  %v184_v4 = vld [vmem:[%s498_s1 + $0x8] sm:$0xff]  ;;  %v219_v6 = vld [vmem:[%s499_s2] sm:$0xff]  ;;  %v222_v7 = vld [vmem:[%s499_s2 + $0x18] sm:$0xff]  ;;  %s396_s30 = smul.u32 96, %s502_s13 }
   0xd   : > { %199 = vperm.xlu1 %408, %v185_v0   ;;  %189 = vperm.xlu0 %407, %v183_v1   ;;  %v220_v5 = vld [vmem:[%s499_s2 + $0x8] sm:$0xff]  ;;  %v221_v8 = vld [vmem:[%s499_s2 + $0x10] sm:$0xff]  ;;  %s397_s7 = smul.u32 48, %s502_s13 }
   0xe   : > { %s165_s6 = scalar_lea.vmem %s497_s0, %s396_s30 }
   0xf   : > { %v177_v11 = vld [vmem:[%s165_s6 + $0x30] sm:$0xff]  ;;  %v171_v12 = vld [vmem:[%s165_s6] sm:$0xff]  ;;  %v174_v15 = vld [vmem:[%s165_s6 + $0x18] sm:$0xff]  ;;  %s480_s10 = scalar_lea.vmem %s500_s3, %s397_s7 }
  0x10   : > { %v175_v16 = vld [vmem:[%s165_s6 + $0x20] sm:$0xff]  ;;  %v176_v17 = vld [vmem:[%s165_s6 + $0x28] sm:$0xff]  ;;  %v178_v18 = vld [vmem:[%s165_s6 + $0x38] sm:$0xff] }
  0x11   : > { %204 = vperm.xlu1 %408, %v186_v3   ;;  %194 = vperm.xlu0 %407, %v184_v4   ;;  %v172_v19 = vld [vmem:[%s165_s6 + $0x8] sm:$0xff]  ;;  %v173_v20 = vld [vmem:[%s165_s6 + $0x10] sm:$0xff]  ;;  %v179_v33 = vld [vmem:[%s165_s6 + $0x40] sm:$0xff] }
  0x12   : > { %v180_v22 = vld [vmem:[%s165_s6 + $0x48] sm:$0xff]  ;;  %v181_v23 = vld [vmem:[%s165_s6 + $0x50] sm:$0xff]  ;;  %v182_v34 = vld [vmem:[%s165_s6 + $0x58] sm:$0xff] }
  0x15   : > { %230 = vperm.xlu1 %408, %v220_v5   ;;  %225 = vperm.xlu0 %407, %v219_v6  }
  0x19   : > { %240 = vperm.xlu1 %408, %v222_v7   ;;  %235 = vperm.xlu0 %407, %v221_v8  }
  0x88   : > { %v200_v9 = vpop.permute.xlu1 %199  ;;  %v190_v10 = vpop.permute.xlu0 %189 }
  0x89   : > { %v207_v21 = vmul.f32 %v190_v10, %v171_v12  ;;  %v213_v27 = vmul.f32 %v200_v9, %v177_v11  ;;  %v214_v28 = vmul.f32 %v200_v9, %v178_v18  ;;  %v208_v29 = vmul.f32 %v190_v10, %v172_v19 }
  0x8a   : > { %v209_v30 = vmul.f32 %v190_v10, %v173_v20  ;;  %v215_v47 = vmul.f32 %v200_v9, %v179_v33 }
  0x8c   : > { %v205_v13 = vpop.permute.xlu1 %204  ;;  %v195_v14 = vpop.permute.xlu0 %194 }
  0x8d   : > { %v210_v24 = vmul.f32 %v195_v14, %v174_v15  ;;  %v211_v25 = vmul.f32 %v195_v14, %v175_v16  ;;  %v212_v26 = vmul.f32 %v195_v14, %v176_v17  ;;  %v216_v39 = vmul.f32 %v205_v13, %v180_v22 }
  0x8e   : > { %v217_v40 = vmul.f32 %v205_v13, %v181_v23  ;;  %v218_v48 = vmul.f32 %v205_v13, %v182_v34 }
  0x90   : > { %v231_v31 = vpop.permute.xlu1 %230  ;;  %v226_v32 = vpop.permute.xlu0 %225 }
  0x91   : > { %v246_v35 = vadd.f32 %v231_v31, %v210_v24  ;;  %v247_v36 = vadd.f32 %v231_v31, %v211_v25  ;;  %v248_v37 = vadd.f32 %v231_v31, %v212_v26  ;;  %v243_v38 = vadd.f32 %v226_v32, %v207_v21 }
  0x92   : > { %v244_v41 = vadd.f32 %v226_v32, %v208_v29  ;;  %v245_v42 = vadd.f32 %v226_v32, %v209_v30 }
  0x93   : > { %v258_v43 = vmax.f32 %v246_v35, 0.0  ;;  %v259_v44 = vmax.f32 %v247_v36, 0.0  ;;  %v260_v45 = vmax.f32 %v248_v37, 0.0  ;;  %v255_v46 = vmax.f32 %v243_v38, 0.0 }
  0x94   : > { %v256_v49 = vmax.f32 %v244_v41, 0.0  ;;  %v257_v50 = vmax.f32 %v245_v42, 0.0  ;;  %v241_v51 = vpop.permute.xlu1 %240  ;;  %v236_v52 = vpop.permute.xlu0 %235 }
  0x95   : > { %v390_v53 = vpack.c.bf16 %v259_v44, %v258_v43  ;;  %v391_v54 = vpack.c.bf16 %v260_v45, %v260_v45  ;;  %v252_v55 = vadd.f32 %v241_v51, %v216_v39  ;;  %v253_v56 = vadd.f32 %v241_v51, %v217_v40 }
  0x96   : > { %v388_v57 = vpack.c.bf16 %v256_v49, %v255_v46  ;;  %v389_v58 = vpack.c.bf16 %v257_v50, %v257_v50  ;;  %v254_v59 = vadd.f32 %v241_v51, %v218_v48  ;;  %v249_v60 = vadd.f32 %v236_v52, %v213_v27 }
  0x97   : > { %310 = vst [vmem:[%s480_s10 + $0xc] sm:$0xff] %v390_v53  ;;  %311 = vst.msk [vmem:[%s480_s10 + $0x14] sm:$0xf] %vm308_vm0, %v391_v54  ;;  %v264_v61 = vmax.f32 %v252_v55, 0.0  ;;  %v265_v62 = vmax.f32 %v253_v56, 0.0  ;;  %v250_v63 = vadd.f32 %v236_v52, %v214_v28  ;;  %v251_v0 = vadd.f32 %v236_v52, %v215_v47 }
  0x98   : > { %307 = vst [vmem:[%s480_s10] sm:$0xff] %v388_v57  ;;  %309 = vst.msk [vmem:[%s480_s10 + $0x8] sm:$0xf] %vm308_vm0, %v389_v58  ;;  %v266_v1 = vmax.f32 %v254_v59, 0.0  ;;  %v261_v2 = vmax.f32 %v249_v60, 0.0 }
  0x99   : > { %v394_v3 = vpack.c.bf16 %v265_v62, %v264_v61  ;;  %v262_v4 = vmax.f32 %v250_v63, 0.0  ;;  %v263_v5 = vmax.f32 %v251_v0, 0.0 }
  0x9a   : > { %v395_v6 = vpack.c.bf16 %v266_v1, %v266_v1 }
  0x9b   : > { %314 = vst [vmem:[%s480_s10 + $0x24] sm:$0xff] %v394_v3  ;;  %v392_v7 = vpack.c.bf16 %v262_v4, %v261_v2  ;;  %v393_v8 = vpack.c.bf16 %v263_v5, %v263_v5 }
  0x9c   : > { %315 = vst.msk [vmem:[%s480_s10 + $0x2c] sm:$0xf] %vm308_vm0, %v395_v6 }
  0x9d   : > { %312 = vst [vmem:[%s480_s10 + $0x18] sm:$0xff] %v392_v7  ;;  %313 = vst.msk [vmem:[%s480_s10 + $0x20] sm:$0xf] %vm308_vm0, %v393_v8 }
  0x9e PF: > { %s13_s12 = sadd.s32 1, %s415_s12  }
  0x9f   : > { %p10_p4 = scmp.ge.s32.totalorder %s13_s12, 4  }
  0xa1   :  { %12 = sbr.rel (!%p10_p4) target bundleno = 1 (0x1), region = 62 }

// kernel: decoder_forward.12
= control target key start
LH: loop header
LB: loop body
LE: loop exit
PB: predicated region body
PF: predicated region fallthrough
CT: control target
= control target key end

     0   :  { %s683_s15 = smov 0   ;;  %s732_s0 = inlined_call_operand.vmem [shape: bf16[2,8,1024], index: 0, kind: input, shape index: {}]   ;;  %s733_s1 = inlined_call_operand.vmem [shape: bf16[1,8,8], index: 1, kind: input, shape index: {}]   ;;  %s734_s2 = inlined_call_operand.vmem [shape: f32[1,1024], index: 2, kind: input, shape index: {}]   ;;  %s735_s3 = inlined_call_operand.vmem [shape: f32[2,8,1024], index: 3, kind: output, shape index: {0}]   ;;  %s736_s4 = inlined_call_operand.vmem [shape: f32[2,8,2], index: 4, kind: output, shape index: {1}]  }
   0x1 LB: > { %s602_s16 = sadd.s32 4294967295, %s655_s15   ;;  %p606_p0 = scmp.ge.s32.totalorder %s655_s15, 1  ;;  %s655_s15 = sphi %s683_s15, %s15_s15  }
   0x2   : > { %p165_p1 = scmp.lt.s32.totalorder %s655_s15, 3 }
   0x4   : > { %p166_p2 = pnand %p606_p0, %p165_p1 }
   0x5   : > { %p195_p3 = scmp.lt.s32.totalorder (!%p166_p2), %s602_s16, 1 }
   0x6   : > { %169 = sbr.rel (%p166_p2) target bundleno = 377 (0x179), region = 32 }
   0xb   : > { %v657_v0 = vmov 0   ;;  %s738_s16 = smov (!%p195_p3, %s602_s16), 1  ;;  %vm239_vm0 = vcmask 1043456   ;;  %v214_v15 = vld [vmem:[%s733_s1] sm:$0xf]  ;;  %vm235_vm1 = vcmask 64512   ;;  %v438_v18 = vlaneseq }
   0xc   : > { %296 = vmatprep.mubr.bf16.mxu0 %v657_v0  ;;  %337 = vmatprep.mubr.bf16.mxu1 %v657_v0  ;;  %s630_s17 = sshll.u32 %s738_s16, 5  ;;  %v436_v21 = vld [vmem:[%s734_s2] sm:$0xff]  ;;  %s631_s25 = sshll.u32 %s738_s16, 6  ;;  %vm512_vm2 = vcmask 7168   ;;  %vm514_vm3 = vcmask 15360  }
   0xd   : > { %s199_s20 = scalar_lea.vmem %s732_s0, %s630_s17  ;;  %v439_v19 = vshrl.u32 %v438_v18, 7  ;;  %s715_s28 = scalar_lea.vmem %s735_s3, %s631_s25 }
   0xe   : > { %v210_v1 = vld [vmem:[%s199_s20] sm:$0xff]  ;;  %v211_v2 = vld [vmem:[%s199_s20 + $0x8] sm:$0xff]  ;;  %v212_v3 = vld [vmem:[%s199_s20 + $0x10] sm:$0xff]  ;;  %s611_s29 = sshll.u32 %s738_s16, 3 }
   0xf   : > { %v613_v4 = vcombine.high %v210_v1, %v210_v1  ;;  %v615_v5 = vcombine.high %v211_v2, %v211_v2  ;;  %v612_v6 = vcombine.low %v210_v1, %v210_v1  ;;  %v614_v7 = vcombine.low %v211_v2, %v211_v2  ;;  %v213_v8 = vld [vmem:[%s199_s20 + $0x18] sm:$0xff]  ;;  %s208_s6 = scalar_lea.vmem %s736_s4, %s611_s29 }
  0x10   : > { %v617_v9 = vcombine.high %v212_v3, %v212_v3  ;;  %v616_v10 = vcombine.low %v212_v3, %v212_v3  ;;  %v619_v11 = vcombine.high %v213_v8, %v213_v8  ;;  %v618_v12 = vcombine.low %v213_v8, %v213_v8 }
  0x11   : > { %620 = vmatprep.subr.msk.bf16.mxu0 %vm239_vm0, %v613_v4  ;;  %622 = vmatprep.subr.msk.bf16.mxu1 %vm239_vm0, %v615_v5  ;;  %v241_v13 = vsel %vm239_vm0, %v612_v6, 0  ;;  %v247_v14 = vsel %vm239_vm0, %v614_v7, 0  ;;  %v440_v20 = vsub.s32 0, %v439_v19  ;;  %v448_v22 = vsub.s32 2, %v439_v19 }
  0x12   : > { %279 = vmatpush1.bf16.msra.mxu0 %v241_v13  ;;  %320 = vmatpush1.bf16.msra.mxu1 %v247_v14  ;;  %v253_v16 = vsel %vm239_vm0, %v616_v10, 0  ;;  %v259_v17 = vsel %vm239_vm0, %v618_v12, 0  ;;  %v444_v23 = vsub.s32 1, %v439_v19  ;;  %v452_v25 = vsub.s32 3, %v439_v19 }
  0x13   : > { %624 = vmatprep.subr.msk.bf16.mxu0 %vm239_vm0, %v617_v9  ;;  %626 = vmatprep.subr.msk.bf16.mxu1 %vm239_vm0, %v619_v11  ;;  %v441_v24 = vrot.slane %v436_v21, %v440_v20  ;;  %v449_v26 = vrot.slane %v436_v21, %v448_v22  ;;  %v456_v30 = vsub.s32 4, %v439_v19  ;;  %v464_v40 = vsub.s32 6, %v439_v19 }
  0x14   : > { %v445_v27 = vrot.slane %v436_v21, %v444_v23  ;;  %v453_v32 = vrot.slane %v436_v21, %v452_v25  ;;  %v460_v41 = vsub.s32 5, %v439_v19  ;;  %v468_v55 = vsub.s32 7, %v439_v19 }
  0x15   : > { %621 = vmatmul.mubr.msk.bf16.vlgmr.msra.gmra.mxu0 %vm235_vm1, %v214_v15  ;;  %623 = vmatmul.mubr.msk.bf16.vlgmr.msra.gmra.mxu1 %vm235_vm1, %v214_v15  ;;  %v457_v39 = vrot.slane %v436_v21, %v456_v30  ;;  %v465_v53 = vrot.slane %v436_v21, %v464_v40 }
  0x16   : > { %361 = vmatpush1.bf16.msra.mxu0 %v253_v16  ;;  %402 = vmatpush1.bf16.msra.mxu1 %v259_v17  ;;  %v461_v54 = vrot.slane %v436_v21, %v460_v41  ;;  %v469_v5 = vrot.slane %v436_v21, %v468_v55 }
  0x17   : > { %378 = vmatprep.mubr.bf16.mxu0 %v657_v0  ;;  %419 = vmatprep.mubr.bf16.mxu1 %v657_v0 }
  0x1d   : > { %625 = vmatmul.mubr.msk.bf16.vlgmr.msra.gmra.mxu0 %vm235_vm1, %v214_v15  ;;  %627 = vmatmul.mubr.msk.bf16.vlgmr.msra.gmra.mxu1 %vm235_vm1, %v214_v15 }
  0xd5   : > { %v298_v28 = vpop.f32.mrf.mxu0  ;;  %v339_v29 = vpop.f32.mrf.mxu1 }
  0xd6   : > { %428 = vst [vmem:[%s715_s28] sm:$0xff] %v298_v28  ;;  %v478_v31 = vmul.f32 %v441_v24, %v298_v28  ;;  %430 = vst [vmem:[%s715_s28 + $0x10] sm:$0xff] %v339_v29  ;;  %v480_v35 = vmul.f32 %v449_v26, %v339_v29 }
  0xd7   : > { %v300_v33 = vpop.f32.mrf.mxu0  ;;  %v341_v34 = vpop.f32.mrf.mxu1 }
  0xd8   : > { %429 = vst [vmem:[%s715_s28 + $0x8] sm:$0xff] %v300_v33  ;;  %v479_v36 = vmul.f32 %v445_v27, %v300_v33  ;;  %431 = vst [vmem:[%s715_s28 + $0x18] sm:$0xff] %v341_v34  ;;  %v495_v42 = vmul.f32 %v478_v31, %v298_v28  ;;  %v481_v45 = vmul.f32 %v453_v32, %v341_v34 }
  0xd9   : > { %v302_v37 = vpop.f32.mrf.mxu0  ;;  %v343_v38 = vpop.f32.mrf.mxu1  ;;  %v497_v48 = vmul.f32 %v480_v35, %v339_v29 }
  0xda   : > { %v486_v43 = vadd.f32 %v479_v36, %v478_v31  ;;  %v496_v44 = vmul.f32 %v479_v36, %v300_v33  ;;  %v498_v57 = vmul.f32 %v481_v45, %v341_v34 }
  0xdb   : > { %v303_v46 = vpop.f32.mrf.mxu0  ;;  %v344_v47 = vpop.f32.mrf.mxu1 }
  0xdc   : > { %v503_v49 = vadd.f32 %v496_v44, %v495_v42  ;;  %v487_v50 = vadd.f32 %v486_v43, %v480_v35 }
  0xdd   : > { %v380_v51 = vpop.f32.mrf.mxu0  ;;  %v421_v52 = vpop.f32.mrf.mxu1 }
  0xde   : > { %v488_v56 = vadd.f32 %v487_v50, %v481_v45  ;;  %v504_v58 = vadd.f32 %v503_v49, %v497_v48  ;;  %432 = vst [vmem:[%s715_s28 + $0x20] sm:$0xff] %v380_v51  ;;  %v482_v59 = vmul.f32 %v457_v39, %v380_v51  ;;  %434 = vst [vmem:[%s715_s28 + $0x30] sm:$0xff] %v421_v52 }
  0xdf   : > { %v382_v60 = vpop.f32.mrf.mxu0  ;;  %v423_v61 = vpop.f32.mrf.mxu1  ;;  %v484_v1 = vmul.f32 %v465_v53, %v421_v52 }
  0xe0   : > { %v505_v62 = vadd.f32 %v504_v58, %v498_v57  ;;  %v489_v63 = vadd.f32 %v488_v56, %v482_v59  ;;  %v499_v0 = vmul.f32 %v482_v59, %v380_v51  ;;  %433 = vst [vmem:[%s715_s28 + $0x28] sm:$0xff] %v382_v60  ;;  %435 = vst [vmem:[%s715_s28 + $0x38] sm:$0xff] %v423_v61 }
  0xe1   : > { %v483_v2 = vmul.f32 %v461_v54, %v382_v60  ;;  %v384_v3 = vpop.f32.mrf.mxu0  ;;  %v425_v4 = vpop.f32.mrf.mxu1  ;;  %v501_v11 = vmul.f32 %v484_v1, %v421_v52  ;;  %v485_v12 = vmul.f32 %v469_v5, %v423_v61 }
  0xe2   : > { %v506_v6 = vadd.f32 %v505_v62, %v499_v0 }
  0xe3   : > { %v500_v7 = vmul.f32 %v483_v2, %v382_v60  ;;  %v385_v8 = vpop.f32.mrf.mxu0  ;;  %v426_v9 = vpop.f32.mrf.mxu1  ;;  %v490_v10 = vadd.f32 %v489_v63, %v483_v2  ;;  %v502_v17 = vmul.f32 %v485_v12, %v423_v61 }
  0xe5   : > { %v491_v13 = vadd.f32 %v490_v10, %v484_v1  ;;  %v507_v14 = vadd.f32 %v506_v6, %v500_v7 }
  0xe7   : > { %v492_v15 = vadd.f32 %v491_v13, %v485_v12  ;;  %v508_v16 = vadd.f32 %v507_v14, %v501_v11 }
  0xe9   : > { %493 = vadd.xlane.f32.xlu0 %v492_v15  ;;  %v509_v18 = vadd.f32 %v508_v16, %v502_v17 }
  0xed   : > { %510 = vadd.xlane.f32.xlu0 %v509_v18 }
 0x172   : > { %v494_v19 = vpop.xlane.xlu0 %493 }
 0x176   : > { %v511_v20 = vpop.xlane.xlu0 %510 }
 0x177   : > { %v513_v21 = vsel %vm512_vm2, %v494_v19, %v511_v20 }
 0x178   : > { %515 = vst.msk [vmem:[%s208_s6] sm:$0xff] %vm514_vm3, %v513_v21 }
 0x179 PF: > { %s15_s15 = sadd.s32 1, %s655_s15  }
 0x17a   : > { %p12_p4 = scmp.ge.s32.totalorder %s15_s15, 4  }
 0x17c   :  { %14 = sbr.rel (!%p12_p4) target bundleno = 1 (0x1), region = 74 }

// kernel: decoder_forward.13
= control target key start
LH: loop header
LB: loop body
LE: loop exit
PB: predicated region body
PF: predicated region fallthrough
CT: control target
= control target key end

     0   :  { %s366_s12 = smov 0   ;;  %s393_s0 = inlined_call_operand.vmem [shape: f32[2,8,1024], index: 0, kind: input, shape index: {}]   ;;  %s394_s1 = inlined_call_operand.vmem [shape: f32[8,1], index: 1, kind: input, shape index: {}]   ;;  %s395_s2 = inlined_call_operand.vmem [shape: f32[8,1], index: 2, kind: input, shape index: {}]   ;;  %s396_s3 = inlined_call_operand.vmem [shape: bf16[2,8,1024], index: 3, kind: output, shape index: {}]  }
   0x1 LB: > { %s306_s13 = sadd.s32 4294967295, %s343_s12   ;;  %p310_p0 = scmp.ge.s32.totalorder %s343_s12, 1  ;;  %s343_s12 = sphi %s366_s12, %s13_s12  }
   0x2   : > { %p137_p1 = scmp.lt.s32.totalorder %s343_s12, 3 }
   0x4   : > { %p138_p2 = pnand %p310_p0, %p137_p1 }
   0x5   : > { %p161_p3 = scmp.lt.s32.totalorder (!%p138_p2), %s306_s13, 1 }
   0x6   : > { %141 = sbr.rel (%p138_p2) target bundleno = 149 (0x95), region = 32 }
   0xb   : > { %v179_v0 = vld [vmem:[%s394_s1] sm:$0xff]  ;;  %v345_v1 = vmov 0   ;;  %s398_s13 = smov (!%p161_p3, %s306_s13), 1 }
   0xc   : > { %336 = vset.pattern.permute.xlu0 %v345_v1  ;;  %v193_v2 = vld [vmem:[%s395_s2] sm:$0xff]  ;;  %s321_s18 = sshll.u32 %s398_s13, 6  ;;  %s322_s22 = sshll.u32 %s398_s13, 5 }
   0xd   : > { %182 = vperm.xlu0 %336, %v179_v0   ;;  %s165_s21 = scalar_lea.vmem %s393_s0, %s321_s18  ;;  %s170_s25 = scalar_lea.vmem %s396_s3, %s322_s22 }
   0xe   : > { %v171_v3 = vld [vmem:[%s165_s21] sm:$0xff]  ;;  %v172_v4 = vld [vmem:[%s165_s21 + $0x8] sm:$0xff]  ;;  %v173_v6 = vld [vmem:[%s165_s21 + $0x10] sm:$0xff] }
   0xf   : > { %v174_v7 = vld [vmem:[%s165_s21 + $0x18] sm:$0xff]  ;;  %v175_v8 = vld [vmem:[%s165_s21 + $0x20] sm:$0xff]  ;;  %v176_v9 = vld [vmem:[%s165_s21 + $0x28] sm:$0xff] }
  0x10   : > { %v177_v10 = vld [vmem:[%s165_s21 + $0x30] sm:$0xff]  ;;  %v178_v11 = vld [vmem:[%s165_s21 + $0x38] sm:$0xff] }
  0x11   : > { %196 = vperm.xlu0 %336, %v193_v2  }
  0x88   : > { %v183_v5 = vpop.permute.xlu0 %182 }
  0x89   : > { %v185_v12 = vmul.f32 %v183_v5, %v171_v3  ;;  %v186_v13 = vmul.f32 %v183_v5, %v172_v4  ;;  %v187_v14 = vmul.f32 %v183_v5, %v173_v6  ;;  %v188_v15 = vmul.f32 %v183_v5, %v174_v7 }
  0x8a   : > { %v189_v17 = vmul.f32 %v183_v5, %v175_v8  ;;  %v190_v18 = vmul.f32 %v183_v5, %v176_v9  ;;  %v191_v19 = vmul.f32 %v183_v5, %v177_v10  ;;  %v192_v20 = vmul.f32 %v183_v5, %v178_v11 }
  0x8c   : > { %v197_v16 = vpop.permute.xlu0 %196 }
  0x8d   : > { %v199_v21 = vadd.f32 %v197_v16, %v185_v12  ;;  %v200_v22 = vadd.f32 %v197_v16, %v186_v13  ;;  %v201_v23 = vadd.f32 %v197_v16, %v187_v14  ;;  %v202_v24 = vadd.f32 %v197_v16, %v188_v15 }
  0x8e   : > { %v203_v25 = vadd.f32 %v197_v16, %v189_v17  ;;  %v204_v26 = vadd.f32 %v197_v16, %v190_v18  ;;  %v205_v27 = vadd.f32 %v197_v16, %v191_v19  ;;  %v206_v28 = vadd.f32 %v197_v16, %v192_v20 }
  0x8f   : > { %v207_v29 = vmax.f32 %v199_v21, 0.0  ;;  %v208_v30 = vmax.f32 %v200_v22, 0.0  ;;  %v209_v31 = vmax.f32 %v201_v23, 0.0  ;;  %v210_v32 = vmax.f32 %v202_v24, 0.0 }
  0x90   : > { %v211_v33 = vmax.f32 %v203_v25, 0.0  ;;  %v212_v34 = vmax.f32 %v204_v26, 0.0  ;;  %v213_v35 = vmax.f32 %v205_v27, 0.0  ;;  %v214_v36 = vmax.f32 %v206_v28, 0.0 }
  0x91   : > { %v323_v37 = vpack.c.bf16 %v208_v30, %v207_v29  ;;  %v324_v38 = vpack.c.bf16 %v210_v32, %v209_v31 }
  0x92   : > { %v325_v39 = vpack.c.bf16 %v212_v34, %v211_v33  ;;  %v326_v40 = vpack.c.bf16 %v214_v36, %v213_v35 }
  0x93   : > { %247 = vst [vmem:[%s170_s25] sm:$0xff] %v323_v37  ;;  %248 = vst [vmem:[%s170_s25 + $0x8] sm:$0xff] %v324_v38 }
  0x94   : > { %249 = vst [vmem:[%s170_s25 + $0x10] sm:$0xff] %v325_v39  ;;  %250 = vst [vmem:[%s170_s25 + $0x18] sm:$0xff] %v326_v40 }
  0x95 PF: > { %s13_s12 = sadd.s32 1, %s343_s12  }
  0x96   : > { %p10_p4 = scmp.ge.s32.totalorder %s13_s12, 4  }
  0x98   :  { %12 = sbr.rel (!%p10_p4) target bundleno = 1 (0x1), region = 62 }

// kernel: tile.26
= control target key start
LH: loop header
LB: loop body
LE: loop exit
PB: predicated region body
PF: predicated region fallthrough
CT: control target
= control target key end

     0   :  { %s22_s0 = inlined_call_operand.vmem [shape: f32[4], index: 0, kind: input, shape index: {}]   ;;  %s23_s1 = inlined_call_operand.vmem [shape: f32[2,4], index: 1, kind: output, shape index: {}]  }
   0x1   :  { %v4_v0 = vld [vmem:[%s22_s0] ss:$0 sm:$0xff] }
   0x2   :  { %5 = vst [vmem:[%s23_s1] sm:$0x3] %v4_v0 }

// kernel: tile.2
= control target key start
LH: loop header
LB: loop body
LE: loop exit
PB: predicated region body
PF: predicated region fallthrough
CT: control target
= control target key end

     0   :  { %s35_s8 = smov 125   ;;  %vm8_vm0 = vcmask 7168   ;;  %s36_s11 = smov 126   ;;  %s62_s0 = inlined_call_operand.vmem [shape: f32[2,4], index: 0, kind: input, shape index: {}]   ;;  %s63_s1 = inlined_call_operand.vmem [shape: f32[8,1], index: 1, kind: output, shape index: {}]  }
   0x1   :  { %v5_v0 = vld [vmem:[%s62_s0] sm:$0x3]  ;;  %s34_s0 = smov 127  }
   0x2   :  { %6 = vst [vmem:[#allocation0] sm:$0x3] %v5_v0 }
   0x9   :  { %v10_v1 = vld [vmem:[#allocation0] sm:$0x3]  }
   0xa   :  { %v22_v2 = vld [vmem:[#allocation0] sm:$0x3]   ;;  %11 = vrot.lane.b32.xlu0 %v10_v1, %s34_s0 }
   0xb   :  { %23 = vrot.lane.b32.xlu1 %v22_v2, %s35_s8  ;;  %v7_v3 = vld [vmem:[#allocation0] sm:$0x3]  }
   0xc   :  { %v16_v4 = vld [vmem:[#allocation0] sm:$0x3]   ;;  %9 = vst.msk [vmem:[%s63_s1] ss:$4 sm:$0x3] %vm8_vm0, %v7_v3  }
   0xe   :  { %17 = vrot.lane.b32.xlu0 %v16_v4, %s36_s11 }
  0x7c   :  { %v12_v5 = vpop.permute.xlu0 %11  }
  0x7d   :  { %v24_v6 = vpop.permute.xlu1 %23   ;;  %28 = vst.msk [vmem:[%s63_s1 + $0x1] ss:$4 sm:$0x3] %vm8_vm0, %v12_v5  }
  0x7e   :  { %30 = vst.msk [vmem:[%s63_s1 + $0x3] ss:$4 sm:$0x3] %vm8_vm0, %v24_v6  }
  0x80   :  { %v18_v7 = vpop.permute.xlu0 %17  }
  0x81   :  { %29 = vst.msk [vmem:[%s63_s1 + $0x2] ss:$4 sm:$0x3] %vm8_vm0, %v18_v7  }

// kernel: decoder_forward.15
= control target key start
LH: loop header
LB: loop body
LE: loop exit
PB: predicated region body
PF: predicated region fallthrough
CT: control target
= control target key end

     0   :  { %s446_s9 = smov 0   ;;  %s509_s0 = inlined_call_operand.vmem [shape: f32[8,4096], index: 0, kind: input, shape index: {}]   ;;  %s510_s1 = inlined_call_operand.vmem [shape: f32[8,1], index: 1, kind: input, shape index: {}]   ;;  %s511_s2 = inlined_call_operand.vmem [shape: f32[8,4096], index: 2, kind: output, shape index: {}]  }
   0x1 LB: > { %s337_s10 = sadd.s32 4294967295, %s428_s9   ;;  %p341_p0 = scmp.ge.s32.totalorder %s428_s9, 1  ;;  %s428_s9 = sphi %s446_s9, %s12_s9  }
   0x2   : > { %p113_p1 = scmp.lt.s32.totalorder %s428_s9, 3 }
   0x4   : > { %p114_p2 = pnand %p341_p0, %p113_p1 }
   0x5   : > { %s342_s13 = sshll.u32 (!%p114_p2), %s337_s10, 4 }
   0x6   : > { %117 = sbr.rel (%p114_p2) target bundleno = 189 (0xbd), region = 28  ;;  %p136_p3 = scmp.lt.s32.totalorder (!%p114_p2), %s342_s13, 31 }
   0xb   : > { %v163_v0 = vld [vmem:[%s510_s1] sm:$0xff]  ;;  %v430_v1 = vmov 0   ;;  %s513_s13 = smov (!%p136_p3, %s342_s13), 31 }
   0xc   : > { %357 = vset.pattern.permute.xlu0 %v430_v1  ;;  %s343_s14 = sshll.u32 %s513_s13, 3 }
   0xd   : > { %166 = vperm.xlu0 %357, %v163_v0   ;;  %s465_s17 = scalar_lea.vmem %s509_s0, %s343_s14  ;;  %s488_s20 = scalar_lea.vmem %s511_s2, %s343_s14 }
   0xe   : > { %v147_v2 = vld [vmem:[%s465_s17] sm:$0xff]  ;;  %v148_v3 = vld [vmem:[%s465_s17 + $0x8] sm:$0xff]  ;;  %v149_v4 = vld [vmem:[%s465_s17 + $0x10] sm:$0xff] }
   0xf   : > { %v150_v5 = vld [vmem:[%s465_s17 + $0x18] sm:$0xff]  ;;  %v151_v7 = vld [vmem:[%s465_s17 + $0x20] sm:$0xff]  ;;  %v152_v8 = vld [vmem:[%s465_s17 + $0x28] sm:$0xff] }
  0x10   : > { %v153_v9 = vld [vmem:[%s465_s17 + $0x30] sm:$0xff]  ;;  %v154_v14 = vld [vmem:[%s465_s17 + $0x38] sm:$0xff]  ;;  %v155_v16 = vld [vmem:[%s465_s17 + $0x40] sm:$0xff] }
  0x11   : > { %v156_v19 = vld [vmem:[%s465_s17 + $0x48] sm:$0xff]  ;;  %v157_v23 = vld [vmem:[%s465_s17 + $0x50] sm:$0xff]  ;;  %v158_v26 = vld [vmem:[%s465_s17 + $0x58] sm:$0xff] }
  0x12   : > { %v159_v29 = vld [vmem:[%s465_s17 + $0x60] sm:$0xff]  ;;  %v160_v30 = vld [vmem:[%s465_s17 + $0x68] sm:$0xff]  ;;  %v161_v38 = vld [vmem:[%s465_s17 + $0x70] sm:$0xff] }
  0x13   : > { %v162_v42 = vld [vmem:[%s465_s17 + $0x78] sm:$0xff] }
  0x88   : > { %v167_v6 = vpop.permute.xlu0 %166 }
  0x89   : > { %v169_v10 = vadd.f32 %v167_v6, %v147_v2  ;;  %v170_v11 = vadd.f32 %v167_v6, %v148_v3  ;;  %v171_v12 = vadd.f32 %v167_v6, %v149_v4  ;;  %v172_v13 = vadd.f32 %v167_v6, %v150_v5 }
  0x8a   : > { %v173_v15 = vadd.f32 %v167_v6, %v151_v7  ;;  %v174_v17 = vadd.f32 %v167_v6, %v152_v8  ;;  %v175_v18 = vadd.f32 %v167_v6, %v153_v9  ;;  %v176_v24 = vadd.f32 %v167_v6, %v154_v14 }
  0x8b   : > { %v185_v20 = vsub.f32 0.0, %v169_v10  ;;  %v186_v21 = vsub.f32 0.0, %v170_v11  ;;  %v187_v22 = vsub.f32 0.0, %v171_v12  ;;  %v188_v25 = vsub.f32 0.0, %v172_v13 }
  0x8c   : > { %v177_v27 = vadd.f32 %v167_v6, %v155_v16  ;;  %v189_v28 = vsub.f32 0.0, %v173_v15  ;;  %v178_v31 = vadd.f32 %v167_v6, %v156_v19  ;;  %v190_v32 = vsub.f32 0.0, %v174_v17 }
  0x8d   : > { %v191_v33 = vsub.f32 0.0, %v175_v18  ;;  %v179_v34 = vadd.f32 %v167_v6, %v157_v23  ;;  %v201_v35 = vmul.f32 1.442695, %v185_v20  ;;  %v203_v36 = vmul.f32 1.442695, %v186_v21 }
  0x8e   : > { %v205_v37 = vmul.f32 1.442695, %v187_v22  ;;  %v180_v39 = vadd.f32 %v167_v6, %v158_v26  ;;  %v192_v40 = vsub.f32 0.0, %v176_v24  ;;  %v207_v41 = vmul.f32 1.442695, %v188_v25 }
  0x8f   : > { %v181_v43 = vadd.f32 %v167_v6, %v159_v29  ;;  %v193_v44 = vsub.f32 0.0, %v177_v27  ;;  %358 = vpow2.f32 %v201_v35  ;;  %v209_v45 = vmul.f32 1.442695, %v189_v28 }
  0x90   : > { %v182_v46 = vadd.f32 %v167_v6, %v160_v30  ;;  %v194_v47 = vsub.f32 0.0, %v178_v31  ;;  %360 = vpow2.f32 %v203_v36  ;;  %v211_v48 = vmul.f32 1.442695, %v190_v32 }
  0x91   : > { %v183_v49 = vadd.f32 %v167_v6, %v161_v38  ;;  %v195_v50 = vsub.f32 0.0, %v179_v34  ;;  %362 = vpow2.f32 %v205_v37  ;;  %v213_v51 = vmul.f32 1.442695, %v191_v33 }
  0x92   : > { %v184_v52 = vadd.f32 %v167_v6, %v162_v42  ;;  %v196_v53 = vsub.f32 0.0, %v180_v39  ;;  %364 = vpow2.f32 %v207_v41  ;;  %v215_v54 = vmul.f32 1.442695, %v192_v40 }
  0x93   : > { %v197_v55 = vsub.f32 0.0, %v181_v43  ;;  %366 = vpow2.f32 %v209_v45  ;;  %v217_v56 = vmul.f32 1.442695, %v193_v44  ;;  %v198_v57 = vsub.f32 0.0, %v182_v46 }
  0x94   : > { %368 = vpow2.f32 %v211_v48  ;;  %v219_v58 = vmul.f32 1.442695, %v194_v47  ;;  %v199_v59 = vsub.f32 0.0, %v183_v49  ;;  %v221_v60 = vmul.f32 1.442695, %v195_v50 }
  0x95   : > { %370 = vpow2.f32 %v213_v51  ;;  %v200_v61 = vsub.f32 0.0, %v184_v52  ;;  %v223_v62 = vmul.f32 1.442695, %v196_v53  ;;  %v225_v63 = vmul.f32 1.442695, %v197_v55 }
  0x96   : > { %372 = vpow2.f32 %v215_v54  ;;  %v227_v0 = vmul.f32 1.442695, %v198_v57  ;;  %v229_v1 = vmul.f32 1.442695, %v199_v59 }
  0x97   : > { %374 = vpow2.f32 %v217_v56  ;;  %v231_v2 = vmul.f32 1.442695, %v200_v61 }
  0x98   : > { %376 = vpow2.f32 %v219_v58 }
  0x99   : > { %378 = vpow2.f32 %v221_v60 }
  0x9a   : > { %380 = vpow2.f32 %v223_v62 }
  0x9b   : > { %382 = vpow2.f32 %v225_v63 }
  0x9c   : > { %v359_v3 = vpop.eup %358  ;;  %384 = vpow2.f32 %v227_v0 }
  0x9d   : > { %v361_v4 = vpop.eup %360  ;;  %386 = vpow2.f32 %v229_v1  ;;  %v233_v5 = vadd.f32 1.0, %v359_v3 }
  0x9e   : > { %v363_v6 = vpop.eup %362  ;;  %388 = vpow2.f32 %v231_v2  ;;  %v234_v7 = vadd.f32 1.0, %v361_v4 }
  0x9f   : > { %v365_v8 = vpop.eup %364  ;;  %v235_v9 = vadd.f32 1.0, %v363_v6  ;;  %390 = vrcp.f32 %v233_v5 }
  0xa0   : > { %v367_v10 = vpop.eup %366  ;;  %v236_v11 = vadd.f32 1.0, %v365_v8  ;;  %392 = vrcp.f32 %v234_v7 }
  0xa1   : > { %v369_v12 = vpop.eup %368  ;;  %v237_v13 = vadd.f32 1.0, %v367_v10  ;;  %394 = vrcp.f32 %v235_v9 }
  0xa2   : > { %v371_v14 = vpop.eup %370  ;;  %v238_v15 = vadd.f32 1.0, %v369_v12  ;;  %396 = vrcp.f32 %v236_v11 }
  0xa3   : > { %v373_v16 = vpop.eup %372  ;;  %v239_v17 = vadd.f32 1.0, %v371_v14  ;;  %398 = vrcp.f32 %v237_v13 }
  0xa4   : > { %v375_v18 = vpop.eup %374  ;;  %v240_v19 = vadd.f32 1.0, %v373_v16  ;;  %400 = vrcp.f32 %v238_v15 }
  0xa5   : > { %v377_v20 = vpop.eup %376  ;;  %v241_v21 = vadd.f32 1.0, %v375_v18  ;;  %402 = vrcp.f32 %v239_v17 }
  0xa6   : > { %v379_v22 = vpop.eup %378  ;;  %v242_v23 = vadd.f32 1.0, %v377_v20  ;;  %404 = vrcp.f32 %v240_v19 }
  0xa7   : > { %v381_v24 = vpop.eup %380  ;;  %v243_v25 = vadd.f32 1.0, %v379_v22  ;;  %406 = vrcp.f32 %v241_v21 }
  0xa8   : > { %v383_v26 = vpop.eup %382  ;;  %v244_v27 = vadd.f32 1.0, %v381_v24  ;;  %408 = vrcp.f32 %v242_v23 }
  0xa9   : > { %v385_v28 = vpop.eup %384  ;;  %v245_v29 = vadd.f32 1.0, %v383_v26  ;;  %410 = vrcp.f32 %v243_v25 }
  0xaa   : > { %v387_v30 = vpop.eup %386  ;;  %v246_v31 = vadd.f32 1.0, %v385_v28  ;;  %412 = vrcp.f32 %v244_v27 }
  0xab   : > { %v389_v32 = vpop.eup %388  ;;  %v247_v33 = vadd.f32 1.0, %v387_v30  ;;  %414 = vrcp.f32 %v245_v29 }
  0xac   : > { %v391_v34 = vpop.eup %390  ;;  %v248_v35 = vadd.f32 1.0, %v389_v32  ;;  %416 = vrcp.f32 %v246_v31 }
  0xad   : > { %v393_v36 = vpop.eup %392  ;;  %418 = vrcp.f32 %v247_v33  ;;  %265 = vst [vmem:[%s488_s20] sm:$0xff] %v391_v34 }
  0xae   : > { %v395_v37 = vpop.eup %394  ;;  %420 = vrcp.f32 %v248_v35  ;;  %266 = vst [vmem:[%s488_s20 + $0x8] sm:$0xff] %v393_v36 }
  0xaf   : > { %v397_v38 = vpop.eup %396  ;;  %267 = vst [vmem:[%s488_s20 + $0x10] sm:$0xff] %v395_v37 }
  0xb0   : > { %v399_v39 = vpop.eup %398  ;;  %268 = vst [vmem:[%s488_s20 + $0x18] sm:$0xff] %v397_v38 }
  0xb1   : > { %v401_v40 = vpop.eup %400  ;;  %269 = vst [vmem:[%s488_s20 + $0x20] sm:$0xff] %v399_v39 }
  0xb2   : > { %v403_v41 = vpop.eup %402  ;;  %270 = vst [vmem:[%s488_s20 + $0x28] sm:$0xff] %v401_v40 }
  0xb3   : > { %v405_v42 = vpop.eup %404  ;;  %271 = vst [vmem:[%s488_s20 + $0x30] sm:$0xff] %v403_v41 }
  0xb4   : > { %v407_v43 = vpop.eup %406  ;;  %272 = vst [vmem:[%s488_s20 + $0x38] sm:$0xff] %v405_v42 }
  0xb5   : > { %v409_v44 = vpop.eup %408  ;;  %273 = vst [vmem:[%s488_s20 + $0x40] sm:$0xff] %v407_v43 }
  0xb6   : > { %v411_v45 = vpop.eup %410  ;;  %274 = vst [vmem:[%s488_s20 + $0x48] sm:$0xff] %v409_v44 }
  0xb7   : > { %v413_v46 = vpop.eup %412  ;;  %275 = vst [vmem:[%s488_s20 + $0x50] sm:$0xff] %v411_v45 }
  0xb8   : > { %v415_v47 = vpop.eup %414  ;;  %276 = vst [vmem:[%s488_s20 + $0x58] sm:$0xff] %v413_v46 }
  0xb9   : > { %v417_v48 = vpop.eup %416  ;;  %277 = vst [vmem:[%s488_s20 + $0x60] sm:$0xff] %v415_v47 }
  0xba   : > { %v419_v49 = vpop.eup %418  ;;  %278 = vst [vmem:[%s488_s20 + $0x68] sm:$0xff] %v417_v48 }
  0xbb   : > { %v421_v50 = vpop.eup %420  ;;  %279 = vst [vmem:[%s488_s20 + $0x70] sm:$0xff] %v419_v49 }
  0xbc   : > { %280 = vst [vmem:[%s488_s20 + $0x78] sm:$0xff] %v421_v50 }
  0xbd PF: > { %s12_s9 = sadd.s32 1, %s428_s9  }
  0xbe   : > { %p9_p4 = scmp.ge.s32.totalorder %s12_s9, 4  }
  0xc0   :  { %11 = sbr.rel (!%p9_p4) target bundleno = 1 (0x1), region = 58 }

// kernel: decoder_forward.14
= control target key start
LH: loop header
LB: loop body
LE: loop exit
PB: predicated region body
PF: predicated region fallthrough
CT: control target
= control target key end

     0   :  { %10 = vsyncpa [#allocation3], 0  ;;  %s3913_s0 = inlined_call_operand.vmem [shape: bf16[2,8,1226], index: 0, kind: input, shape index: {}]   ;;  %s3914_s1 = inlined_call_operand.vmem [shape: bf16[9,4,8], index: 1, kind: input, shape index: {}]   ;;  %s3915_s2 = inlined_call_operand.vmem [shape: f32[1,1156], index: 2, kind: input, shape index: {}]   ;;  %s3916_s3 = inlined_call_operand.vmem [shape: f32[2,4,1156], index: 3, kind: output, shape index: {0}]   ;;  %s3917_s4 = inlined_call_operand.hbm [shape: f32[2,4,2], index: 4, kind: output, shape index: {1}]  }
   0x1   :  { %12 = vsyncpa [#allocation3 + $0x1], 0  ;;  %s3240_s15 = smov 0   ;;  %s3242_s16 = smov 0  }
   0x2   :  { %s3244_s17 = smov 0   ;;  %s3246_s18 = smov 0  }
   0x3 LB: > { %s3261_s19 = sadd.s32 4294967295, %s3203_s18   ;;  %s2965_s20 = sadd.s32 4294967294, %s3203_s18   ;;  %s3203_s18 = sphi %s3246_s18, %s3923_s18   ;;  %s3199_s17 = sphi %s3244_s17, %s3922_s17   ;;  %s3195_s16 = sphi %s3242_s16, %s3921_s16   ;;  %s3191_s15 = sphi %s3240_s15, %s3920_s15  }
   0x4   : > { %s3265_s21 = sadd.s32 1, %s3203_s18   ;;  %s119_s22 = sadd.s32 1, %s3199_s17 }
   0x5   : > { %s116_s23 = ssub.s32 %s3203_s18, %s3265_s21  ;;  %p129_p0 = scmp.ne.s32.totalorder %s3199_s17, %s3195_s16 }
   0x6   : > { %p117_p1 = scmp.eq.s32.totalorder %s116_s23, 0  ;;  %p130_p2 = scmp.eq.s32.totalorder %s3261_s19, 1 }
   0x7   : > { %p135_p3 = scmp.ne.s32.totalorder %s3195_s16, %s3191_s15  ;;  %p136_p4 = scmp.eq.s32.totalorder %s2965_s20, 1 }
   0x8   : > { %s3276_s24 = scalar_select %p117_p1, %s3199_s17, %s119_s22  }
   0x9   : > { %p3278_p5 = por %p130_p2, %p129_p0  ;;  %p3282_p6 = por %p136_p4, %p135_p3 }
   0xa   : > { %p2968_p7 = scmp.ge.s32.totalorder %s3203_s18, 1  ;;  %p168_p8 = scmp.lt.s32.totalorder %s3203_s18, 3 }
   0xc   : > { %p169_p9 = pnand %p2968_p7, %p168_p8 }
   0xd   : > { %p199_p10 = scmp.lt.s32.totalorder (!%p169_p9), %s3261_s19, 1  ;;  %s3206_s6 = smov (!%p169_p9), 127  }
   0xe   : > { %172 = sbr.rel (%p169_p9) target bundleno = 684 (0x2ac), region = 32  ;;  %s3207_s7 = smov (!%p169_p9), 126  }
   0xf   : > { %s3208_s8 = smov (!%p169_p9), 94   ;;  %s3209_s9 = smov (!%p169_p9), 93  }
  0x10   : > { %s3210_s10 = smov (!%p169_p9), 92   ;;  %s3211_s11 = smov (!%p169_p9), 60  }
  0x11   : > { %s3212_s12 = smov (!%p169_p9), 59   ;;  %s3213_s23 = smov (!%p169_p9), 58  }
  0x13   : > { %s3290_s27 = scalar_select %p199_p10, %s3261_s19, 1  ;;  %v3205_v0 = vmov 0   ;;  %vm263_vm0 = vcmask 1039360   ;;  %vm277_vm1 = vcmask 1043456   ;;  %v2972_v23 = vld [vmem:[%s3914_s1 + $0x2] sm:$0x3] }
  0x14   : > { %340 = vmatprep.mubr.bf16.mxu0 %v3205_v0  ;;  %381 = vmatprep.mubr.bf16.mxu1 %v3205_v0  ;;  %vm273_vm2 = vcmask 64512   ;;  %v215_v47 = vld [vmem:[%s3914_s1] sm:$0x3]  ;;  %vm773_vm3 = vcmask 1031168   ;;  %vm1053_vm4 = vcmask 769024   ;;  %vm1333_vm5 = vcmask 760832  }
  0x15   : > { %s3084_s28 = smul.u32 40, %s3290_s27  ;;  %vm1613_vm6 = vcmask 752640   ;;  %vm1893_vm7 = vcmask 490496   ;;  %vm2173_vm8 = vcmask 482304   ;;  %vm2453_vm9 = vcmask 474112   ;;  %s196_s27 = sand.u32 1, %s3195_s16  }
  0x16   : > { %vm2735_vm10 = vcmask 31748   ;;  %vm2819_vm12 = vcmask 27648   ;;  %vm2855_vm13 = vcmask 7168   ;;  %vm2857_vm14 = vcmask 11264   ;;  %s2865_s20 = scalar_lea.sflag [#allocation3], %s196_s27 }
  0x17   : > { %s203_s5 = scalar_lea.vmem %s3913_s0, %s3084_s28  ;;  %vm2736_vm11 = vmor %vm2735_vm10, %vm277_vm1 }
  0x18   : > { %v211_v1 = vld [vmem:[%s203_s5 + $0x8] sm:$0xff]  ;;  %v210_v2 = vld [vmem:[%s203_s5] sm:$0xff]  ;;  %v212_v7 = vld [vmem:[%s203_s5 + $0x10] sm:$0xff] }
  0x19   : > { %v3300_v3 = vcombine.low %v211_v1, %v211_v1  ;;  %v3302_v4 = vcombine.low %v210_v2, %v210_v2  ;;  %v3306_v5 = vcombine.high %v211_v1, %v211_v1  ;;  %v3308_v6 = vcombine.high %v210_v2, %v210_v2  ;;  %v213_v10 = vld [vmem:[%s203_s5 + $0x18] sm:$0xff]  ;;  %v214_v13 = vld [vmem:[%s203_s5 + $0x20] sm:$0xff] }
  0x1a   : > { %v3312_v8 = vcombine.high %v212_v7, %v212_v7  ;;  %v3314_v9 = vcombine.low %v212_v7, %v212_v7  ;;  %v3318_v11 = vcombine.high %v213_v10, %v213_v10  ;;  %v3320_v12 = vcombine.low %v213_v10, %v213_v10  ;;  %v3003_v7 = vld [vmem:[%s3914_s1 + $0x4] sm:$0x3] }
  0x1b   : > { %247 = vrot.lane.b32.xlu1 %v3300_v3, %s3206_s6  ;;  %243 = vrot.lane.b32.xlu0 %v3302_v4, %s3206_s6  ;;  %v3324_v14 = vcombine.high %v214_v13, %v214_v13  ;;  %v3326_v15 = vcombine.low %v214_v13, %v214_v13  ;;  %v517_v41 = vsel %vm277_vm1, %v3302_v4, 0  ;;  %v523_v44 = vsel %vm277_vm1, %v3300_v3, 0 }
  0x1c   : > { %v529_v48 = vsel %vm277_vm1, %v3314_v9, 0  ;;  %v535_v51 = vsel %vm277_vm1, %v3320_v12, 0 }
  0x1d   : > { %v541_v55 = vsel %vm277_vm1, %v3326_v15, 0 }
  0x1f   : > { %249 = vrot.lane.b32.xlu1 %v3306_v5, %s3206_s6  ;;  %245 = vrot.lane.b32.xlu0 %v3308_v6, %s3206_s6 }
  0x23   : > { %253 = vrot.lane.b32.xlu1 %v3312_v8, %s3206_s6  ;;  %251 = vrot.lane.b32.xlu0 %v3314_v9, %s3206_s6 }
  0x27   : > { %257 = vrot.lane.b32.xlu1 %v3318_v11, %s3206_s6  ;;  %255 = vrot.lane.b32.xlu0 %v3320_v12, %s3206_s6 }
  0x2b   : > { %261 = vrot.lane.b32.xlu1 %v3324_v14, %s3206_s6  ;;  %259 = vrot.lane.b32.xlu0 %v3326_v15, %s3206_s6 }
  0x2f   : > { %753 = vrot.lane.b32.xlu0 %v3302_v4, %s3207_s7  ;;  %755 = vrot.lane.b32.xlu1 %v3308_v6, %s3207_s7 }
  0x33   : > { %757 = vrot.lane.b32.xlu0 %v3300_v3, %s3207_s7  ;;  %759 = vrot.lane.b32.xlu1 %v3306_v5, %s3207_s7 }
  0x37   : > { %761 = vrot.lane.b32.xlu0 %v3314_v9, %s3207_s7  ;;  %763 = vrot.lane.b32.xlu1 %v3312_v8, %s3207_s7 }
  0x3b   : > { %765 = vrot.lane.b32.xlu0 %v3320_v12, %s3207_s7  ;;  %767 = vrot.lane.b32.xlu1 %v3318_v11, %s3207_s7 }
  0x3f   : > { %769 = vrot.lane.b32.xlu0 %v3326_v15, %s3207_s7  ;;  %771 = vrot.lane.b32.xlu1 %v3324_v14, %s3207_s7 }
  0x43   : > { %1033 = vrot.lane.b32.xlu0 %v3302_v4, %s3208_s8  ;;  %1035 = vrot.lane.b32.xlu1 %v3308_v6, %s3208_s8 }
  0x47   : > { %1037 = vrot.lane.b32.xlu0 %v3300_v3, %s3208_s8  ;;  %1039 = vrot.lane.b32.xlu1 %v3306_v5, %s3208_s8 }
  0x4b   : > { %1041 = vrot.lane.b32.xlu0 %v3314_v9, %s3208_s8  ;;  %1043 = vrot.lane.b32.xlu1 %v3312_v8, %s3208_s8 }
  0x4f   : > { %1045 = vrot.lane.b32.xlu0 %v3320_v12, %s3208_s8  ;;  %1047 = vrot.lane.b32.xlu1 %v3318_v11, %s3208_s8 }
  0x53   : > { %1049 = vrot.lane.b32.xlu0 %v3326_v15, %s3208_s8  ;;  %1051 = vrot.lane.b32.xlu1 %v3324_v14, %s3208_s8  ;;  %s3829_s8 = scalar_lea.vmem %s3916_s3, %s3084_s28  ;;  %s2969_s28 = sshll.u32 %s196_s27, 2 }
  0x57   : > { %1313 = vrot.lane.b32.xlu0 %v3302_v4, %s3209_s9  ;;  %1315 = vrot.lane.b32.xlu1 %v3308_v6, %s3209_s9 }
  0x5b   : > { %1317 = vrot.lane.b32.xlu0 %v3300_v3, %s3209_s9  ;;  %1319 = vrot.lane.b32.xlu1 %v3306_v5, %s3209_s9 }
  0x5f   : > { %1321 = vrot.lane.b32.xlu0 %v3314_v9, %s3209_s9  ;;  %1323 = vrot.lane.b32.xlu1 %v3312_v8, %s3209_s9 }
  0x63   : > { %1325 = vrot.lane.b32.xlu0 %v3320_v12, %s3209_s9  ;;  %1327 = vrot.lane.b32.xlu1 %v3318_v11, %s3209_s9 }
  0x67   : > { %1329 = vrot.lane.b32.xlu0 %v3326_v15, %s3209_s9  ;;  %1331 = vrot.lane.b32.xlu1 %v3324_v14, %s3209_s9  ;;  %s3081_s9 = sshll.u32 %s3261_s19, 6  ;;  %s3214_s19 = smov [#allocation2]  }
  0x68   : > { %s3878_s14 = scalar_lea.hbm %s3917_s4, %s3081_s9 }
  0x6b   : > { %1593 = vrot.lane.b32.xlu0 %v3302_v4, %s3210_s10  ;;  %1595 = vrot.lane.b32.xlu1 %v3308_v6, %s3210_s10 }
  0x6f   : > { %1597 = vrot.lane.b32.xlu0 %v3300_v3, %s3210_s10  ;;  %1599 = vrot.lane.b32.xlu1 %v3306_v5, %s3210_s10 }
  0x73   : > { %1601 = vrot.lane.b32.xlu0 %v3314_v9, %s3210_s10  ;;  %1603 = vrot.lane.b32.xlu1 %v3312_v8, %s3210_s10 }
  0x77   : > { %1605 = vrot.lane.b32.xlu0 %v3320_v12, %s3210_s10  ;;  %1607 = vrot.lane.b32.xlu1 %v3318_v11, %s3210_s10 }
  0x7b   : > { %1609 = vrot.lane.b32.xlu0 %v3326_v15, %s3210_s10  ;;  %1611 = vrot.lane.b32.xlu1 %v3324_v14, %s3210_s10  ;;  %s198_s10 = scalar_lea.vmem [#allocation2], %s2969_s28 }
  0x7f   : > { %1873 = vrot.lane.b32.xlu0 %v3302_v4, %s3211_s11  ;;  %1875 = vrot.lane.b32.xlu1 %v3308_v6, %s3211_s11 }
  0x83   : > { %1877 = vrot.lane.b32.xlu0 %v3300_v3, %s3211_s11  ;;  %1879 = vrot.lane.b32.xlu1 %v3306_v5, %s3211_s11 }
  0x87   : > { %1881 = vrot.lane.b32.xlu0 %v3314_v9, %s3211_s11  ;;  %1883 = vrot.lane.b32.xlu1 %v3312_v8, %s3211_s11 }
  0x8b   : > { %1885 = vrot.lane.b32.xlu0 %v3320_v12, %s3211_s11  ;;  %1887 = vrot.lane.b32.xlu1 %v3318_v11, %s3211_s11 }
  0x8d   : > { %v248_v16 = vpop.permute.xlu1 %247  ;;  %v244_v17 = vpop.permute.xlu0 %243 }
  0x8f   : > { %1889 = vrot.lane.b32.xlu0 %v3326_v15, %s3211_s11  ;;  %1891 = vrot.lane.b32.xlu1 %v3324_v14, %s3211_s11  ;;  %s2881_s11 = sshll.u32 %s198_s10, 4  ;;  %s2882_s11 = int_to_ptr.vmem [resolvable:$true] %s2881_s11 }
  0x90   : > { %s3143_s22 = scalar_lea.vmem %s2882_s11, 64 }
  0x91   : > { %v250_v18 = vpop.permute.xlu1 %249  ;;  %v246_v19 = vpop.permute.xlu0 %245  ;;  %p3144_p11 = scmp.ne.s32.totalorder %s2882_s11, %s3143_s22 }
  0x92   : > { %v265_v20 = vsel %vm263_vm0, %v246_v19, %v248_v16  ;;  %v264_v21 = vsel %vm263_vm0, %v244_v17, %v246_v19  ;;  %v266_v24 = vsel %vm263_vm0, %v248_v16, %v250_v18 }
  0x93   : > { %2983 = vmatprep.subr.msk.bf16.mxu0 %vm277_vm1, %v265_v20  ;;  %v279_v22 = vsel %vm277_vm1, %v264_v21, 0  ;;  %2153 = vrot.lane.b32.xlu0 %v3302_v4, %s3212_s12  ;;  %v285_v28 = vsel %vm277_vm1, %v266_v24, 0  ;;  %p3145_p12 = pnand %p3144_p11, %p3278_p5 }
  0x94   : > { %323 = vmatpush1.bf16.msra.mxu0 %v279_v22  ;;  %2155 = vrot.lane.b32.xlu1 %v3308_v6, %s3212_s12 }
  0x95   : > { %v254_v25 = vpop.permute.xlu1 %253  ;;  %v252_v26 = vpop.permute.xlu0 %251  ;;  %p3146_p13 = pneg %p3145_p12 }
  0x96   : > { %v267_v27 = vsel %vm263_vm0, %v250_v18, %v252_v26  ;;  %v268_v29 = vsel %vm263_vm0, %v252_v26, %v254_v25 }
  0x97   : > { %2984 = vmatmul.mubr.msk.bf16.vlgmr.msra.gmra.mxu0 %vm273_vm2, %v2972_v23  ;;  %2985 = vmatprep.subr.msk.bf16.mxu1 %vm277_vm1, %v267_v27  ;;  %v291_v33 = vsel %vm277_vm1, %v268_v29, 0 }
  0x98   : > { %364 = vmatpush1.bf16.msra.mxu1 %v285_v28  ;;  %422 = vmatprep.mubr.bf16.mxu0 %v3205_v0 }
  0x99   : > { %v258_v30 = vpop.permute.xlu1 %257  ;;  %v256_v31 = vpop.permute.xlu0 %255  ;;  %2157 = vrot.lane.b32.xlu0 %v3300_v3, %s3212_s12  ;;  %2159 = vrot.lane.b32.xlu1 %v3306_v5, %s3212_s12 }
  0x9a   : > { %v269_v32 = vsel %vm263_vm0, %v254_v25, %v256_v31  ;;  %v270_v34 = vsel %vm263_vm0, %v256_v31, %v258_v30 }
  0x9b   : > { %2986 = vmatmul.mubr.msk.bf16.vlgmr.msra.gmra.mxu1 %vm273_vm2, %v2972_v23  ;;  %2987 = vmatprep.subr.msk.bf16.mxu0 %vm277_vm1, %v269_v32  ;;  %v297_v39 = vsel %vm277_vm1, %v270_v34, 0  ;;  %v3014_v32 = vld [vmem:[%s3914_s1 + $0x6] sm:$0x3] }
  0x9c   : > { %405 = vmatpush1.bf16.msra.mxu0 %v291_v33  ;;  %463 = vmatprep.mubr.bf16.mxu1 %v3205_v0 }
  0x9d   : > { %v262_v35 = vpop.permute.xlu1 %261  ;;  %v260_v36 = vpop.permute.xlu0 %259  ;;  %2161 = vrot.lane.b32.xlu0 %v3314_v9, %s3212_s12  ;;  %2163 = vrot.lane.b32.xlu1 %v3312_v8, %s3212_s12 }
  0x9e   : > { %v271_v37 = vsel %vm263_vm0, %v258_v30, %v260_v36  ;;  %v272_v38 = vsel %vm263_vm0, %v260_v36, %v262_v35  ;;  %2991 = vmatprep.subr.msk.bf16.mxu0 %vm277_vm1, %v262_v35 }
  0x9f   : > { %v303_v40 = vsel %vm277_vm1, %v272_v38, 0  ;;  %2988 = vmatmul.mubr.msk.bf16.vlgmr.msra.gmra.mxu0 %vm273_vm2, %v2972_v23  ;;  %2989 = vmatprep.subr.msk.bf16.mxu1 %vm277_vm1, %v271_v37 }
  0xa0   : > { %446 = vmatpush1.bf16.msra.mxu1 %v297_v39  ;;  %487 = vmatpush1.bf16.msra.mxu0 %v303_v40 }
  0xa1   : > { %504 = vmatprep.mubr.bf16.mxu0 %v3205_v0  ;;  %2993 = vmatprep.subr.msk.bf16.mxu1 %vm277_vm1, %v3308_v6  ;;  %v754_v42 = vpop.permute.xlu0 %753  ;;  %v756_v43 = vpop.permute.xlu1 %755 }
  0xa2   : > { %2995 = vmatprep.subr.msk.bf16.mxu0 %vm277_vm1, %v3306_v5  ;;  %2165 = vrot.lane.b32.xlu0 %v3320_v12, %s3212_s12  ;;  %v774_v58 = vsel %vm773_vm3, %v754_v42, %v756_v43 }
  0xa3   : > { %2990 = vmatmul.mubr.msk.bf16.vlgmr.msra.gmra.mxu1 %vm273_vm2, %v2972_v23  ;;  %2167 = vrot.lane.b32.xlu1 %v3318_v11, %s3212_s12  ;;  %v787_v60 = vsel %vm277_vm1, %v774_v58, 0 }
  0xa4   : > { %561 = vmatpush1.bf16.msra.mxu1 %v517_v41  ;;  %578 = vmatprep.mubr.bf16.mxu1 %v3205_v0 }
  0xa5   : > { %2997 = vmatprep.subr.msk.bf16.mxu1 %vm277_vm1, %v3312_v8  ;;  %v758_v45 = vpop.permute.xlu0 %757  ;;  %v760_v46 = vpop.permute.xlu1 %759 }
  0xa6   : > { %2169 = vrot.lane.b32.xlu0 %v3326_v15, %s3212_s12  ;;  %v775_v54 = vsel %vm773_vm3, %v756_v43, %v758_v45  ;;  %v776_v63 = vsel %vm773_vm3, %v758_v45, %v760_v46 }
  0xa7   : > { %2992 = vmatmul.mubr.msk.bf16.vlgmr.msra.gmra.mxu0 %vm273_vm2, %v2972_v23  ;;  %2171 = vrot.lane.b32.xlu1 %v3324_v14, %s3212_s12  ;;  %v793_v2 = vsel %vm277_vm1, %v776_v63, 0 }
  0xa8   : > { %602 = vmatpush1.bf16.msra.mxu0 %v523_v44  ;;  %619 = vmatprep.mubr.bf16.mxu0 %v3205_v0 }
  0xa9   : > { %2999 = vmatprep.subr.msk.bf16.mxu0 %vm277_vm1, %v3318_v11  ;;  %v762_v49 = vpop.permute.xlu0 %761  ;;  %v764_v50 = vpop.permute.xlu1 %763 }
  0xaa   : > { %2433 = vrot.lane.b32.xlu0 %v3302_v4, %s3213_s23  ;;  %v777_v59 = vsel %vm773_vm3, %v760_v46, %v762_v49 }
  0xab   : > { %2994 = vmatmul.mubr.msk.bf16.vlgmr.msra.gmra.mxu1 %vm273_vm2, %v215_v47  ;;  %2435 = vrot.lane.b32.xlu1 %v3308_v6, %s3213_s23 }
  0xac   : > { %643 = vmatpush1.bf16.msra.mxu1 %v529_v48  ;;  %660 = vmatprep.mubr.bf16.mxu1 %v3205_v0 }
  0xad   : > { %3001 = vmatprep.subr.msk.bf16.mxu1 %vm277_vm1, %v3324_v14  ;;  %v766_v52 = vpop.permute.xlu0 %765  ;;  %v768_v53 = vpop.permute.xlu1 %767 }
  0xae   : > { %2437 = vrot.lane.b32.xlu0 %v3300_v3, %s3213_s23  ;;  %v779_v1 = vsel %vm773_vm3, %v764_v50, %v766_v52 }
  0xaf   : > { %2996 = vmatmul.mubr.msk.bf16.vlgmr.msra.gmra.mxu0 %vm273_vm2, %v215_v47  ;;  %2439 = vrot.lane.b32.xlu1 %v3306_v5, %s3213_s23  ;;  %v778_v5 = vsel %vm773_vm3, %v762_v49, %v764_v50 }
  0xb0   : > { %684 = vmatpush1.bf16.msra.mxu0 %v535_v51  ;;  %701 = vmatprep.mubr.bf16.mxu0 %v3205_v0 }
  0xb1   : > { %3004 = vmatprep.subr.msk.bf16.mxu0 %vm277_vm1, %v775_v54  ;;  %v770_v56 = vpop.permute.xlu0 %769  ;;  %v772_v57 = vpop.permute.xlu1 %771 }
  0xb2   : > { %2441 = vrot.lane.b32.xlu0 %v3314_v9, %s3213_s23  ;;  %v781_v6 = vsel %vm773_vm3, %v768_v53, %v770_v56 }
  0xb3   : > { %2998 = vmatmul.mubr.msk.bf16.vlgmr.msra.gmra.mxu1 %vm273_vm2, %v215_v47  ;;  %2443 = vrot.lane.b32.xlu1 %v3312_v8, %s3213_s23  ;;  %v799_v8 = vsel %vm277_vm1, %v778_v5, 0 }
  0xb4   : > { %725 = vmatpush1.bf16.msra.mxu1 %v541_v55  ;;  %742 = vmatprep.mubr.bf16.mxu1 %v3205_v0 }
  0xb5   : > { %3006 = vmatprep.subr.msk.bf16.mxu1 %vm277_vm1, %v777_v59  ;;  %v1034_v61 = vpop.permute.xlu0 %1033  ;;  %v1036_v62 = vpop.permute.xlu1 %1035 }
  0xb6   : > { %2445 = vrot.lane.b32.xlu0 %v3320_v12, %s3213_s23  ;;  %v1054_v20 = vsel %vm1053_vm4, %v1034_v61, %v1036_v62 }
  0xb7   : > { %3000 = vmatmul.mubr.msk.bf16.vlgmr.msra.gmra.mxu0 %vm273_vm2, %v215_v47  ;;  %2447 = vrot.lane.b32.xlu1 %v3318_v11, %s3213_s23  ;;  %v780_v11 = vsel %vm773_vm3, %v766_v52, %v768_v53  ;;  %v1067_v22 = vsel %vm277_vm1, %v1054_v20, 0 }
  0xb8   : > { %831 = vmatpush1.bf16.msra.mxu0 %v787_v60  ;;  %848 = vmatprep.mubr.bf16.mxu0 %v3205_v0  ;;  %v805_v12 = vsel %vm277_vm1, %v780_v11, 0 }
  0xb9   : > { %3008 = vmatprep.subr.msk.bf16.mxu0 %vm277_vm1, %v779_v1  ;;  %v1038_v3 = vpop.permute.xlu0 %1037  ;;  %v1040_v4 = vpop.permute.xlu1 %1039 }
  0xba   : > { %2449 = vrot.lane.b32.xlu0 %v3326_v15, %s3213_s23  ;;  %v782_v15 = vsel %vm773_vm3, %v770_v56, %v772_v57  ;;  %v1055_v16 = vsel %vm1053_vm4, %v1036_v62, %v1038_v3  ;;  %v1056_v25 = vsel %vm1053_vm4, %v1038_v3, %v1040_v4 }
  0xbb   : > { %3002 = vmatmul.mubr.msk.bf16.vlgmr.msra.gmra.mxu1 %vm273_vm2, %v215_v47  ;;  %2451 = vrot.lane.b32.xlu1 %v3324_v14, %s3213_s23  ;;  %v811_v17 = vsel %vm277_vm1, %v782_v15, 0  ;;  %v1073_v27 = vsel %vm277_vm1, %v1056_v25, 0  ;;  %s3147_s23 = sshll.u32 %s3214_s19, 4  ;;  %s3148_s23 = int_to_ptr.vmem [resolvable:$false] %s3147_s23 }
  0xbc   : > { %872 = vmatpush1.bf16.msra.mxu1 %v793_v2  ;;  %889 = vmatprep.mubr.bf16.mxu1 %v3205_v0  ;;  %s3149_s29 = scalar_lea.vmem %s3148_s23, 128  ;;  %p3150_p0 = scmp.lt.s32.totalorder %s2882_s11, %s3148_s23 }
  0xbd   : > { %3010 = vmatprep.subr.msk.bf16.mxu1 %vm277_vm1, %v781_v6  ;;  %v1042_v9 = vpop.permute.xlu0 %1041  ;;  %v1044_v10 = vpop.permute.xlu1 %1043  ;;  %p3151_p1 = scmp.lt.s32.totalorder %s3149_s29, %s3143_s22 }
  0xbe   : > { %v1057_v21 = vsel %vm1053_vm4, %v1040_v4, %v1042_v9  ;;  %v1058_v30 = vsel %vm1053_vm4, %v1042_v9, %v1044_v10 }
  0xbf   : > { %3005 = vmatmul.mubr.msk.bf16.vlgmr.msra.gmra.mxu0 %vm273_vm2, %v3003_v7  ;;  %v1079_v33 = vsel %vm277_vm1, %v1058_v30, 0  ;;  %p3152_p2 = por %p3151_p1, %p3150_p0 }
  0xc0   : > { %913 = vmatpush1.bf16.msra.mxu0 %v799_v8  ;;  %930 = vmatprep.mubr.bf16.mxu0 %v3205_v0 }
  0xc1   : > { %3012 = vmatprep.subr.msk.bf16.mxu0 %vm277_vm1, %v772_v57  ;;  %v1046_v13 = vpop.permute.xlu0 %1045  ;;  %v1048_v14 = vpop.permute.xlu1 %1047  ;;  %v3025_v57 = vld [vmem:[%s3914_s1 + $0x8] sm:$0x3]  ;;  %p3153_p3 = pnand %p3152_p2, %p3146_p13 }
  0xc2   : > { %v1059_v26 = vsel %vm1053_vm4, %v1044_v10, %v1046_v13  ;;  %v1060_v36 = vsel %vm1053_vm4, %v1046_v13, %v1048_v14 }
  0xc3   : > { %3007 = vmatmul.mubr.msk.bf16.vlgmr.msra.gmra.mxu1 %vm273_vm2, %v3003_v7  ;;  %v1085_v37 = vsel %vm277_vm1, %v1060_v36, 0 }
  0xc4   : > { %954 = vmatpush1.bf16.msra.mxu1 %v805_v12  ;;  %971 = vmatprep.mubr.bf16.mxu1 %v3205_v0 }
  0xc5   : > { %3015 = vmatprep.subr.msk.bf16.mxu1 %vm277_vm1, %v1055_v16  ;;  %v1050_v18 = vpop.permute.xlu0 %1049  ;;  %v1052_v19 = vpop.permute.xlu1 %1051 }
  0xc6   : > { %v1061_v31 = vsel %vm1053_vm4, %v1048_v14, %v1050_v18  ;;  %v1062_v40 = vsel %vm1053_vm4, %v1050_v18, %v1052_v19 }
  0xc7   : > { %3009 = vmatmul.mubr.msk.bf16.vlgmr.msra.gmra.mxu0 %vm273_vm2, %v3003_v7  ;;  %v1091_v42 = vsel %vm277_vm1, %v1062_v40, 0 }
  0xc8   : > { %995 = vmatpush1.bf16.msra.mxu0 %v811_v17  ;;  %1012 = vmatprep.mubr.bf16.mxu0 %v3205_v0 }
  0xc9   : > { %3017 = vmatprep.subr.msk.bf16.mxu0 %vm277_vm1, %v1057_v21  ;;  %v1314_v23 = vpop.permute.xlu0 %1313  ;;  %v1316_v24 = vpop.permute.xlu1 %1315 }
  0xca   : > { %v1334_v45 = vsel %vm1333_vm5, %v1314_v23, %v1316_v24 }
  0xcb   : > { %3011 = vmatmul.mubr.msk.bf16.vlgmr.msra.gmra.mxu1 %vm273_vm2, %v3003_v7  ;;  %v1347_v47 = vsel %vm277_vm1, %v1334_v45, 0 }
  0xcc   : > { %1111 = vmatpush1.bf16.msra.mxu1 %v1067_v22  ;;  %1128 = vmatprep.mubr.bf16.mxu1 %v3205_v0 }
  0xcd   : > { %3019 = vmatprep.subr.msk.bf16.mxu1 %vm277_vm1, %v1059_v26  ;;  %v1318_v28 = vpop.permute.xlu0 %1317  ;;  %v1320_v29 = vpop.permute.xlu1 %1319 }
  0xce   : > { %v1335_v41 = vsel %vm1333_vm5, %v1316_v24, %v1318_v28  ;;  %v1336_v50 = vsel %vm1333_vm5, %v1318_v28, %v1320_v29 }
  0xcf   : > { %3013 = vmatmul.mubr.msk.bf16.vlgmr.msra.gmra.mxu0 %vm273_vm2, %v3003_v7  ;;  %v1353_v52 = vsel %vm277_vm1, %v1336_v50, 0 }
  0xd0   : > { %1152 = vmatpush1.bf16.msra.mxu0 %v1073_v27  ;;  %1169 = vmatprep.mubr.bf16.mxu0 %v3205_v0 }
  0xd1   : > { %3021 = vmatprep.subr.msk.bf16.mxu0 %vm277_vm1, %v1061_v31  ;;  %v1322_v34 = vpop.permute.xlu0 %1321  ;;  %v1324_v35 = vpop.permute.xlu1 %1323 }
  0xd2   : > { %v1337_v46 = vsel %vm1333_vm5, %v1320_v29, %v1322_v34  ;;  %v1338_v55 = vsel %vm1333_vm5, %v1322_v34, %v1324_v35 }
  0xd3   : > { %3016 = vmatmul.mubr.msk.bf16.vlgmr.msra.gmra.mxu1 %vm273_vm2, %v3014_v32  ;;  %v1359_v58 = vsel %vm277_vm1, %v1338_v55, 0 }
  0xd4   : > { %1193 = vmatpush1.bf16.msra.mxu1 %v1079_v33  ;;  %1210 = vmatprep.mubr.bf16.mxu1 %v3205_v0 }
  0xd5   : > { %3023 = vmatprep.subr.msk.bf16.mxu1 %vm277_vm1, %v1052_v19  ;;  %v1326_v38 = vpop.permute.xlu0 %1325  ;;  %v1328_v39 = vpop.permute.xlu1 %1327  ;;  %v3036_v19 = vld [vmem:[%s3914_s1 + $0xa] sm:$0x3] }
  0xd6   : > { %v1339_v51 = vsel %vm1333_vm5, %v1324_v35, %v1326_v38  ;;  %v1340_v61 = vsel %vm1333_vm5, %v1326_v38, %v1328_v39 }
  0xd7   : > { %3018 = vmatmul.mubr.msk.bf16.vlgmr.msra.gmra.mxu0 %vm273_vm2, %v3014_v32  ;;  %v1365_v62 = vsel %vm277_vm1, %v1340_v61, 0 }
  0xd8   : > { %1234 = vmatpush1.bf16.msra.mxu0 %v1085_v37  ;;  %1251 = vmatprep.mubr.bf16.mxu0 %v3205_v0 }
  0xd9   : > { %3026 = vmatprep.subr.msk.bf16.mxu0 %vm277_vm1, %v1335_v41  ;;  %v1330_v43 = vpop.permute.xlu0 %1329  ;;  %v1332_v44 = vpop.permute.xlu1 %1331 }
  0xda   : > { %v1341_v56 = vsel %vm1333_vm5, %v1328_v39, %v1330_v43  ;;  %v1342_v2 = vsel %vm1333_vm5, %v1330_v43, %v1332_v44 }
  0xdb   : > { %3020 = vmatmul.mubr.msk.bf16.vlgmr.msra.gmra.mxu1 %vm273_vm2, %v3014_v32  ;;  %v1371_v4 = vsel %vm277_vm1, %v1342_v2, 0 }
  0xdc   : > { %1275 = vmatpush1.bf16.msra.mxu1 %v1091_v42  ;;  %1292 = vmatprep.mubr.bf16.mxu1 %v3205_v0 }
  0xdd   : > { %3028 = vmatprep.subr.msk.bf16.mxu1 %vm277_vm1, %v1337_v46  ;;  %v1594_v48 = vpop.permute.xlu0 %1593  ;;  %v1596_v49 = vpop.permute.xlu1 %1595 }
  0xde   : > { %v1614_v7 = vsel %vm1613_vm6, %v1594_v48, %v1596_v49 }
  0xdf   : > { %3022 = vmatmul.mubr.msk.bf16.vlgmr.msra.gmra.mxu0 %vm273_vm2, %v3014_v32  ;;  %v1627_v9 = vsel %vm277_vm1, %v1614_v7, 0 }
  0xe0   : > { %1391 = vmatpush1.bf16.msra.mxu0 %v1347_v47  ;;  %1408 = vmatprep.mubr.bf16.mxu0 %v3205_v0 }
  0xe1   : > { %3030 = vmatprep.subr.msk.bf16.mxu0 %vm277_vm1, %v1339_v51  ;;  %v1598_v53 = vpop.permute.xlu0 %1597  ;;  %v1600_v54 = vpop.permute.xlu1 %1599 }
  0xe2   : > { %v1615_v3 = vsel %vm1613_vm6, %v1596_v49, %v1598_v53  ;;  %v1616_v12 = vsel %vm1613_vm6, %v1598_v53, %v1600_v54 }
  0xe3   : > { %3024 = vmatmul.mubr.msk.bf16.vlgmr.msra.gmra.mxu1 %vm273_vm2, %v3014_v32  ;;  %v1633_v14 = vsel %vm277_vm1, %v1616_v12, 0 }
  0xe4   : > { %1432 = vmatpush1.bf16.msra.mxu1 %v1353_v52  ;;  %1449 = vmatprep.mubr.bf16.mxu1 %v3205_v0 }
  0xe5   : > { %3032 = vmatprep.subr.msk.bf16.mxu1 %vm277_vm1, %v1341_v56  ;;  %v1602_v59 = vpop.permute.xlu0 %1601  ;;  %v1604_v60 = vpop.permute.xlu1 %1603 }
  0xe6   : > { %v1617_v8 = vsel %vm1613_vm6, %v1600_v54, %v1602_v59  ;;  %v1618_v17 = vsel %vm1613_vm6, %v1602_v59, %v1604_v60 }
  0xe7   : > { %3027 = vmatmul.mubr.msk.bf16.vlgmr.msra.gmra.mxu0 %vm273_vm2, %v3025_v57  ;;  %v1639_v20 = vsel %vm277_vm1, %v1618_v17, 0 }
  0xe8   : > { %1473 = vmatpush1.bf16.msra.mxu0 %v1359_v58  ;;  %1490 = vmatprep.mubr.bf16.mxu0 %v3205_v0 }
  0xe9   : > { %3034 = vmatprep.subr.msk.bf16.mxu0 %vm277_vm1, %v1332_v44  ;;  %v1606_v63 = vpop.permute.xlu0 %1605  ;;  %v1608_v1 = vpop.permute.xlu1 %1607  ;;  %v3047_v44 = vld [vmem:[%s3914_s1 + $0xc] sm:$0x3] }
  0xea   : > { %v1619_v13 = vsel %vm1613_vm6, %v1604_v60, %v1606_v63  ;;  %v1620_v23 = vsel %vm1613_vm6, %v1606_v63, %v1608_v1 }
  0xeb   : > { %3029 = vmatmul.mubr.msk.bf16.vlgmr.msra.gmra.mxu1 %vm273_vm2, %v3025_v57  ;;  %v1645_v24 = vsel %vm277_vm1, %v1620_v23, 0 }
  0xec   : > { %1514 = vmatpush1.bf16.msra.mxu1 %v1365_v62  ;;  %1531 = vmatprep.mubr.bf16.mxu1 %v3205_v0 }
  0xed   : > { %3037 = vmatprep.subr.msk.bf16.mxu1 %vm277_vm1, %v1615_v3  ;;  %v1610_v5 = vpop.permute.xlu0 %1609  ;;  %v1612_v6 = vpop.permute.xlu1 %1611 }
  0xee   : > { %v1621_v18 = vsel %vm1613_vm6, %v1608_v1, %v1610_v5  ;;  %v1622_v27 = vsel %vm1613_vm6, %v1610_v5, %v1612_v6 }
  0xef   : > { %3031 = vmatmul.mubr.msk.bf16.vlgmr.msra.gmra.mxu0 %vm273_vm2, %v3025_v57  ;;  %v1651_v29 = vsel %vm277_vm1, %v1622_v27, 0 }
  0xf0   : > { %1555 = vmatpush1.bf16.msra.mxu0 %v1371_v4  ;;  %1572 = vmatprep.mubr.bf16.mxu0 %v3205_v0  ;;  %v3058_v4 = vld [vmem:[%s3914_s1 + $0xe] sm:$0x3] }
  0xf1   : > { %3039 = vmatprep.subr.msk.bf16.mxu0 %vm277_vm1, %v1617_v8  ;;  %v1874_v10 = vpop.permute.xlu0 %1873  ;;  %v1876_v11 = vpop.permute.xlu1 %1875 }
  0xf2   : > { %v1894_v32 = vsel %vm1893_vm7, %v1874_v10, %v1876_v11 }
  0xf3   : > { %3033 = vmatmul.mubr.msk.bf16.vlgmr.msra.gmra.mxu1 %vm273_vm2, %v3025_v57  ;;  %v1907_v34 = vsel %vm277_vm1, %v1894_v32, 0 }
  0xf4   : > { %1671 = vmatpush1.bf16.msra.mxu1 %v1627_v9  ;;  %1688 = vmatprep.mubr.bf16.mxu1 %v3205_v0 }
  0xf5   : > { %3041 = vmatprep.subr.msk.bf16.mxu1 %vm277_vm1, %v1619_v13  ;;  %v1878_v15 = vpop.permute.xlu0 %1877  ;;  %v1880_v16 = vpop.permute.xlu1 %1879 }
  0xf6   : > { %v1895_v28 = vsel %vm1893_vm7, %v1876_v11, %v1878_v15  ;;  %v1896_v36 = vsel %vm1893_vm7, %v1878_v15, %v1880_v16 }
  0xf7   : > { %3035 = vmatmul.mubr.msk.bf16.vlgmr.msra.gmra.mxu0 %vm273_vm2, %v3025_v57  ;;  %v1913_v39 = vsel %vm277_vm1, %v1896_v36, 0 }
  0xf8   : > { %1712 = vmatpush1.bf16.msra.mxu0 %v1633_v14  ;;  %1729 = vmatprep.mubr.bf16.mxu0 %v3205_v0 }
  0xf9   : > { %3043 = vmatprep.subr.msk.bf16.mxu0 %vm277_vm1, %v1621_v18  ;;  %v1882_v21 = vpop.permute.xlu0 %1881  ;;  %v1884_v22 = vpop.permute.xlu1 %1883 }
  0xfa   : > { %v1897_v33 = vsel %vm1893_vm7, %v1880_v16, %v1882_v21  ;;  %v1898_v40 = vsel %vm1893_vm7, %v1882_v21, %v1884_v22 }
  0xfb   : > { %3038 = vmatmul.mubr.msk.bf16.vlgmr.msra.gmra.mxu1 %vm273_vm2, %v3036_v19  ;;  %v1919_v45 = vsel %vm277_vm1, %v1898_v40, 0 }
  0xfc   : > { %1753 = vmatpush1.bf16.msra.mxu1 %v1639_v20  ;;  %1770 = vmatprep.mubr.bf16.mxu1 %v3205_v0 }
  0xfd   : > { %3045 = vmatprep.subr.msk.bf16.mxu1 %vm277_vm1, %v1612_v6  ;;  %v1886_v25 = vpop.permute.xlu0 %1885  ;;  %v1888_v26 = vpop.permute.xlu1 %1887 }
  0xfe   : > { %v1899_v37 = vsel %vm1893_vm7, %v1884_v22, %v1886_v25  ;;  %v1900_v46 = vsel %vm1893_vm7, %v1886_v25, %v1888_v26 }
  0xff   : > { %3040 = vmatmul.mubr.msk.bf16.vlgmr.msra.gmra.mxu0 %vm273_vm2, %v3036_v19  ;;  %v1925_v49 = vsel %vm277_vm1, %v1900_v46, 0 }
 0x100   : > { %1794 = vmatpush1.bf16.msra.mxu0 %v1645_v24  ;;  %1811 = vmatprep.mubr.bf16.mxu0 %v3205_v0 }
 0x101   : > { %3048 = vmatprep.subr.msk.bf16.mxu0 %vm277_vm1, %v1895_v28  ;;  %v1890_v30 = vpop.permute.xlu0 %1889  ;;  %v1892_v31 = vpop.permute.xlu1 %1891 }
 0x102   : > { %v1901_v41 = vsel %vm1893_vm7, %v1888_v26, %v1890_v30  ;;  %v1902_v50 = vsel %vm1893_vm7, %v1890_v30, %v1892_v31  ;;  %v3069_v26 = vld [vmem:[%s3914_s1 + $0x10] sm:$0x3] }
 0x103   : > { %3042 = vmatmul.mubr.msk.bf16.vlgmr.msra.gmra.mxu1 %vm273_vm2, %v3036_v19  ;;  %v1931_v53 = vsel %vm277_vm1, %v1902_v50, 0 }
 0x104   : > { %1835 = vmatpush1.bf16.msra.mxu1 %v1651_v29  ;;  %1852 = vmatprep.mubr.bf16.mxu1 %v3205_v0 }
 0x105   : > { %3050 = vmatprep.subr.msk.bf16.mxu1 %vm277_vm1, %v1897_v33  ;;  %v2154_v35 = vpop.permute.xlu0 %2153 }
 0x106   : > { %v2156_v38 = vpop.permute.xlu1 %2155 }
 0x107   : > { %3044 = vmatmul.mubr.msk.bf16.vlgmr.msra.gmra.mxu0 %vm273_vm2, %v3036_v19  ;;  %v2174_v55 = vsel %vm2173_vm8, %v2154_v35, %v2156_v38 }
 0x108   : > { %1951 = vmatpush1.bf16.msra.mxu0 %v1907_v34  ;;  %1968 = vmatprep.mubr.bf16.mxu0 %v3205_v0  ;;  %v2187_v58 = vsel %vm277_vm1, %v2174_v55, 0 }
 0x109   : > { %3052 = vmatprep.subr.msk.bf16.mxu0 %vm277_vm1, %v1899_v37 }
 0x10b   : > { %3046 = vmatmul.mubr.msk.bf16.vlgmr.msra.gmra.mxu1 %vm273_vm2, %v3036_v19  ;;  %v2158_v42 = vpop.permute.xlu0 %2157  ;;  %v2160_v43 = vpop.permute.xlu1 %2159 }
 0x10c   : > { %1992 = vmatpush1.bf16.msra.mxu1 %v1913_v39  ;;  %2009 = vmatprep.mubr.bf16.mxu1 %v3205_v0  ;;  %v2175_v51 = vsel %vm2173_vm8, %v2156_v38, %v2158_v42  ;;  %v2176_v60 = vsel %vm2173_vm8, %v2158_v42, %v2160_v43 }
 0x10d   : > { %3054 = vmatprep.subr.msk.bf16.mxu1 %vm277_vm1, %v1901_v41  ;;  %v2193_v63 = vsel %vm277_vm1, %v2176_v60, 0 }
 0x10f   : > { %3049 = vmatmul.mubr.msk.bf16.vlgmr.msra.gmra.mxu0 %vm273_vm2, %v3047_v44  ;;  %v2162_v47 = vpop.permute.xlu0 %2161  ;;  %v2164_v48 = vpop.permute.xlu1 %2163 }
 0x110   : > { %2033 = vmatpush1.bf16.msra.mxu0 %v1919_v45  ;;  %2050 = vmatprep.mubr.bf16.mxu0 %v3205_v0  ;;  %v2177_v56 = vsel %vm2173_vm8, %v2160_v43, %v2162_v47  ;;  %v2178_v2 = vsel %vm2173_vm8, %v2162_v47, %v2164_v48 }
 0x111   : > { %3056 = vmatprep.subr.msk.bf16.mxu0 %vm277_vm1, %v1892_v31  ;;  %v2199_v6 = vsel %vm277_vm1, %v2178_v2, 0 }
 0x113   : > { %3051 = vmatmul.mubr.msk.bf16.vlgmr.msra.gmra.mxu1 %vm273_vm2, %v3047_v44 }
 0x114   : > { %2074 = vmatpush1.bf16.msra.mxu1 %v1925_v49  ;;  %2091 = vmatprep.mubr.bf16.mxu1 %v3205_v0  ;;  %v2166_v52 = vpop.permute.xlu0 %2165 }
 0x115   : > { %3059 = vmatprep.subr.msk.bf16.mxu1 %vm277_vm1, %v2175_v51  ;;  %v2168_v54 = vpop.permute.xlu1 %2167  ;;  %v2179_v61 = vsel %vm2173_vm8, %v2164_v48, %v2166_v52 }
 0x116   : > { %v2180_v7 = vsel %vm2173_vm8, %v2166_v52, %v2168_v54 }
 0x117   : > { %3053 = vmatmul.mubr.msk.bf16.vlgmr.msra.gmra.mxu0 %vm273_vm2, %v3047_v44  ;;  %v2205_v10 = vsel %vm277_vm1, %v2180_v7, 0 }
 0x118   : > { %2115 = vmatpush1.bf16.msra.mxu0 %v1931_v53  ;;  %2132 = vmatprep.mubr.bf16.mxu0 %v3205_v0  ;;  %v2170_v57 = vpop.permute.xlu0 %2169 }
 0x119   : > { %3061 = vmatprep.subr.msk.bf16.mxu0 %vm277_vm1, %v2177_v56  ;;  %v2172_v59 = vpop.permute.xlu1 %2171  ;;  %v2181_v3 = vsel %vm2173_vm8, %v2168_v54, %v2170_v57 }
 0x11a   : > { %v2182_v11 = vsel %vm2173_vm8, %v2170_v57, %v2172_v59 }
 0x11b   : > { %3055 = vmatmul.mubr.msk.bf16.vlgmr.msra.gmra.mxu1 %vm273_vm2, %v3047_v44  ;;  %v2211_v13 = vsel %vm277_vm1, %v2182_v11, 0 }
 0x11c   : > { %2231 = vmatpush1.bf16.msra.mxu1 %v2187_v58  ;;  %2248 = vmatprep.mubr.bf16.mxu1 %v3205_v0  ;;  %v2434_v62 = vpop.permute.xlu0 %2433 }
 0x11d   : > { %3063 = vmatprep.subr.msk.bf16.mxu1 %vm277_vm1, %v2179_v61  ;;  %v2436_v1 = vpop.permute.xlu1 %2435 }
 0x11e   : > { %v2454_v16 = vsel %vm2453_vm9, %v2434_v62, %v2436_v1 }
 0x11f   : > { %3057 = vmatmul.mubr.msk.bf16.vlgmr.msra.gmra.mxu0 %vm273_vm2, %v3047_v44  ;;  %v2467_v18 = vsel %vm277_vm1, %v2454_v16, 0 }
 0x120   : > { %2272 = vmatpush1.bf16.msra.mxu0 %v2193_v63  ;;  %2289 = vmatprep.mubr.bf16.mxu0 %v3205_v0  ;;  %v2438_v5 = vpop.permute.xlu0 %2437 }
 0x121   : > { %3065 = vmatprep.subr.msk.bf16.mxu0 %vm277_vm1, %v2181_v3  ;;  %v2440_v8 = vpop.permute.xlu1 %2439  ;;  %v2455_v12 = vsel %vm2453_vm9, %v2436_v1, %v2438_v5 }
 0x122   : > { %v2456_v19 = vsel %vm2453_vm9, %v2438_v5, %v2440_v8 }
 0x123   : > { %3060 = vmatmul.mubr.msk.bf16.vlgmr.msra.gmra.mxu1 %vm273_vm2, %v3058_v4  ;;  %v2473_v23 = vsel %vm277_vm1, %v2456_v19, 0 }
 0x124   : > { %2313 = vmatpush1.bf16.msra.mxu1 %v2199_v6  ;;  %2330 = vmatprep.mubr.bf16.mxu1 %v3205_v0  ;;  %v2442_v9 = vpop.permute.xlu0 %2441 }
 0x125   : > { %3067 = vmatprep.subr.msk.bf16.mxu1 %vm277_vm1, %v2172_v59  ;;  %v2444_v14 = vpop.permute.xlu1 %2443  ;;  %v2457_v17 = vsel %vm2453_vm9, %v2440_v8, %v2442_v9 }
 0x126   : > { %v2458_v24 = vsel %vm2453_vm9, %v2442_v9, %v2444_v14 }
 0x127   : > { %3062 = vmatmul.mubr.msk.bf16.vlgmr.msra.gmra.mxu0 %vm273_vm2, %v3058_v4  ;;  %v2479_v27 = vsel %vm277_vm1, %v2458_v24, 0 }
 0x128   : > { %2354 = vmatpush1.bf16.msra.mxu0 %v2205_v10  ;;  %2371 = vmatprep.mubr.bf16.mxu0 %v3205_v0  ;;  %v2446_v15 = vpop.permute.xlu0 %2445 }
 0x129   : > { %3070 = vmatprep.subr.msk.bf16.mxu0 %vm277_vm1, %v2455_v12  ;;  %v2459_v20 = vsel %vm2453_vm9, %v2444_v14, %v2446_v15  ;;  %v2448_v21 = vpop.permute.xlu1 %2447 }
 0x12a   : > { %v2460_v28 = vsel %vm2453_vm9, %v2446_v15, %v2448_v21 }
 0x12b   : > { %3064 = vmatmul.mubr.msk.bf16.vlgmr.msra.gmra.mxu1 %vm273_vm2, %v3058_v4  ;;  %v2485_v30 = vsel %vm277_vm1, %v2460_v28, 0 }
 0x12c   : > { %2395 = vmatpush1.bf16.msra.mxu1 %v2211_v13  ;;  %2412 = vmatprep.mubr.bf16.mxu1 %v3205_v0  ;;  %v2450_v22 = vpop.permute.xlu0 %2449 }
 0x12d   : > { %3072 = vmatprep.subr.msk.bf16.mxu1 %vm277_vm1, %v2457_v17  ;;  %v2461_v25 = vsel %vm2453_vm9, %v2448_v21, %v2450_v22  ;;  %v2452_v29 = vpop.permute.xlu1 %2451 }
 0x12e   : > { %v2462_v31 = vsel %vm2453_vm9, %v2450_v22, %v2452_v29 }
 0x12f   : > { %3066 = vmatmul.mubr.msk.bf16.vlgmr.msra.gmra.mxu0 %vm273_vm2, %v3058_v4  ;;  %v2491_v32 = vsel %vm277_vm1, %v2462_v31, 0 }
 0x130   : > { %2511 = vmatpush1.bf16.msra.mxu0 %v2467_v18  ;;  %2528 = vmatprep.mubr.bf16.mxu0 %v3205_v0 }
 0x131   : > { %3074 = vmatprep.subr.msk.bf16.mxu0 %vm277_vm1, %v2459_v20 }
 0x133   : > { %3068 = vmatmul.mubr.msk.bf16.vlgmr.msra.gmra.mxu1 %vm273_vm2, %v3058_v4 }
 0x134   : > { %2552 = vmatpush1.bf16.msra.mxu1 %v2473_v23  ;;  %2569 = vmatprep.mubr.bf16.mxu1 %v3205_v0 }
 0x135   : > { %3076 = vmatprep.subr.msk.bf16.mxu1 %vm277_vm1, %v2461_v25 }
 0x137   : > { %3071 = vmatmul.mubr.msk.bf16.vlgmr.msra.gmra.mxu0 %vm273_vm2, %v3069_v26 }
 0x138   : > { %2593 = vmatpush1.bf16.msra.mxu0 %v2479_v27  ;;  %2610 = vmatprep.mubr.bf16.mxu0 %v3205_v0 }
 0x139   : > { %3078 = vmatprep.subr.msk.bf16.mxu0 %vm277_vm1, %v2452_v29 }
 0x13b   : > { %3073 = vmatmul.mubr.msk.bf16.vlgmr.msra.gmra.mxu1 %vm273_vm2, %v3069_v26 }
 0x13c   : > { %2634 = vmatpush1.bf16.msra.mxu1 %v2485_v30  ;;  %2651 = vmatprep.mubr.bf16.mxu1 %v3205_v0 }
 0x13f   : > { %3075 = vmatmul.mubr.msk.bf16.vlgmr.msra.gmra.mxu0 %vm273_vm2, %v3069_v26 }
 0x140   : > { %2675 = vmatpush1.bf16.msra.mxu0 %v2491_v32  ;;  %2692 = vmatprep.mubr.bf16.mxu0 %v3205_v0 }
 0x143   : > { %3077 = vmatmul.mubr.msk.bf16.vlgmr.msra.gmra.mxu1 %vm273_vm2, %v3069_v26 }
 0x147   : > { %3079 = vmatmul.mubr.msk.bf16.vlgmr.msra.gmra.mxu0 %vm273_vm2, %v3069_v26 }
 0x157   : > { %v342_v33 = vpop.f32.mrf.mxu0 }
 0x159   : > { %v344_v34 = vpop.f32.mrf.mxu0 }
 0x15b   : > { %v346_v35 = vpop.f32.mrf.mxu0  ;;  %v383_v36 = vpop.f32.mrf.mxu1 }
 0x15d   : > { %v347_v37 = vpop.f32.mrf.mxu0  ;;  %v385_v38 = vpop.f32.mrf.mxu1 }
 0x15f   : > { %v387_v39 = vpop.f32.mrf.mxu1  ;;  %v424_v40 = vpop.f32.mrf.mxu0 }
 0x161   : > { %v388_v41 = vpop.f32.mrf.mxu1  ;;  %v426_v42 = vpop.f32.mrf.mxu0 }
 0x163   : > { %v428_v43 = vpop.f32.mrf.mxu0  ;;  %v465_v44 = vpop.f32.mrf.mxu1 }
 0x165   : > { %v429_v45 = vpop.f32.mrf.mxu0  ;;  %v467_v46 = vpop.f32.mrf.mxu1 }
 0x167   : > { %v469_v47 = vpop.f32.mrf.mxu1  ;;  %v506_v0 = vpop.f32.mrf.mxu0 }
 0x169   : > { %v470_v48 = vpop.f32.mrf.mxu1  ;;  %v508_v49 = vpop.f32.mrf.mxu0 }
 0x16b   : > { %v510_v50 = vpop.f32.mrf.mxu0  ;;  %v580_v51 = vpop.f32.mrf.mxu1 }
 0x16c   : > { %v581_v52 = vadd.f32 %v580_v51, %v342_v33 }
 0x16d   : > { %v511_v53 = vpop.f32.mrf.mxu0  ;;  %v582_v54 = vpop.f32.mrf.mxu1 }
 0x16e   : > { %v583_v55 = vadd.f32 %v582_v54, %v344_v34 }
 0x16f   : > { %v584_v56 = vpop.f32.mrf.mxu1  ;;  %v621_v57 = vpop.f32.mrf.mxu0 }
 0x170   : > { %v622_v58 = vadd.f32 %v621_v57, %v383_v36 }
 0x171   : > { %v585_v59 = vpop.f32.mrf.mxu1  ;;  %v623_v60 = vpop.f32.mrf.mxu0 }
 0x172   : > { %v624_v61 = vadd.f32 %v623_v60, %v385_v38 }
 0x173   : > { %v625_v62 = vpop.f32.mrf.mxu0  ;;  %v662_v63 = vpop.f32.mrf.mxu1 }
 0x174   : > { %v663_v1 = vadd.f32 %v662_v63, %v424_v40 }
 0x175   : > { %v626_v2 = vpop.f32.mrf.mxu0  ;;  %v664_v3 = vpop.f32.mrf.mxu1 }
 0x176   : > { %v665_v4 = vadd.f32 %v664_v3, %v426_v42 }
 0x177   : > { %v666_v5 = vpop.f32.mrf.mxu1  ;;  %v703_v6 = vpop.f32.mrf.mxu0 }
 0x178   : > { %v704_v7 = vadd.f32 %v703_v6, %v465_v44 }
 0x179   : > { %v667_v8 = vpop.f32.mrf.mxu1  ;;  %v705_v9 = vpop.f32.mrf.mxu0 }
 0x17a   : > { %v706_v10 = vadd.f32 %v705_v9, %v467_v46 }
 0x17b   : > { %v707_v11 = vpop.f32.mrf.mxu0  ;;  %v744_v12 = vpop.f32.mrf.mxu1 }
 0x17c   : > { %v745_v13 = vadd.f32 %v744_v12, %v506_v0 }
 0x17d   : > { %v708_v14 = vpop.f32.mrf.mxu0  ;;  %v746_v15 = vpop.f32.mrf.mxu1 }
 0x17e   : > { %v747_v16 = vadd.f32 %v746_v15, %v508_v49 }
 0x17f   : > { %v748_v17 = vpop.f32.mrf.mxu1  ;;  %v850_v18 = vpop.f32.mrf.mxu0 }
 0x180   : > { %v1021_v19 = vadd.f32 %v850_v18, %v581_v52 }
 0x181   : > { %v749_v20 = vpop.f32.mrf.mxu1  ;;  %v852_v21 = vpop.f32.mrf.mxu0 }
 0x182   : > { %v1022_v22 = vadd.f32 %v852_v21, %v583_v55 }
 0x183   : > { %v854_v23 = vpop.f32.mrf.mxu0  ;;  %v891_v24 = vpop.f32.mrf.mxu1 }
 0x184   : > { %v1023_v25 = vadd.f32 %v891_v24, %v622_v58 }
 0x185   : > { %v855_v26 = vpop.f32.mrf.mxu0  ;;  %v893_v27 = vpop.f32.mrf.mxu1 }
 0x186   : > { %v1024_v28 = vadd.f32 %v893_v27, %v624_v61 }
 0x187   : > { %v895_v29 = vpop.f32.mrf.mxu1  ;;  %v932_v30 = vpop.f32.mrf.mxu0 }
 0x188   : > { %v1025_v31 = vadd.f32 %v932_v30, %v663_v1 }
 0x189   : > { %v896_v32 = vpop.f32.mrf.mxu1  ;;  %v934_v33 = vpop.f32.mrf.mxu0 }
 0x18a   : > { %v1026_v34 = vadd.f32 %v934_v33, %v665_v4 }
 0x18b   : > { %v936_v35 = vpop.f32.mrf.mxu0  ;;  %v973_v36 = vpop.f32.mrf.mxu1 }
 0x18c   : > { %v1027_v37 = vadd.f32 %v973_v36, %v704_v7 }
 0x18d   : > { %v937_v38 = vpop.f32.mrf.mxu0  ;;  %v975_v39 = vpop.f32.mrf.mxu1 }
 0x18e   : > { %v1028_v40 = vadd.f32 %v975_v39, %v706_v10 }
 0x18f   : > { %v977_v41 = vpop.f32.mrf.mxu1  ;;  %v1014_v42 = vpop.f32.mrf.mxu0 }
 0x190   : > { %v1029_v43 = vadd.f32 %v1014_v42, %v745_v13 }
 0x191   : > { %v978_v44 = vpop.f32.mrf.mxu1  ;;  %v1016_v45 = vpop.f32.mrf.mxu0 }
 0x192   : > { %v1030_v46 = vadd.f32 %v1016_v45, %v747_v16 }
 0x193   : > { %v1018_v47 = vpop.f32.mrf.mxu0  ;;  %v1130_v0 = vpop.f32.mrf.mxu1 }
 0x194   : > { %v1301_v48 = vadd.f32 %v1130_v0, %v1021_v19 }
 0x195   : > { %v1019_v49 = vpop.f32.mrf.mxu0  ;;  %v1132_v50 = vpop.f32.mrf.mxu1 }
 0x196   : > { %v1302_v51 = vadd.f32 %v1132_v50, %v1022_v22 }
 0x197   : > { %v1134_v52 = vpop.f32.mrf.mxu1  ;;  %v1171_v53 = vpop.f32.mrf.mxu0 }
 0x198   : > { %v1303_v54 = vadd.f32 %v1171_v53, %v1023_v25 }
 0x199   : > { %v1135_v55 = vpop.f32.mrf.mxu1  ;;  %v1173_v56 = vpop.f32.mrf.mxu0 }
 0x19a   : > { %v1304_v57 = vadd.f32 %v1173_v56, %v1024_v28 }
 0x19b   : > { %v1175_v58 = vpop.f32.mrf.mxu0  ;;  %v1212_v59 = vpop.f32.mrf.mxu1 }
 0x19c   : > { %v1305_v60 = vadd.f32 %v1212_v59, %v1025_v31 }
 0x19d   : > { %v1176_v61 = vpop.f32.mrf.mxu0  ;;  %v1214_v62 = vpop.f32.mrf.mxu1 }
 0x19e   : > { %v1306_v63 = vadd.f32 %v1214_v62, %v1026_v34 }
 0x19f   : > { %v1216_v1 = vpop.f32.mrf.mxu1  ;;  %v1253_v2 = vpop.f32.mrf.mxu0 }
 0x1a0   : > { %v1307_v3 = vadd.f32 %v1253_v2, %v1027_v37 }
 0x1a1   : > { %v1217_v4 = vpop.f32.mrf.mxu1  ;;  %v1255_v5 = vpop.f32.mrf.mxu0 }
 0x1a2   : > { %v1308_v6 = vadd.f32 %v1255_v5, %v1028_v40 }
 0x1a3   : > { %v1257_v7 = vpop.f32.mrf.mxu0  ;;  %v1294_v8 = vpop.f32.mrf.mxu1 }
 0x1a4   : > { %v1309_v9 = vadd.f32 %v1294_v8, %v1029_v43 }
 0x1a5   : > { %v1258_v10 = vpop.f32.mrf.mxu0  ;;  %v1296_v11 = vpop.f32.mrf.mxu1 }
 0x1a6   : > { %v1310_v12 = vadd.f32 %v1296_v11, %v1030_v46 }
 0x1a7   : > { %v1298_v13 = vpop.f32.mrf.mxu1  ;;  %v1410_v14 = vpop.f32.mrf.mxu0 }
 0x1a8   : > { %v3707_v15 = vadd.f32 %v1410_v14, %v1301_v48 }
 0x1a9   : > { %v1299_v16 = vpop.f32.mrf.mxu1  ;;  %v1412_v17 = vpop.f32.mrf.mxu0 }
 0x1aa   : > { %v3709_v18 = vadd.f32 %v1412_v17, %v1302_v51 }
 0x1ab   : > { %v1414_v19 = vpop.f32.mrf.mxu0  ;;  %v1451_v20 = vpop.f32.mrf.mxu1 }
 0x1ac   : > { %v3711_v21 = vadd.f32 %v1451_v20, %v1303_v54 }
 0x1ad   : > { %v1415_v22 = vpop.f32.mrf.mxu0  ;;  %v1453_v23 = vpop.f32.mrf.mxu1 }
 0x1ae   : > { %v3713_v24 = vadd.f32 %v1453_v23, %v1304_v57 }
 0x1af   : > { %v1455_v25 = vpop.f32.mrf.mxu1  ;;  %v1492_v26 = vpop.f32.mrf.mxu0 }
 0x1b0   : > { %v3715_v27 = vadd.f32 %v1492_v26, %v1305_v60 }
 0x1b1   : > { %v1456_v28 = vpop.f32.mrf.mxu1  ;;  %v1494_v29 = vpop.f32.mrf.mxu0 }
 0x1b2   : > { %v3717_v30 = vadd.f32 %v1494_v29, %v1306_v63 }
 0x1b3   : > { %v1496_v31 = vpop.f32.mrf.mxu0  ;;  %v1533_v32 = vpop.f32.mrf.mxu1 }
 0x1b4   : > { %v3719_v33 = vadd.f32 %v1533_v32, %v1307_v3  ;;  %v2742_v31 = vlaneseq }
 0x1b5   : > { %v1497_v34 = vpop.f32.mrf.mxu0  ;;  %v1535_v35 = vpop.f32.mrf.mxu1 }
 0x1b6   : > { %v3721_v36 = vadd.f32 %v1535_v35, %v1308_v6 }
 0x1b7   : > { %v1537_v37 = vpop.f32.mrf.mxu1  ;;  %v1574_v38 = vpop.f32.mrf.mxu0 }
 0x1b8   : > { %v3723_v39 = vadd.f32 %v1574_v38, %v1309_v9  ;;  %v2743_v38 = vshrl.u32 %v2742_v31, 7 }
 0x1b9   : > { %v1538_v40 = vpop.f32.mrf.mxu1  ;;  %v1576_v41 = vpop.f32.mrf.mxu0 }
 0x1ba   : > { %v3725_v42 = vadd.f32 %v1576_v41, %v1310_v12 }
 0x1bb   : > { %v1578_v43 = vpop.f32.mrf.mxu0  ;;  %v3727_v44 = vpop.f32.mrf.mxu1 }
 0x1bd   : > { %v1579_v45 = vpop.f32.mrf.mxu0  ;;  %v3729_v46 = vpop.f32.mrf.mxu1 }
 0x1bf   : > { %v1694_v47 = vpop.f32.mrf.mxu1  ;;  %v3731_v0 = vpop.f32.mrf.mxu0 }
 0x1c0   : > { %v2744_v47 = vsub.s32 0, %v2743_v38 }
 0x1c1   : > { %v1695_v48 = vpop.f32.mrf.mxu1  ;;  %v3733_v49 = vpop.f32.mrf.mxu0 }
 0x1c2   : > { %v2738_v48 = vld [vmem:[%s3915_s2] sm:$0xff] }
 0x1c3   : > { %v1735_v50 = vpop.f32.mrf.mxu0  ;;  %v3735_v51 = vpop.f32.mrf.mxu1 }
 0x1c4   : > { %v2748_v50 = vsub.s32 1, %v2743_v38 }
 0x1c5   : > { %v1736_v52 = vpop.f32.mrf.mxu0  ;;  %v3737_v53 = vpop.f32.mrf.mxu1 }
 0x1c6   : > { %v2752_v52 = vsub.s32 2, %v2743_v38 }
 0x1c7   : > { %v1776_v54 = vpop.f32.mrf.mxu1  ;;  %v3739_v55 = vpop.f32.mrf.mxu0 }
 0x1c9   : > { %v1777_v56 = vpop.f32.mrf.mxu1  ;;  %v3741_v57 = vpop.f32.mrf.mxu0 }
 0x1cb   : > { %v1817_v58 = vpop.f32.mrf.mxu0  ;;  %v3743_v59 = vpop.f32.mrf.mxu1 }
 0x1cc   : > { %v2756_v58 = vsub.s32 3, %v2743_v38 }
 0x1cd   : > { %v1818_v60 = vpop.f32.mrf.mxu0  ;;  %v3745_v61 = vpop.f32.mrf.mxu1 }
 0x1ce   : > { %v2760_v60 = vsub.s32 4, %v2743_v38 }
 0x1cf   : > { %v1858_v62 = vpop.f32.mrf.mxu1  ;;  %v1970_v63 = vpop.f32.mrf.mxu0 }
 0x1d0   : > { %v2764_v62 = vsub.s32 5, %v2743_v38 }
 0x1d1   : > { %v1859_v1 = vpop.f32.mrf.mxu1  ;;  %v1972_v2 = vpop.f32.mrf.mxu0 }
 0x1d2   : > { %v2768_v1 = vsub.s32 6, %v2743_v38 }
 0x1d3   : > { %v1974_v3 = vpop.f32.mrf.mxu0  ;;  %v3747_v4 = vpop.f32.mrf.mxu1 }
 0x1d4   : > { %v1861_v3 = vadd.f32 %v3727_v44, %v3707_v15  ;;  %v3789_v15 = vrot.slane %v2738_v48, %v2760_v60  ;;  %v3791_v44 = vrot.slane %v2738_v48, %v2764_v62 }
 0x1d5   : > { %v1975_v5 = vpop.f32.mrf.mxu0  ;;  %v3749_v6 = vpop.f32.mrf.mxu1 }
 0x1d6   : > { %v2772_v5 = vsub.s32 7, %v2743_v38 }
 0x1d7   : > { %v2015_v7 = vpop.f32.mrf.mxu1  ;;  %v3751_v8 = vpop.f32.mrf.mxu0 }
 0x1d9   : > { %v2016_v9 = vpop.f32.mrf.mxu1  ;;  %v3753_v10 = vpop.f32.mrf.mxu0 }
 0x1db   : > { %v2056_v11 = vpop.f32.mrf.mxu0  ;;  %v3755_v12 = vpop.f32.mrf.mxu1 }
 0x1dc   : > { %v2745_v11 = vrot.slane %v2738_v48, %v2744_v47 }
 0x1dd   : > { %v2057_v13 = vpop.f32.mrf.mxu0  ;;  %v3757_v14 = vpop.f32.mrf.mxu1 }
 0x1de   : > { %v2739_v13 = vld [vmem:[%s3915_s2 + $0x8] sm:$0x3] }
 0x1df   : > { %v2097_v16 = vpop.f32.mrf.mxu1  ;;  %v3759_v17 = vpop.f32.mrf.mxu0  ;;  %v3805_v60 = vrot.slane %v2739_v13, %v2748_v50 }
 0x1e0   : > { %v1862_v16 = vadd.f32 %v3729_v46, %v3709_v18  ;;  %v1863_v18 = vadd.f32 %v3731_v0, %v3711_v21  ;;  %v1864_v46 = vadd.f32 %v3733_v49, %v3713_v24  ;;  %v1868_v21 = vadd.f32 %v3741_v57, %v3721_v36 }
 0x1e1   : > { %v2098_v19 = vpop.f32.mrf.mxu1  ;;  %v3761_v20 = vpop.f32.mrf.mxu0  ;;  %v1869_v24 = vadd.f32 %v3743_v59, %v3723_v39 }
 0x1e2   : > { %v2141_v19 = vadd.f32 %v1970_v63, %v1861_v3  ;;  %v2142_v38 = vadd.f32 %v1972_v2, %v1862_v16  ;;  %v1865_v63 = vadd.f32 %v3735_v51, %v3715_v27  ;;  %v1866_v2 = vadd.f32 %v3737_v53, %v3717_v30 }
 0x1e3   : > { %v2138_v22 = vpop.f32.mrf.mxu0  ;;  %v2250_v23 = vpop.f32.mrf.mxu1  ;;  %v1870_v27 = vadd.f32 %v3745_v61, %v3725_v42  ;;  %v2143_v0 = vadd.f32 %v3747_v4, %v1863_v18  ;;  %v2144_v30 = vadd.f32 %v3749_v6, %v1864_v46  ;;  %v2148_v57 = vadd.f32 %v3757_v14, %v1868_v21 }
 0x1e4   : > { %v2749_v22 = vrot.slane %v2738_v48, %v2748_v50 }
 0x1e5   : > { %v2139_v25 = vpop.f32.mrf.mxu0  ;;  %v2252_v26 = vpop.f32.mrf.mxu1 }
 0x1e6   : > { %v2753_v25 = vrot.slane %v2738_v48, %v2752_v52 }
 0x1e7   : > { %v2254_v28 = vpop.f32.mrf.mxu1  ;;  %v3763_v29 = vpop.f32.mrf.mxu0 }
 0x1e8   : > { %v2423_v39 = vadd.f32 %v3763_v29, %v2143_v0 }
 0x1e9   : > { %v2255_v32 = vpop.f32.mrf.mxu1  ;;  %v3765_v34 = vpop.f32.mrf.mxu0 }
 0x1ea   : > { %v2757_v32 = vrot.slane %v2738_v48, %v2756_v58  ;;  %v2424_v61 = vadd.f32 %v3765_v34, %v2144_v30 }
 0x1eb   : > { %v2295_v35 = vpop.f32.mrf.mxu0  ;;  %v3767_v37 = vpop.f32.mrf.mxu1 }
 0x1ec   : > { %v3793_v35 = vrot.slane %v2738_v48, %v2768_v1 }
 0x1ed   : > { %v2296_v40 = vpop.f32.mrf.mxu0  ;;  %v3769_v41 = vpop.f32.mrf.mxu1 }
 0x1ee   : > { %v2421_v40 = vadd.f32 %v2250_v23, %v2141_v19  ;;  %v1867_v23 = vadd.f32 %v3739_v55, %v3719_v33  ;;  %v2145_v33 = vadd.f32 %v3751_v8, %v1865_v63 }
 0x1ef   : > { %v2336_v43 = vpop.f32.mrf.mxu1  ;;  %v3771_v45 = vpop.f32.mrf.mxu0 }
 0x1f0   : > { %v3795_v43 = vrot.slane %v2738_v48, %v2772_v5  ;;  %v2147_v36 = vadd.f32 %v3755_v12, %v1867_v23  ;;  %v2150_v12 = vadd.f32 %v3761_v20, %v1870_v27  ;;  %v2425_v14 = vadd.f32 %v3767_v37, %v2145_v33 }
 0x1f1   : > { %v2337_v54 = vpop.f32.mrf.mxu1  ;;  %v3776_v56 = vpop.f32.mrf.mxu0 }
 0x1f2   : > { %v3797_v54 = vrot.slane %v2739_v13, %v2744_v47  ;;  %v2422_v47 = vadd.f32 %v2252_v26, %v2142_v38  ;;  %v2146_v26 = vadd.f32 %v3753_v10, %v1866_v2  ;;  %v2149_v10 = vadd.f32 %v3759_v17, %v1869_v24 }
 0x1f3   : > { %v2377_v7 = vpop.f32.mrf.mxu0  ;;  %v3780_v9 = vpop.f32.mrf.mxu1  ;;  %v2427_v38 = vadd.f32 %v3771_v45, %v2147_v36  ;;  %v2428_v23 = vadd.f32 %v3776_v56, %v2148_v57 }
 0x1f4   : > { %v2426_v34 = vadd.f32 %v3769_v41, %v2146_v26 }
 0x1f5   : > { %v2378_v28 = vpop.f32.mrf.mxu0  ;;  %v3787_v31 = vpop.f32.mrf.mxu1 }
 0x1f7   : > { %v2418_v52 = vpop.f32.mrf.mxu1  ;;  %v2530_v58 = vpop.f32.mrf.mxu0 }
 0x1f8   : > { %v2701_v48 = vadd.f32 %v2530_v58, %v2421_v40 }
 0x1f9   : > { %v2419_v49 = vpop.f32.mrf.mxu1  ;;  %v2532_v51 = vpop.f32.mrf.mxu0 }
 0x1fa   : > { %v2792_v53 = vmul.f32 %v2745_v11, %v2701_v48  ;;  %v2702_v55 = vadd.f32 %v2532_v51, %v2422_v47 }
 0x1fb   : > { %v2534_v42 = vpop.f32.mrf.mxu0  ;;  %v2571_v59 = vpop.f32.mrf.mxu1 }
 0x1fc   : > { %v2824_v4 = vmul.f32 %v2792_v53, %v2701_v48  ;;  %v2721_v6 = vcombine.low %v2701_v48, %v2702_v55  ;;  %v2793_v8 = vmul.f32 %v2749_v22, %v2702_v55  ;;  %v2703_v29 = vadd.f32 %v2571_v59, %v2423_v39 }
 0x1fd   : > { %v2535_v50 = vpop.f32.mrf.mxu0  ;;  %v2573_v62 = vpop.f32.mrf.mxu1  ;;  %v2802_v1 = vsel %vm277_vm1, %v2792_v53, 0.0 }
 0x1fe   : > { %2731 = vst [vmem:[%s3829_s8] sm:$0xff] %v2721_v6  ;;  %v2803_v3 = vsel %vm277_vm1, %v2793_v8, 0.0  ;;  %v2825_v5 = vmul.f32 %v2793_v8, %v2702_v55  ;;  %v2704_v7 = vadd.f32 %v2573_v62, %v2424_v61  ;;  %v2834_v11 = vsel %vm277_vm1, %v2824_v4, 0.0 }
 0x1ff   : > { %v2804_v13 = vadd.f32 %v2803_v3, %v2802_v1  ;;  %v2794_v17 = vmul.f32 %v2753_v25, %v2703_v29  ;;  %v2575_v20 = vpop.f32.mrf.mxu1  ;;  %v2612_v16 = vpop.f32.mrf.mxu0 }
 0x200   : > { %v2835_v37 = vsel %vm277_vm1, %v2825_v5, 0.0  ;;  %v2722_v19 = vcombine.low %v2703_v29, %v2704_v7  ;;  %v2795_v22 = vmul.f32 %v2757_v32, %v2704_v7  ;;  %v2705_v28 = vadd.f32 %v2612_v16, %v2425_v14 }
 0x201   : > { %v2836_v40 = vadd.f32 %v2835_v37, %v2834_v11  ;;  %v2805_v18 = vsel %vm277_vm1, %v2794_v17, 0.0  ;;  %v2826_v46 = vmul.f32 %v2794_v17, %v2703_v29  ;;  %v2576_v41 = vpop.f32.mrf.mxu1  ;;  %v2614_v63 = vpop.f32.mrf.mxu0  ;;  %v2429_v32 = vadd.f32 %v3780_v9, %v2149_v10 }
 0x202   : > { %v2806_v52 = vadd.f32 %v2805_v18, %v2804_v13  ;;  %2732 = vst [vmem:[%s3829_s8 + $0x8] sm:$0xff] %v2722_v19  ;;  %v2807_v25 = vsel %vm277_vm1, %v2795_v22, 0.0  ;;  %v2827_v58 = vmul.f32 %v2795_v22, %v2704_v7  ;;  %v2796_v2 = vmul.f32 %v3789_v15, %v2705_v28 }
 0x203   : > { %v2837_v47 = vsel %vm277_vm1, %v2826_v46, 0.0  ;;  %v2706_v45 = vadd.f32 %v2614_v63, %v2426_v34  ;;  %v2616_v48 = vpop.f32.mrf.mxu0  ;;  %v2653_v21 = vpop.f32.mrf.mxu1  ;;  %v2430_v9 = vadd.f32 %v3787_v31, %v2150_v12 }
 0x204   : > { %v2838_v24 = vadd.f32 %v2837_v47, %v2836_v40  ;;  %v2808_v27 = vadd.f32 %v2807_v25, %v2806_v52  ;;  %v2839_v0 = vsel %vm277_vm1, %v2827_v58, 0.0  ;;  %v2809_v49 = vsel %vm277_vm1, %v2796_v2, 0.0 }
 0x205   : > { %v2828_v51 = vmul.f32 %v2796_v2, %v2705_v28  ;;  %v2723_v30 = vcombine.low %v2705_v28, %v2706_v45  ;;  %v2797_v15 = vmul.f32 %v3791_v44, %v2706_v45  ;;  %v2707_v33 = vadd.f32 %v2653_v21, %v2427_v38  ;;  %v2617_v56 = vpop.f32.mrf.mxu0  ;;  %v2655_v53 = vpop.f32.mrf.mxu1 }
 0x206   : > { %v2840_v55 = vadd.f32 %v2839_v0, %v2838_v24  ;;  %v2810_v26 = vadd.f32 %v2809_v49, %v2808_v27  ;;  %v2708_v36 = vadd.f32 %v2655_v53, %v2428_v23 }
 0x207   : > { %v2841_v57 = vsel %vm277_vm1, %v2828_v51, 0.0  ;;  %2733 = vst [vmem:[%s3829_s8 + $0x10] sm:$0xff] %v2723_v30  ;;  %v2811_v39 = vsel %vm277_vm1, %v2797_v15, 0.0  ;;  %v2829_v42 = vmul.f32 %v2797_v15, %v2706_v45  ;;  %v2798_v59 = vmul.f32 %v3793_v35, %v2707_v33  ;;  %v2657_v61 = vpop.f32.mrf.mxu1  ;;  %v2694_v4 = vpop.f32.mrf.mxu0 }
 0x208   : > { %v2842_v44 = vadd.f32 %v2841_v57, %v2840_v55  ;;  %v2812_v6 = vadd.f32 %v2811_v39, %v2810_v26  ;;  %v2724_v8 = vcombine.low %v2707_v33, %v2708_v36  ;;  %v2799_v10 = vmul.f32 %v3795_v43, %v2708_v36 }
 0x209   : > { %v2843_v31 = vsel %vm277_vm1, %v2829_v42, 0.0  ;;  %v2813_v12 = vsel %vm277_vm1, %v2798_v59, 0.0  ;;  %v2830_v14 = vmul.f32 %v2798_v59, %v2707_v33  ;;  %v2709_v29 = vadd.f32 %v2694_v4, %v2429_v32  ;;  %v2658_v50 = vpop.f32.mrf.mxu1  ;;  %v2696_v62 = vpop.f32.mrf.mxu0 }
 0x20a   : > { %v2844_v1 = vadd.f32 %v2843_v31, %v2842_v44  ;;  %2734 = vst [vmem:[%s3829_s8 + $0x18] sm:$0xff] %v2724_v8  ;;  %v2831_v3 = vmul.f32 %v2799_v10, %v2708_v36  ;;  %v2710_v5 = vadd.f32 %v2696_v62, %v2430_v9  ;;  %v2814_v35 = vadd.f32 %v2813_v12, %v2812_v6 }
 0x20b   : > { %v2845_v7 = vsel %vm277_vm1, %v2830_v14, 0.0  ;;  %v2800_v34 = vmul.f32 %v3797_v54, %v2709_v29  ;;  %v2698_v43 = vpop.f32.mrf.mxu0  ;;  %v2815_v11 = vsel %vm277_vm1, %v2799_v10, 0.0 }
 0x20c   : > { %v2725_v13 = vcombine.low %v2709_v29, %v2710_v5  ;;  %v2801_v17 = vmul.f32 %v3805_v60, %v2710_v5  ;;  %v2816_v20 = vadd.f32 %v2815_v11, %v2814_v35  ;;  %v2846_v16 = vadd.f32 %v2845_v7, %v2844_v1 }
 0x20d   : > { %v2832_v37 = vmul.f32 %v2800_v34, %v2709_v29  ;;  %v2699_v19 = vpop.f32.mrf.mxu0  ;;  %v2817_v22 = vsel %vm277_vm1, %v2800_v34, 0.0  ;;  %v2847_v54 = vsel %vm277_vm1, %v2831_v3, 0.0 }
 0x20e   : > { %2737 = vst.msk [vmem:[%s3829_s8 + $0x20] sm:$0xff] %vm2736_vm11, %v2725_v13  ;;  %v2818_v28 = vadd.f32 %v2817_v22, %v2816_v20  ;;  %v2820_v38 = vsel %vm2819_vm12, %v2801_v17, 0.0  ;;  %v2833_v40 = vmul.f32 %v2801_v17, %v2710_v5  ;;  %v2848_v18 = vadd.f32 %v2847_v54, %v2846_v16 }
 0x20f   : > { %v2849_v46 = vsel %vm277_vm1, %v2832_v37, 0.0 }
 0x210   : > { %v2821_v41 = vadd.f32 %v2820_v38, %v2818_v28  ;;  %v2850_v60 = vadd.f32 %v2849_v46, %v2848_v18  ;;  %v2851_v63 = vsel %vm2819_vm12, %v2833_v40, 0.0 }
 0x212   : > { %2822 = vadd.xlane.f32.xlu0 %v2821_v41  ;;  %v2852_v52 = vadd.f32 %v2851_v63, %v2850_v60 }
 0x214   : > { %2853 = vadd.xlane.f32.xlu1 %v2852_v52 }
 0x29b   : > { %v2823_v25 = vpop.xlane.xlu0 %2822 }
 0x29d   : > { %v2854_v58 = vpop.xlane.xlu1 %2853 }
 0x29e   : > { %v2856_v2 = vsel %vm2855_vm13, %v2823_v25, %v2854_v58 }
 0x29f   : > { %2858 = vst.msk [vmem:[%s198_s10] sm:$0xf] %vm2857_vm14, %v2856_v2 }
 0x2a0   : > { %3156 = shalt.err (!%p3153_p3)
}
 0x2a1   : > { %s3157_s30 = scalar_lea.hbm %s3878_s14, 64  ;;  %s3161_s7 = scalar_lea.hbm %s3917_s4, 128 }
 0x2a2   : > { %p3158_p4 = scmp.ne.s32.totalorder %s3878_s14, %s3157_s30  ;;  %p3162_p9 = scmp.lt.s32.totalorder %s3878_s14, %s3917_s4 }
 0x2a3   : > { %p3163_p10 = scmp.lt.s32.totalorder %s3161_s7, %s3157_s30 }
 0x2a4   : > { %p3159_p7 = pnand %p3158_p4, %p3278_p5 }
 0x2a5   : > { %p3164_p11 = por %p3163_p10, %p3162_p9 }
 0x2a6   : > { %p3160_p8 = pneg %p3159_p7 }
 0x2a8   : > { %p3165_p12 = pnand %p3164_p11, %p3160_p8 }
 0x2aa   : > { %3168 = shalt.err (!%p3165_p12)
}
 0x2ab   : > { %3085 = dma.vmem_to_hbm [thread:$0]  (%p3278_p5), %s2882_s11, 64, %s3878_s14, %s2865_s20  }
 0x2ac PF: > { %p3091_p13 = scmp.ge.s32.totalorder %s3203_s18, 2  ;;  %s2901_s28 = sand.u32 1, %s3191_s15  }
 0x2ad   : > { %s2902_s9 = scalar_lea.sflag [#allocation3], %s2901_s28 }
 0x2ae   : > { %p3088_p0 = pnand %p3091_p13, %p3282_p6 }
 0x2b0   : > { %p3089_p1 = pneg %p3088_p0 }
 0x2b2   : > { %3186 = dma.done.wait (%p3089_p1), %s2902_s9, 64  }
 0x2b3   : > { %3188 = vsyncadd (%p3089_p1), %s2902_s9, 4294967232  ;;  %p15_p2 = scmp.ge.s32.totalorder %s3265_s21, 4   ;;  %s3920_s15 = smov %s3195_s16 }
 0x2b4   : > { %s3921_s16 = smov %s3199_s17  ;;  %s3922_s17 = smov %s3276_s24 }
 0x2b5   : > { %s3923_s18 = smov %s3265_s21  ;;  %17 = sbr.rel (!%p15_p2) target bundleno = 3 (0x3), region = 87 }
 0x2ba   :  { %2907 = vsyncpa [#allocation3], 1 }
 0x2bb   :  { %2909 = vsyncpa [#allocation3 + $0x1], 1 }

</bundles_post_ra>
